<compile_context>
chip_gen: v7x
topology: tpu7x:2x2x1
jax: 0.10.0
libtpu: 0.0.40
codegen_flags: <defaults>
</compile_context>

<pallas_src>
import math
import functools

import jax
import jax.numpy as jnp
from jax.experimental import pallas as pl
from jax.experimental.pallas import tpu as pltpu

# ----------------------------- config ---------------------------------------
INPUT_DIM = 50     # src vocab
OUTPUT_DIM = 60    # trg vocab
HID_DIM = 32
N_LAYERS = 2
N_HEADS = 4
PF_DIM = 64
MAX_LEN = 100
SRC_PAD_IDX = 1
TRG_PAD_IDX = 1
LN_EPS = 1e-5
NEG_INF = -1e10
FC_OUT_PAD = 128   # lane-dense padded fc_out width (sliced to OUTPUT_DIM outside)


# ----------------------------- in-kernel helpers -----------------------------
def _layernorm(x, g, b):
    mu = jnp.mean(x, axis=-1, keepdims=True)
    var = jnp.mean(jnp.square(x - mu), axis=-1, keepdims=True)
    return (x - mu) * jax.lax.rsqrt(var + LN_EPS) * g + b


def _mha(q_all, k_all, v_all, mask_add, wo, n_heads, inv_scale):
    """Multi-head attention on 2-D tiles (single batch element).

    q_all: (Lq, H), k_all/v_all: (Lk, H), mask_add broadcastable to (Lq, Lk),
    wo: (H, H).  Returns (out (Lq, H) pre-bias, list of per-head attn (Lq, Lk)).
    The output projection is folded in as sum_h ctx_h @ wo[h*Dh:(h+1)*Dh, :]
    (identical to concat(ctx) @ wo, avoids an in-kernel concatenate)."""
    H = q_all.shape[-1]
    Dh = H // n_heads
    out = None
    attns = []
    for h in range(n_heads):
        sl = slice(h * Dh, (h + 1) * Dh)
        q = q_all[:, sl] * inv_scale            # scale folded into q
        k = k_all[:, sl]
        v = v_all[:, sl]
        # q @ k.T without an explicit transpose: contract dim 1 vs dim 1.
        e = jax.lax.dot_general(
            q, k, dimension_numbers=(((1,), (1,)), ((), ())),
            preferred_element_type=jnp.float32) + mask_add
        m = jnp.max(e, axis=-1, keepdims=True)
        p = jnp.exp(e - m)
        a = p * (1.0 / jnp.sum(p, axis=-1, keepdims=True))
        attns.append(a)
        ctx = jnp.dot(a, v, preferred_element_type=jnp.float32)            # (Lq, Dh)
        contrib = jnp.dot(ctx, wo[sl, :], preferred_element_type=jnp.float32)
        out = contrib if out is None else out + contrib
    return out, attns


# ----------------------------- Pallas kernels --------------------------------
def encoder_layer_kernel(x_ref, mask_ref,
                         wqkv_ref, bqkv_ref, wo_ref, bo_ref,
                         ln1g_ref, ln1b_ref,
                         fc1w_ref, fc1b_ref, fc2w_ref, fc2b_ref,
                         ln2g_ref, ln2b_ref,
                         o_ref, *, n_heads, inv_scale):
    # One batch element per grid step; everything below is 2-D math in VMEM.
    x = x_ref[0]                                  # (Ls, H)
    H = x.shape[-1]
    mask = mask_ref[0]                            # (1, Ls) additive (0 / -1e10)

    # fused QKV projection: one (Ls, H) @ (H, 3H) matmul
    qkv = jnp.dot(x, wqkv_ref[...], preferred_element_type=jnp.float32) + bqkv_ref[...]
    sa, _ = _mha(qkv[:, :H], qkv[:, H:2 * H], qkv[:, 2 * H:],
                 mask, wo_ref[...], n_heads, inv_scale)
    y = _layernorm(x + sa + bo_ref[...], ln1g_ref[...], ln1b_ref[...])

    # fused FFN: fc1 + ReLU + fc2, intermediate never leaves VMEM
    hmid = jnp.maximum(
        jnp.dot(y, fc1w_ref[...], preferred_element_type=jnp.float32) + fc1b_ref[...],
        0.0)
    f = jnp.dot(hmid, fc2w_ref[...], preferred_element_type=jnp.float32) + fc2b_ref[...]
    o_ref[0] = _layernorm(y + f, ln2g_ref[...], ln2b_ref[...])


def decoder_layer_kernel(x_ref, enc_ref, tmask_ref, smask_ref,
                         wqkv_ref, bqkv_ref, wo1_ref, bo1_ref,
                         ln1g_ref, ln1b_ref,
                         wq2_ref, bq2_ref, wkv2_ref, bkv2_ref, wo2_ref, bo2_ref,
                         ln2g_ref, ln2b_ref,
                         fc1w_ref, fc1b_ref, fc2w_ref, fc2b_ref,
                         ln3g_ref, ln3b_ref,
                         o_ref, attn_ref=None, *, n_heads, inv_scale):
    x = x_ref[0]                                  # (Lt, H)
    enc = enc_ref[0]                              # (Ls, H)
    H = x.shape[-1]
    tmask = tmask_ref[0]                          # (Lt, Lt) additive causal+pad
    smask = smask_ref[0]                          # (1, Ls)  additive pad

    # --- masked self-attention (fused QKV) + residual + LN1 ---
    qkv = jnp.dot(x, wqkv_ref[...], preferred_element_type=jnp.float32) + bqkv_ref[...]
    sa, _ = _mha(qkv[:, :H], qkv[:, H:2 * H], qkv[:, 2 * H:],
                 tmask, wo1_ref[...], n_heads, inv_scale)
    y = _layernorm(x + sa + bo1_ref[...], ln1g_ref[...], ln1b_ref[...])

    # --- cross-attention (fused KV) + residual + LN2 ---
    qc = jnp.dot(y, wq2_ref[...], preferred_element_type=jnp.float32) + bq2_ref[...]
    kvc = jnp.dot(enc, wkv2_ref[...], preferred_element_type=jnp.float32) + bkv2_ref[...]
    ca, attns = _mha(qc, kvc[:, :H], kvc[:, H:],
                     smask, wo2_ref[...], n_heads, inv_scale)
    z = _layernorm(y + ca + bo2_ref[...], ln2g_ref[...], ln2b_ref[...])

    # --- fused FFN + residual + LN3 ---
    hmid = jnp.maximum(
        jnp.dot(z, fc1w_ref[...], preferred_element_type=jnp.float32) + fc1b_ref[...],
        0.0)
    f = jnp.dot(hmid, fc2w_ref[...], preferred_element_type=jnp.float32) + fc2b_ref[...]
    o_ref[0] = _layernorm(z + f, ln3g_ref[...], ln3b_ref[...])

    # Only the last decoder layer materializes the cross-attention weights.
    if attn_ref is not None:
        for h in range(n_heads):
            attn_ref[h, 0] = attns[h]


def linear_padded_kernel(x_ref, w_ref, b_ref, o_ref):
    # lane-dense (>=128-wide) output block
    o_ref[...] = (jnp.dot(x_ref[...], w_ref[...], preferred_element_type=jnp.float32)
                  + b_ref[...])


# ----------------------------- BlockSpec helpers ------------------------------
def _bspec(shape):
    """Block over leading batch dim (size-1 blocks), full extent elsewhere."""
    r = len(shape)
    return pl.BlockSpec((1,) + tuple(shape[1:]),
                        lambda b, _r=r: (b,) + (0,) * (_r - 1))


def _wspec(shape):
    """Replicated (weight) input: full array every grid step."""
    r = len(shape)
    return pl.BlockSpec(tuple(shape), lambda b, _r=r: (0,) * _r)


# ----------------------------- Pallas wrappers --------------------------------
def fused_encoder_layer(lp, x, src_mask_add):
    B, L, H = x.shape
    args = [x, src_mask_add,
            lp["wqkv"], lp["bqkv"], lp["wo"], lp["bo"],
            lp["ln1_g"], lp["ln1_b"],
            lp["fc1_w"], lp["fc1_b"], lp["fc2_w"], lp["fc2_b"],
            lp["ln2_g"], lp["ln2_b"]]
    in_specs = [_bspec(x.shape), _bspec(src_mask_add.shape)] + \
               [_wspec(a.shape) for a in args[2:]]
    return pl.pallas_call(
        functools.partial(encoder_layer_kernel, n_heads=N_HEADS,
                          inv_scale=1.0 / math.sqrt(H // N_HEADS)),
        out_shape=jax.ShapeDtypeStruct((B, L, H), jnp.float32),
        grid=(B,),
        in_specs=in_specs,
        out_specs=_bspec((B, L, H)),
        compiler_params=pltpu.CompilerParams(dimension_semantics=("parallel",)),
    )(*args)


def fused_decoder_layer(lp, x, enc_src, trg_mask_add, src_mask_add, return_attn):
    B, Lt, H = x.shape
    Ls = enc_src.shape[1]
    args = [x, enc_src, trg_mask_add, src_mask_add,
            lp["self_wqkv"], lp["self_bqkv"], lp["self_wo"], lp["self_bo"],
            lp["ln1_g"], lp["ln1_b"],
            lp["enc_wq"], lp["enc_bq"], lp["enc_wkv"], lp["enc_bkv"],
            lp["enc_wo"], lp["enc_bo"],
            lp["ln2_g"], lp["ln2_b"],
            lp["fc1_w"], lp["fc1_b"], lp["fc2_w"], lp["fc2_b"],
            lp["ln3_g"], lp["ln3_b"]]
    in_specs = [_bspec(x.shape), _bspec(enc_src.shape),
                _bspec(trg_mask_add.shape), _bspec(src_mask_add.shape)] + \
               [_wspec(a.shape) for a in args[4:]]

    if return_attn:
        out_shape = (jax.ShapeDtypeStruct((B, Lt, H), jnp.float32),
                     jax.ShapeDtypeStruct((N_HEADS, B, Lt, Ls), jnp.float32))
        out_specs = (_bspec((B, Lt, H)),
                     pl.BlockSpec((N_HEADS, 1, Lt, Ls), lambda b: (0, b, 0, 0)))
    else:
        out_shape = jax.ShapeDtypeStruct((B, Lt, H), jnp.float32)
        out_specs = _bspec((B, Lt, H))

    res = pl.pallas_call(
        functools.partial(decoder_layer_kernel, n_heads=N_HEADS,
                          inv_scale=1.0 / math.sqrt(H // N_HEADS)),
        out_shape=out_shape,
        grid=(B,),
        in_specs=in_specs,
        out_specs=out_specs,
        compiler_params=pltpu.CompilerParams(dimension_semantics=("parallel",)),
    )(*args)

    if return_attn:
        out, attn = res
        return out, jnp.transpose(attn, (1, 0, 2, 3))   # -> (B, n_heads, Lt, Ls)
    return res, None


def fc_out_apply(x, w_pad, b_pad, out_dim):
    # x: (B, L, H) -> (B, L, out_dim); computed into a 128-lane padded block.
    B, L, H = x.shape
    n_pad = w_pad.shape[1]
    y = pl.pallas_call(
        linear_padded_kernel,
        out_shape=jax.ShapeDtypeStruct((B * L, n_pad), jnp.float32),
        grid=(1,),
        in_specs=[pl.BlockSpec((B * L, H), lambda i: (0, 0)),
                  pl.BlockSpec((H, n_pad), lambda i: (0, 0)),
                  pl.BlockSpec((1, n_pad), lambda i: (0, 0))],
        out_specs=pl.BlockSpec((B * L, n_pad), lambda i: (0, 0)),
    )(x.reshape(B * L, H), w_pad, b_pad)
    return y[:, :out_dim].reshape(B, L, out_dim)


# ----------------------------- model forward ----------------------------------
def make_src_mask_add(src, pad_idx):
    keep = (src != pad_idx)                                      # (B, Ls) keys
    return jnp.where(keep[:, None, :], 0.0, NEG_INF).astype(jnp.float32)  # (B,1,Ls)


def make_trg_mask_add(trg, pad_idx):
    keep = (trg != pad_idx)[:, None, :]                          # (B,1,Lt) keys
    L = trg.shape[1]
    sub = jnp.tril(jnp.ones((L, L), dtype=bool))[None]           # (1,Lt,Lt) causal
    return jnp.where(keep & sub, 0.0, NEG_INF).astype(jnp.float32)  # (B,Lt,Lt)


def encoder_fwd(p, src, src_mask_add):
    B, L = src.shape
    x = p["tok_emb"][src] * math.sqrt(HID_DIM) + p["pos_emb"][:L][None, :, :]
    # TODO(synk): dropout skipped (eval-mode identity)
    for lp in p["layers"]:
        x = fused_encoder_layer(lp, x, src_mask_add)
    return x


def decoder_fwd(p, trg, enc_src, trg_mask_add, src_mask_add):
    B, L = trg.shape
    x = p["tok_emb"][trg] * math.sqrt(HID_DIM) + p["pos_emb"][:L][None, :, :]
    attention = None
    n = len(p["layers"])
    for idx, lp in enumerate(p["layers"]):
        x, attn = fused_decoder_layer(lp, x, enc_src, trg_mask_add, src_mask_add,
                                      return_attn=(idx == n - 1))
        if attn is not None:
            attention = attn
    out = fc_out_apply(x, p["fc_out_w"], p["fc_out_b"], OUTPUT_DIM)
    return out, attention


def seq2seq_forward(params, src, trg):
    src_mask_add = make_src_mask_add(src, SRC_PAD_IDX)
    trg_mask_add = make_trg_mask_add(trg, TRG_PAD_IDX)
    enc_src = encoder_fwd(params["encoder"], src, src_mask_add)
    output, attention = decoder_fwd(params["decoder"], trg, enc_src,
                                    trg_mask_add, src_mask_add)
    return output, attention


# ----------------------------- deterministic init ------------------------------
class KeyGen:
    def __init__(self, seed):
        self._key = jax.random.PRNGKey(seed)

    def __call__(self):
        self._key, sub = jax.random.split(self._key)
        return sub


def _w(kg, shape, std=0.02):
    return std * jax.random.normal(kg(), shape, jnp.float32)


def init_enc_layer(kg, H, PF):
    return {
        "wqkv": _w(kg, (H, 3 * H)), "bqkv": jnp.zeros((1, 3 * H), jnp.float32),
        "wo": _w(kg, (H, H)), "bo": jnp.zeros((1, H), jnp.float32),
        "ln1_g": jnp.ones((1, H), jnp.float32), "ln1_b": jnp.zeros((1, H), jnp.float32),
        "fc1_w": _w(kg, (H, PF)), "fc1_b": jnp.zeros((1, PF), jnp.float32),
        "fc2_w": _w(kg, (PF, H)), "fc2_b": jnp.zeros((1, H), jnp.float32),
        "ln2_g": jnp.ones((1, H), jnp.float32), "ln2_b": jnp.zeros((1, H), jnp.float32),
    }


def init_dec_layer(kg, H, PF):
    return {
        "self_wqkv": _w(kg, (H, 3 * H)), "self_bqkv": jnp.zeros((1, 3 * H), jnp.float32),
        "self_wo": _w(kg, (H, H)), "self_bo": jnp.zeros((1, H), jnp.float32),
        "ln1_g": jnp.ones((1, H), jnp.float32), "ln1_b": jnp.zeros((1, H), jnp.float32),
        "enc_wq": _w(kg, (H, H)), "enc_bq": jnp.zeros((1, H), jnp.float32),
        "enc_wkv": _w(kg, (H, 2 * H)), "enc_bkv": jnp.zeros((1, 2 * H), jnp.float32),
        "enc_wo": _w(kg, (H, H)), "enc_bo": jnp.zeros((1, H), jnp.float32),
        "ln2_g": jnp.ones((1, H), jnp.float32), "ln2_b": jnp.zeros((1, H), jnp.float32),
        "fc1_w": _w(kg, (H, PF)), "fc1_b": jnp.zeros((1, PF), jnp.float32),
        "fc2_w": _w(kg, (PF, H)), "fc2_b": jnp.zeros((1, H), jnp.float32),
        "ln3_g": jnp.ones((1, H), jnp.float32), "ln3_b": jnp.zeros((1, H), jnp.float32),
    }


def init_params(seed=0):
    kg = KeyGen(seed)
    encoder = {
        "tok_emb": _w(kg, (INPUT_DIM, HID_DIM)),
        "pos_emb": _w(kg, (MAX_LEN, HID_DIM)),
        "layers": [init_enc_layer(kg, HID_DIM, PF_DIM) for _ in range(N_LAYERS)],
    }
    fc_w = _w(kg, (HID_DIM, OUTPUT_DIM))
    fc_out_w = jnp.zeros((HID_DIM, FC_OUT_PAD), jnp.float32).at[:, :OUTPUT_DIM].set(fc_w)
    fc_out_b = jnp.zeros((1, FC_OUT_PAD), jnp.float32)
    decoder = {
        "tok_emb": _w(kg, (OUTPUT_DIM, HID_DIM)),
        "pos_emb": _w(kg, (MAX_LEN, HID_DIM)),
        "layers": [init_dec_layer(kg, HID_DIM, PF_DIM) for _ in range(N_LAYERS)],
        "fc_out_w": fc_out_w,          # pre-padded to 128 lanes (zeros beyond 60)
        "fc_out_b": fc_out_b,
    }
    return {"encoder": encoder, "decoder": decoder}


# ----------------------------- main --------------------------------------------
if __name__ == "__main__":
    params = init_params(seed=0)

    key = jax.random.PRNGKey(0)
    k_src, k_trg = jax.random.split(key)
    B, LS, LT = 2, 9, 8
    src = jax.random.randint(k_src, (B, LS), 2, INPUT_DIM, dtype=jnp.int32)
    trg = jax.random.randint(k_trg, (B, LT), 2, OUTPUT_DIM, dtype=jnp.int32)
    # add some padding tokens to exercise the masks
    src = src.at[1, 7:].set(SRC_PAD_IDX)
    trg = trg.at[1, 6:].set(TRG_PAD_IDX)

    fwd = jax.jit(seq2seq_forward)
    output, attention = fwd(params, src, trg)
    output = jax.block_until_ready(output)
    attention = jax.block_until_ready(attention)

    assert output.shape == (B, LT, OUTPUT_DIM)
    assert attention.shape == (B, N_HEADS, LT, LS)
    assert bool(jnp.all(jnp.isfinite(output))) and bool(jnp.all(jnp.isfinite(attention)))

    print("KERNEL_OK")
</pallas_src>

<mosaic_0001>
module attributes {stable_mosaic.version = 11 : i64} {
  func.func @encoder_layer_kernel(%arg0: i32, %arg1: memref<1x9x32xf32, #tpu.memory_space<vmem>>, %arg2: memref<1x1x9xf32, #tpu.memory_space<vmem>>, %arg3: memref<32x96xf32, #tpu.memory_space<vmem>>, %arg4: memref<1x96xf32, #tpu.memory_space<vmem>>, %arg5: memref<32x32xf32, #tpu.memory_space<vmem>>, %arg6: memref<1x32xf32, #tpu.memory_space<vmem>>, %arg7: memref<1x32xf32, #tpu.memory_space<vmem>>, %arg8: memref<1x32xf32, #tpu.memory_space<vmem>>, %arg9: memref<32x64xf32, #tpu.memory_space<vmem>>, %arg10: memref<1x64xf32, #tpu.memory_space<vmem>>, %arg11: memref<64x32xf32, #tpu.memory_space<vmem>>, %arg12: memref<1x32xf32, #tpu.memory_space<vmem>>, %arg13: memref<1x32xf32, #tpu.memory_space<vmem>>, %arg14: memref<1x32xf32, #tpu.memory_space<vmem>>, %arg15: memref<1x9x32xf32, #tpu.memory_space<vmem>>) attributes {dimension_semantics = [#tpu.dimension_semantics<parallel>], iteration_bounds = array<i64: 2>, scalar_prefetch = 0 : i64, scratch_operands = 0 : i64, tpu.core_type = #tpu.core_type<tc>, window_params = [{transform_indices = @transform_0, window_bounds = array<i64: 1, 9, 32>}, {transform_indices = @transform_1, window_bounds = array<i64: 1, 1, 9>}, {pipeline_mode = #tpu.pipeline_mode<synchronous>, transform_indices = @transform_2, window_bounds = array<i64: 32, 96>}, {pipeline_mode = #tpu.pipeline_mode<synchronous>, transform_indices = @transform_3, window_bounds = array<i64: 1, 96>}, {pipeline_mode = #tpu.pipeline_mode<synchronous>, transform_indices = @transform_4, window_bounds = array<i64: 32, 32>}, {pipeline_mode = #tpu.pipeline_mode<synchronous>, transform_indices = @transform_5, window_bounds = array<i64: 1, 32>}, {pipeline_mode = #tpu.pipeline_mode<synchronous>, transform_indices = @transform_6, window_bounds = array<i64: 1, 32>}, {pipeline_mode = #tpu.pipeline_mode<synchronous>, transform_indices = @transform_7, window_bounds = array<i64: 1, 32>}, {pipeline_mode = #tpu.pipeline_mode<synchronous>, transform_indices = @transform_8, window_bounds = array<i64: 32, 64>}, {pipeline_mode = #tpu.pipeline_mode<synchronous>, transform_indices = @transform_9, window_bounds = array<i64: 1, 64>}, {pipeline_mode = #tpu.pipeline_mode<synchronous>, transform_indices = @transform_10, window_bounds = array<i64: 64, 32>}, {pipeline_mode = #tpu.pipeline_mode<synchronous>, transform_indices = @transform_11, window_bounds = array<i64: 1, 32>}, {pipeline_mode = #tpu.pipeline_mode<synchronous>, transform_indices = @transform_12, window_bounds = array<i64: 1, 32>}, {pipeline_mode = #tpu.pipeline_mode<synchronous>, transform_indices = @transform_13, window_bounds = array<i64: 1, 32>}, {transform_indices = @transform_14, window_bounds = array<i64: 1, 9, 32>}]} {
    %c0 = arith.constant 0 : index
    %c0_0 = arith.constant 0 : index
    %c0_1 = arith.constant 0 : index
    %0 = vector.load %arg1[%c0, %c0_0, %c0_1] : memref<1x9x32xf32, #tpu.memory_space<vmem>>, vector<1x9x32xf32>
    %1 = vector.shape_cast %0 : vector<1x9x32xf32> to vector<9x32xf32>
    %c0_2 = arith.constant 0 : index
    %c0_3 = arith.constant 0 : index
    %c0_4 = arith.constant 0 : index
    %2 = vector.load %arg2[%c0_2, %c0_3, %c0_4] : memref<1x1x9xf32, #tpu.memory_space<vmem>>, vector<1x1x9xf32>
    %3 = vector.shape_cast %2 : vector<1x1x9xf32> to vector<1x9xf32>
    %c0_5 = arith.constant 0 : index
    %c0_6 = arith.constant 0 : index
    %4 = vector.load %arg3[%c0_5, %c0_6] : memref<32x96xf32, #tpu.memory_space<vmem>>, vector<32x96xf32>
    %cst = arith.constant dense<0.000000e+00> : vector<9x96xf32>
    %5 = tpu.matmul %1, %4, %cst {dimension_numbers = #tpu.dot_dimension_numbers<[1], [0], [0], [1], [0, 0, 1, 1], [], []>} : vector<9x32xf32>, vector<32x96xf32>, vector<9x96xf32> -> vector<9x96xf32>
    %c0_7 = arith.constant 0 : index
    %c0_8 = arith.constant 0 : index
    %6 = vector.load %arg4[%c0_7, %c0_8] : memref<1x96xf32, #tpu.memory_space<vmem>>, vector<1x96xf32>
    %7 = vector.broadcast %6 : vector<1x96xf32> to vector<9x96xf32>
    %8 = arith.addf %5, %7 : vector<9x96xf32>
    %9 = vector.extract_strided_slice %8 {offsets = [0, 0], sizes = [9, 32], strides = [1, 1]} : vector<9x96xf32> to vector<9x32xf32>
    %10 = vector.extract_strided_slice %8 {offsets = [0, 32], sizes = [9, 32], strides = [1, 1]} : vector<9x96xf32> to vector<9x32xf32>
    %11 = vector.extract_strided_slice %8 {offsets = [0, 64], sizes = [9, 32], strides = [1, 1]} : vector<9x96xf32> to vector<9x32xf32>
    %c0_9 = arith.constant 0 : index
    %c0_10 = arith.constant 0 : index
    %12 = vector.load %arg5[%c0_9, %c0_10] : memref<32x32xf32, #tpu.memory_space<vmem>>, vector<32x32xf32>
    %13 = vector.extract_strided_slice %9 {offsets = [0, 0], sizes = [9, 8], strides = [1, 1]} : vector<9x32xf32> to vector<9x8xf32>
    %cst_11 = arith.constant 0.353553385 : f32
    %14 = vector.broadcast %cst_11 : f32 to vector<9x8xf32>
    %15 = arith.mulf %13, %14 : vector<9x8xf32>
    %16 = vector.extract_strided_slice %10 {offsets = [0, 0], sizes = [9, 8], strides = [1, 1]} : vector<9x32xf32> to vector<9x8xf32>
    %17 = vector.extract_strided_slice %11 {offsets = [0, 0], sizes = [9, 8], strides = [1, 1]} : vector<9x32xf32> to vector<9x8xf32>
    %cst_12 = arith.constant dense<0.000000e+00> : vector<9x9xf32>
    %18 = tpu.matmul %15, %16, %cst_12 {dimension_numbers = #tpu.dot_dimension_numbers<[1], [1], [0], [0], [0, 0, 1, 0], [], []>} : vector<9x8xf32>, vector<9x8xf32>, vector<9x9xf32> -> vector<9x9xf32>
    %19 = vector.broadcast %3 : vector<1x9xf32> to vector<9x9xf32>
    %20 = arith.addf %18, %19 : vector<9x9xf32>
    %cst_13 = arith.constant dense<0xFF800000> : vector<9xf32>
    %21 = vector.multi_reduction <maximumf>, %20, %cst_13 [1] : vector<9x9xf32> to vector<9xf32>
    %22 = vector.shape_cast %21 : vector<9xf32> to vector<9x1xf32>
    %23 = vector.broadcast %22 : vector<9x1xf32> to vector<9x9xf32>
    %24 = arith.subf %20, %23 : vector<9x9xf32>
    %25 = math.exp %24 : vector<9x9xf32>
    %cst_14 = arith.constant dense<0.000000e+00> : vector<9xf32>
    %26 = vector.multi_reduction <add>, %25, %cst_14 [1] : vector<9x9xf32> to vector<9xf32>
    %27 = vector.shape_cast %26 : vector<9xf32> to vector<9x1xf32>
    %cst_15 = arith.constant 1.000000e+00 : f32
    %28 = vector.broadcast %cst_15 : f32 to vector<9x1xf32>
    %29 = arith.divf %28, %27 : vector<9x1xf32>
    %30 = vector.broadcast %29 : vector<9x1xf32> to vector<9x9xf32>
    %31 = arith.mulf %25, %30 : vector<9x9xf32>
    %cst_16 = arith.constant dense<0.000000e+00> : vector<9x8xf32>
    %32 = tpu.matmul %31, %17, %cst_16 {dimension_numbers = #tpu.dot_dimension_numbers<[1], [0], [0], [1], [0, 0, 1, 1], [], []>} : vector<9x9xf32>, vector<9x8xf32>, vector<9x8xf32> -> vector<9x8xf32>
    %33 = vector.extract_strided_slice %12 {offsets = [0, 0], sizes = [8, 32], strides = [1, 1]} : vector<32x32xf32> to vector<8x32xf32>
    %cst_17 = arith.constant dense<0.000000e+00> : vector<9x32xf32>
    %34 = tpu.matmul %32, %33, %cst_17 {dimension_numbers = #tpu.dot_dimension_numbers<[1], [0], [0], [1], [0, 0, 1, 1], [], []>} : vector<9x8xf32>, vector<8x32xf32>, vector<9x32xf32> -> vector<9x32xf32>
    %35 = vector.extract_strided_slice %9 {offsets = [0, 8], sizes = [9, 8], strides = [1, 1]} : vector<9x32xf32> to vector<9x8xf32>
    %cst_18 = arith.constant 0.353553385 : f32
    %36 = vector.broadcast %cst_18 : f32 to vector<9x8xf32>
    %37 = arith.mulf %35, %36 : vector<9x8xf32>
    %38 = vector.extract_strided_slice %10 {offsets = [0, 8], sizes = [9, 8], strides = [1, 1]} : vector<9x32xf32> to vector<9x8xf32>
    %39 = vector.extract_strided_slice %11 {offsets = [0, 8], sizes = [9, 8], strides = [1, 1]} : vector<9x32xf32> to vector<9x8xf32>
    %cst_19 = arith.constant dense<0.000000e+00> : vector<9x9xf32>
    %40 = tpu.matmul %37, %38, %cst_19 {dimension_numbers = #tpu.dot_dimension_numbers<[1], [1], [0], [0], [0, 0, 1, 0], [], []>} : vector<9x8xf32>, vector<9x8xf32>, vector<9x9xf32> -> vector<9x9xf32>
    %41 = vector.broadcast %3 : vector<1x9xf32> to vector<9x9xf32>
    %42 = arith.addf %40, %41 : vector<9x9xf32>
    %cst_20 = arith.constant dense<0xFF800000> : vector<9xf32>
    %43 = vector.multi_reduction <maximumf>, %42, %cst_20 [1] : vector<9x9xf32> to vector<9xf32>
    %44 = vector.shape_cast %43 : vector<9xf32> to vector<9x1xf32>
    %45 = vector.broadcast %44 : vector<9x1xf32> to vector<9x9xf32>
    %46 = arith.subf %42, %45 : vector<9x9xf32>
    %47 = math.exp %46 : vector<9x9xf32>
    %cst_21 = arith.constant dense<0.000000e+00> : vector<9xf32>
    %48 = vector.multi_reduction <add>, %47, %cst_21 [1] : vector<9x9xf32> to vector<9xf32>
    %49 = vector.shape_cast %48 : vector<9xf32> to vector<9x1xf32>
    %cst_22 = arith.constant 1.000000e+00 : f32
    %50 = vector.broadcast %cst_22 : f32 to vector<9x1xf32>
    %51 = arith.divf %50, %49 : vector<9x1xf32>
    %52 = vector.broadcast %51 : vector<9x1xf32> to vector<9x9xf32>
    %53 = arith.mulf %47, %52 : vector<9x9xf32>
    %cst_23 = arith.constant dense<0.000000e+00> : vector<9x8xf32>
    %54 = tpu.matmul %53, %39, %cst_23 {dimension_numbers = #tpu.dot_dimension_numbers<[1], [0], [0], [1], [0, 0, 1, 1], [], []>} : vector<9x9xf32>, vector<9x8xf32>, vector<9x8xf32> -> vector<9x8xf32>
    %55 = vector.extract_strided_slice %12 {offsets = [8, 0], sizes = [8, 32], strides = [1, 1]} : vector<32x32xf32> to vector<8x32xf32>
    %cst_24 = arith.constant dense<0.000000e+00> : vector<9x32xf32>
    %56 = tpu.matmul %54, %55, %cst_24 {dimension_numbers = #tpu.dot_dimension_numbers<[1], [0], [0], [1], [0, 0, 1, 1], [], []>} : vector<9x8xf32>, vector<8x32xf32>, vector<9x32xf32> -> vector<9x32xf32>
    %57 = arith.addf %34, %56 : vector<9x32xf32>
    %58 = vector.extract_strided_slice %9 {offsets = [0, 16], sizes = [9, 8], strides = [1, 1]} : vector<9x32xf32> to vector<9x8xf32>
    %cst_25 = arith.constant 0.353553385 : f32
    %59 = vector.broadcast %cst_25 : f32 to vector<9x8xf32>
    %60 = arith.mulf %58, %59 : vector<9x8xf32>
    %61 = vector.extract_strided_slice %10 {offsets = [0, 16], sizes = [9, 8], strides = [1, 1]} : vector<9x32xf32> to vector<9x8xf32>
    %62 = vector.extract_strided_slice %11 {offsets = [0, 16], sizes = [9, 8], strides = [1, 1]} : vector<9x32xf32> to vector<9x8xf32>
    %cst_26 = arith.constant dense<0.000000e+00> : vector<9x9xf32>
    %63 = tpu.matmul %60, %61, %cst_26 {dimension_numbers = #tpu.dot_dimension_numbers<[1], [1], [0], [0], [0, 0, 1, 0], [], []>} : vector<9x8xf32>, vector<9x8xf32>, vector<9x9xf32> -> vector<9x9xf32>
    %64 = vector.broadcast %3 : vector<1x9xf32> to vector<9x9xf32>
    %65 = arith.addf %63, %64 : vector<9x9xf32>
    %cst_27 = arith.constant dense<0xFF800000> : vector<9xf32>
    %66 = vector.multi_reduction <maximumf>, %65, %cst_27 [1] : vector<9x9xf32> to vector<9xf32>
    %67 = vector.shape_cast %66 : vector<9xf32> to vector<9x1xf32>
    %68 = vector.broadcast %67 : vector<9x1xf32> to vector<9x9xf32>
    %69 = arith.subf %65, %68 : vector<9x9xf32>
    %70 = math.exp %69 : vector<9x9xf32>
    %cst_28 = arith.constant dense<0.000000e+00> : vector<9xf32>
    %71 = vector.multi_reduction <add>, %70, %cst_28 [1] : vector<9x9xf32> to vector<9xf32>
    %72 = vector.shape_cast %71 : vector<9xf32> to vector<9x1xf32>
    %cst_29 = arith.constant 1.000000e+00 : f32
    %73 = vector.broadcast %cst_29 : f32 to vector<9x1xf32>
    %74 = arith.divf %73, %72 : vector<9x1xf32>
    %75 = vector.broadcast %74 : vector<9x1xf32> to vector<9x9xf32>
    %76 = arith.mulf %70, %75 : vector<9x9xf32>
    %cst_30 = arith.constant dense<0.000000e+00> : vector<9x8xf32>
    %77 = tpu.matmul %76, %62, %cst_30 {dimension_numbers = #tpu.dot_dimension_numbers<[1], [0], [0], [1], [0, 0, 1, 1], [], []>} : vector<9x9xf32>, vector<9x8xf32>, vector<9x8xf32> -> vector<9x8xf32>
    %78 = vector.extract_strided_slice %12 {offsets = [16, 0], sizes = [8, 32], strides = [1, 1]} : vector<32x32xf32> to vector<8x32xf32>
    %cst_31 = arith.constant dense<0.000000e+00> : vector<9x32xf32>
    %79 = tpu.matmul %77, %78, %cst_31 {dimension_numbers = #tpu.dot_dimension_numbers<[1], [0], [0], [1], [0, 0, 1, 1], [], []>} : vector<9x8xf32>, vector<8x32xf32>, vector<9x32xf32> -> vector<9x32xf32>
    %80 = arith.addf %57, %79 : vector<9x32xf32>
    %81 = vector.extract_strided_slice %9 {offsets = [0, 24], sizes = [9, 8], strides = [1, 1]} : vector<9x32xf32> to vector<9x8xf32>
    %cst_32 = arith.constant 0.353553385 : f32
    %82 = vector.broadcast %cst_32 : f32 to vector<9x8xf32>
    %83 = arith.mulf %81, %82 : vector<9x8xf32>
    %84 = vector.extract_strided_slice %10 {offsets = [0, 24], sizes = [9, 8], strides = [1, 1]} : vector<9x32xf32> to vector<9x8xf32>
    %85 = vector.extract_strided_slice %11 {offsets = [0, 24], sizes = [9, 8], strides = [1, 1]} : vector<9x32xf32> to vector<9x8xf32>
    %cst_33 = arith.constant dense<0.000000e+00> : vector<9x9xf32>
    %86 = tpu.matmul %83, %84, %cst_33 {dimension_numbers = #tpu.dot_dimension_numbers<[1], [1], [0], [0], [0, 0, 1, 0], [], []>} : vector<9x8xf32>, vector<9x8xf32>, vector<9x9xf32> -> vector<9x9xf32>
    %87 = vector.broadcast %3 : vector<1x9xf32> to vector<9x9xf32>
    %88 = arith.addf %86, %87 : vector<9x9xf32>
    %cst_34 = arith.constant dense<0xFF800000> : vector<9xf32>
    %89 = vector.multi_reduction <maximumf>, %88, %cst_34 [1] : vector<9x9xf32> to vector<9xf32>
    %90 = vector.shape_cast %89 : vector<9xf32> to vector<9x1xf32>
    %91 = vector.broadcast %90 : vector<9x1xf32> to vector<9x9xf32>
    %92 = arith.subf %88, %91 : vector<9x9xf32>
    %93 = math.exp %92 : vector<9x9xf32>
    %cst_35 = arith.constant dense<0.000000e+00> : vector<9xf32>
    %94 = vector.multi_reduction <add>, %93, %cst_35 [1] : vector<9x9xf32> to vector<9xf32>
    %95 = vector.shape_cast %94 : vector<9xf32> to vector<9x1xf32>
    %cst_36 = arith.constant 1.000000e+00 : f32
    %96 = vector.broadcast %cst_36 : f32 to vector<9x1xf32>
    %97 = arith.divf %96, %95 : vector<9x1xf32>
    %98 = vector.broadcast %97 : vector<9x1xf32> to vector<9x9xf32>
    %99 = arith.mulf %93, %98 : vector<9x9xf32>
    %cst_37 = arith.constant dense<0.000000e+00> : vector<9x8xf32>
    %100 = tpu.matmul %99, %85, %cst_37 {dimension_numbers = #tpu.dot_dimension_numbers<[1], [0], [0], [1], [0, 0, 1, 1], [], []>} : vector<9x9xf32>, vector<9x8xf32>, vector<9x8xf32> -> vector<9x8xf32>
    %101 = vector.extract_strided_slice %12 {offsets = [24, 0], sizes = [8, 32], strides = [1, 1]} : vector<32x32xf32> to vector<8x32xf32>
    %cst_38 = arith.constant dense<0.000000e+00> : vector<9x32xf32>
    %102 = tpu.matmul %100, %101, %cst_38 {dimension_numbers = #tpu.dot_dimension_numbers<[1], [0], [0], [1], [0, 0, 1, 1], [], []>} : vector<9x8xf32>, vector<8x32xf32>, vector<9x32xf32> -> vector<9x32xf32>
    %103 = arith.addf %80, %102 : vector<9x32xf32>
    %104 = arith.addf %1, %103 : vector<9x32xf32>
    %c0_39 = arith.constant 0 : index
    %c0_40 = arith.constant 0 : index
    %105 = vector.load %arg6[%c0_39, %c0_40] : memref<1x32xf32, #tpu.memory_space<vmem>>, vector<1x32xf32>
    %106 = vector.broadcast %105 : vector<1x32xf32> to vector<9x32xf32>
    %107 = arith.addf %104, %106 : vector<9x32xf32>
    %c0_41 = arith.constant 0 : index
    %c0_42 = arith.constant 0 : index
    %108 = vector.load %arg7[%c0_41, %c0_42] : memref<1x32xf32, #tpu.memory_space<vmem>>, vector<1x32xf32>
    %c0_43 = arith.constant 0 : index
    %c0_44 = arith.constant 0 : index
    %109 = vector.load %arg8[%c0_43, %c0_44] : memref<1x32xf32, #tpu.memory_space<vmem>>, vector<1x32xf32>
    %cst_45 = arith.constant dense<0.000000e+00> : vector<9xf32>
    %110 = vector.multi_reduction <add>, %107, %cst_45 [1] : vector<9x32xf32> to vector<9xf32>
    %111 = vector.shape_cast %110 : vector<9xf32> to vector<9x1xf32>
    %cst_46 = arith.constant 3.200000e+01 : f32
    %112 = vector.broadcast %cst_46 : f32 to vector<9x1xf32>
    %113 = arith.divf %111, %112 : vector<9x1xf32>
    %114 = vector.broadcast %113 : vector<9x1xf32> to vector<9x32xf32>
    %115 = arith.subf %107, %114 : vector<9x32xf32>
    %116 = arith.mulf %115, %115 : vector<9x32xf32>
    %cst_47 = arith.constant dense<0.000000e+00> : vector<9xf32>
    %117 = vector.multi_reduction <add>, %116, %cst_47 [1] : vector<9x32xf32> to vector<9xf32>
    %118 = vector.shape_cast %117 : vector<9xf32> to vector<9x1xf32>
    %cst_48 = arith.constant 3.200000e+01 : f32
    %119 = vector.broadcast %cst_48 : f32 to vector<9x1xf32>
    %120 = arith.divf %118, %119 : vector<9x1xf32>
    %121 = vector.broadcast %113 : vector<9x1xf32> to vector<9x32xf32>
    %122 = arith.subf %107, %121 : vector<9x32xf32>
    %cst_49 = arith.constant 9.99999974E-6 : f32
    %123 = vector.broadcast %cst_49 : f32 to vector<9x1xf32>
    %124 = arith.addf %120, %123 : vector<9x1xf32>
    %125 = math.rsqrt %124 : vector<9x1xf32>
    %126 = vector.broadcast %125 : vector<9x1xf32> to vector<9x32xf32>
    %127 = arith.mulf %122, %126 : vector<9x32xf32>
    %128 = vector.broadcast %108 : vector<1x32xf32> to vector<9x32xf32>
    %129 = arith.mulf %127, %128 : vector<9x32xf32>
    %130 = vector.broadcast %109 : vector<1x32xf32> to vector<9x32xf32>
    %131 = arith.addf %129, %130 : vector<9x32xf32>
    %c0_50 = arith.constant 0 : index
    %c0_51 = arith.constant 0 : index
    %132 = vector.load %arg9[%c0_50, %c0_51] : memref<32x64xf32, #tpu.memory_space<vmem>>, vector<32x64xf32>
    %cst_52 = arith.constant dense<0.000000e+00> : vector<9x64xf32>
    %133 = tpu.matmul %131, %132, %cst_52 {dimension_numbers = #tpu.dot_dimension_numbers<[1], [0], [0], [1], [0, 0, 1, 1], [], []>} : vector<9x32xf32>, vector<32x64xf32>, vector<9x64xf32> -> vector<9x64xf32>
    %c0_53 = arith.constant 0 : index
    %c0_54 = arith.constant 0 : index
    %134 = vector.load %arg10[%c0_53, %c0_54] : memref<1x64xf32, #tpu.memory_space<vmem>>, vector<1x64xf32>
    %135 = vector.broadcast %134 : vector<1x64xf32> to vector<9x64xf32>
    %136 = arith.addf %133, %135 : vector<9x64xf32>
    %cst_55 = arith.constant 0.000000e+00 : f32
    %137 = vector.broadcast %cst_55 : f32 to vector<9x64xf32>
    %138 = arith.maximumf %136, %137 : vector<9x64xf32>
    %c0_56 = arith.constant 0 : index
    %c0_57 = arith.constant 0 : index
    %139 = vector.load %arg11[%c0_56, %c0_57] : memref<64x32xf32, #tpu.memory_space<vmem>>, vector<64x32xf32>
    %cst_58 = arith.constant dense<0.000000e+00> : vector<9x32xf32>
    %140 = tpu.matmul %138, %139, %cst_58 {dimension_numbers = #tpu.dot_dimension_numbers<[1], [0], [0], [1], [0, 0, 1, 1], [], []>} : vector<9x64xf32>, vector<64x32xf32>, vector<9x32xf32> -> vector<9x32xf32>
    %c0_59 = arith.constant 0 : index
    %c0_60 = arith.constant 0 : index
    %141 = vector.load %arg12[%c0_59, %c0_60] : memref<1x32xf32, #tpu.memory_space<vmem>>, vector<1x32xf32>
    %142 = vector.broadcast %141 : vector<1x32xf32> to vector<9x32xf32>
    %143 = arith.addf %140, %142 : vector<9x32xf32>
    %144 = arith.addf %131, %143 : vector<9x32xf32>
    %c0_61 = arith.constant 0 : index
    %c0_62 = arith.constant 0 : index
    %145 = vector.load %arg13[%c0_61, %c0_62] : memref<1x32xf32, #tpu.memory_space<vmem>>, vector<1x32xf32>
    %c0_63 = arith.constant 0 : index
    %c0_64 = arith.constant 0 : index
    %146 = vector.load %arg14[%c0_63, %c0_64] : memref<1x32xf32, #tpu.memory_space<vmem>>, vector<1x32xf32>
    %cst_65 = arith.constant dense<0.000000e+00> : vector<9xf32>
    %147 = vector.multi_reduction <add>, %144, %cst_65 [1] : vector<9x32xf32> to vector<9xf32>
    %148 = vector.shape_cast %147 : vector<9xf32> to vector<9x1xf32>
    %cst_66 = arith.constant 3.200000e+01 : f32
    %149 = vector.broadcast %cst_66 : f32 to vector<9x1xf32>
    %150 = arith.divf %148, %149 : vector<9x1xf32>
    %151 = vector.broadcast %150 : vector<9x1xf32> to vector<9x32xf32>
    %152 = arith.subf %144, %151 : vector<9x32xf32>
    %153 = arith.mulf %152, %152 : vector<9x32xf32>
    %cst_67 = arith.constant dense<0.000000e+00> : vector<9xf32>
    %154 = vector.multi_reduction <add>, %153, %cst_67 [1] : vector<9x32xf32> to vector<9xf32>
    %155 = vector.shape_cast %154 : vector<9xf32> to vector<9x1xf32>
    %cst_68 = arith.constant 3.200000e+01 : f32
    %156 = vector.broadcast %cst_68 : f32 to vector<9x1xf32>
    %157 = arith.divf %155, %156 : vector<9x1xf32>
    %158 = vector.broadcast %150 : vector<9x1xf32> to vector<9x32xf32>
    %159 = arith.subf %144, %158 : vector<9x32xf32>
    %cst_69 = arith.constant 9.99999974E-6 : f32
    %160 = vector.broadcast %cst_69 : f32 to vector<9x1xf32>
    %161 = arith.addf %157, %160 : vector<9x1xf32>
    %162 = math.rsqrt %161 : vector<9x1xf32>
    %163 = vector.broadcast %162 : vector<9x1xf32> to vector<9x32xf32>
    %164 = arith.mulf %159, %163 : vector<9x32xf32>
    %165 = vector.broadcast %145 : vector<1x32xf32> to vector<9x32xf32>
    %166 = arith.mulf %164, %165 : vector<9x32xf32>
    %167 = vector.broadcast %146 : vector<1x32xf32> to vector<9x32xf32>
    %168 = arith.addf %166, %167 : vector<9x32xf32>
    %c0_70 = arith.constant 0 : index
    %c0_71 = arith.constant 0 : index
    %c0_72 = arith.constant 0 : index
    %169 = vector.load %arg15[%c0_70, %c0_71, %c0_72] : memref<1x9x32xf32, #tpu.memory_space<vmem>>, vector<1x9x32xf32>
    %170 = vector.shape_cast %169 : vector<1x9x32xf32> to vector<9x32xf32>
    %171 = vector.shape_cast %168 : vector<9x32xf32> to vector<1x9x32xf32>
    tpu.vector_store %arg15[%c0_70, %c0_71, %c0_72], %171 {strides = array<i32>} : memref<1x9x32xf32, #tpu.memory_space<vmem>>, vector<1x9x32xf32>,
    return
  }
  func.func @transform_0(%arg0: i32) -> (i32, i32, i32) {
    %c0_i32 = arith.constant 0 : i32
    %c0_i32_0 = arith.constant 0 : i32
    %c0_i32_1 = arith.constant 0 : i32
    return %arg0, %c0_i32, %c0_i32_0 : i32, i32, i32
  }
  func.func @transform_1(%arg0: i32) -> (i32, i32, i32) {
    %c0_i32 = arith.constant 0 : i32
    %c0_i32_0 = arith.constant 0 : i32
    %c0_i32_1 = arith.constant 0 : i32
    return %arg0, %c0_i32, %c0_i32_0 : i32, i32, i32
  }
  func.func @transform_2(%arg0: i32) -> (i32, i32) {
    %c0_i32 = arith.constant 0 : i32
    %c0_i32_0 = arith.constant 0 : i32
    %c0_i32_1 = arith.constant 0 : i32
    return %c0_i32, %c0_i32_0 : i32, i32
  }
  func.func @transform_3(%arg0: i32) -> (i32, i32) {
    %c0_i32 = arith.constant 0 : i32
    %c0_i32_0 = arith.constant 0 : i32
    %c0_i32_1 = arith.constant 0 : i32
    return %c0_i32, %c0_i32_0 : i32, i32
  }
  func.func @transform_4(%arg0: i32) -> (i32, i32) {
    %c0_i32 = arith.constant 0 : i32
    %c0_i32_0 = arith.constant 0 : i32
    %c0_i32_1 = arith.constant 0 : i32
    return %c0_i32, %c0_i32_0 : i32, i32
  }
  func.func @transform_5(%arg0: i32) -> (i32, i32) {
    %c0_i32 = arith.constant 0 : i32
    %c0_i32_0 = arith.constant 0 : i32
    %c0_i32_1 = arith.constant 0 : i32
    return %c0_i32, %c0_i32_0 : i32, i32
  }
  func.func @transform_6(%arg0: i32) -> (i32, i32) {
    %c0_i32 = arith.constant 0 : i32
    %c0_i32_0 = arith.constant 0 : i32
    %c0_i32_1 = arith.constant 0 : i32
    return %c0_i32, %c0_i32_0 : i32, i32
  }
  func.func @transform_7(%arg0: i32) -> (i32, i32) {
    %c0_i32 = arith.constant 0 : i32
    %c0_i32_0 = arith.constant 0 : i32
    %c0_i32_1 = arith.constant 0 : i32
    return %c0_i32, %c0_i32_0 : i32, i32
  }
  func.func @transform_8(%arg0: i32) -> (i32, i32) {
    %c0_i32 = arith.constant 0 : i32
    %c0_i32_0 = arith.constant 0 : i32
    %c0_i32_1 = arith.constant 0 : i32
    return %c0_i32, %c0_i32_0 : i32, i32
  }
  func.func @transform_9(%arg0: i32) -> (i32, i32) {
    %c0_i32 = arith.constant 0 : i32
    %c0_i32_0 = arith.constant 0 : i32
    %c0_i32_1 = arith.constant 0 : i32
    return %c0_i32, %c0_i32_0 : i32, i32
  }
  func.func @transform_10(%arg0: i32) -> (i32, i32) {
    %c0_i32 = arith.constant 0 : i32
    %c0_i32_0 = arith.constant 0 : i32
    %c0_i32_1 = arith.constant 0 : i32
    return %c0_i32, %c0_i32_0 : i32, i32
  }
  func.func @transform_11(%arg0: i32) -> (i32, i32) {
    %c0_i32 = arith.constant 0 : i32
    %c0_i32_0 = arith.constant 0 : i32
    %c0_i32_1 = arith.constant 0 : i32
    return %c0_i32, %c0_i32_0 : i32, i32
  }
  func.func @transform_12(%arg0: i32) -> (i32, i32) {
    %c0_i32 = arith.constant 0 : i32
    %c0_i32_0 = arith.constant 0 : i32
    %c0_i32_1 = arith.constant 0 : i32
    return %c0_i32, %c0_i32_0 : i32, i32
  }
  func.func @transform_13(%arg0: i32) -> (i32, i32) {
    %c0_i32 = arith.constant 0 : i32
    %c0_i32_0 = arith.constant 0 : i32
    %c0_i32_1 = arith.constant 0 : i32
    return %c0_i32, %c0_i32_0 : i32, i32
  }
  func.func @transform_14(%arg0: i32) -> (i32, i32, i32) {
    %c0_i32 = arith.constant 0 : i32
    %c0_i32_0 = arith.constant 0 : i32
    %c0_i32_1 = arith.constant 0 : i32
    return %arg0, %c0_i32, %c0_i32_0 : i32, i32, i32
  }
}

module attributes {stable_mosaic.version = 11 : i64} {
  func.func @linear_padded_kernel(%arg0: i32, %arg1: memref<16x32xf32, #tpu.memory_space<vmem>>, %arg2: memref<32x128xf32, #tpu.memory_space<vmem>>, %arg3: memref<1x128xf32, #tpu.memory_space<vmem>>, %arg4: memref<16x128xf32, #tpu.memory_space<vmem>>) attributes {dimension_semantics = [#tpu.dimension_semantics<arbitrary>], iteration_bounds = array<i64: 1>, scalar_prefetch = 0 : i64, scratch_operands = 0 : i64, tpu.core_type = #tpu.core_type<tc>, window_params = [{pipeline_mode = #tpu.pipeline_mode<synchronous>, transform_indices = @transform_0, window_bounds = array<i64: 16, 32>}, {pipeline_mode = #tpu.pipeline_mode<synchronous>, transform_indices = @transform_1, window_bounds = array<i64: 32, 128>}, {pipeline_mode = #tpu.pipeline_mode<synchronous>, transform_indices = @transform_2, window_bounds = array<i64: 1, 128>}, {pipeline_mode = #tpu.pipeline_mode<synchronous>, transform_indices = @transform_3, window_bounds = array<i64: 16, 128>}]} {
    %c0 = arith.constant 0 : index
    %c0_0 = arith.constant 0 : index
    %0 = vector.load %arg1[%c0, %c0_0] : memref<16x32xf32, #tpu.memory_space<vmem>>, vector<16x32xf32>
    %c0_1 = arith.constant 0 : index
    %c0_2 = arith.constant 0 : index
    %1 = vector.load %arg2[%c0_1, %c0_2] : memref<32x128xf32, #tpu.memory_space<vmem>>, vector<32x128xf32>
    %cst = arith.constant dense<0.000000e+00> : vector<16x128xf32>
    %2 = tpu.matmul %0, %1, %cst {dimension_numbers = #tpu.dot_dimension_numbers<[1], [0], [0], [1], [0, 0, 1, 1], [], []>} : vector<16x32xf32>, vector<32x128xf32>, vector<16x128xf32> -> vector<16x128xf32>
    %c0_3 = arith.constant 0 : index
    %c0_4 = arith.constant 0 : index
    %3 = vector.load %arg3[%c0_3, %c0_4] : memref<1x128xf32, #tpu.memory_space<vmem>>, vector<1x128xf32>
    %4 = vector.broadcast %3 : vector<1x128xf32> to vector<16x128xf32>
    %5 = arith.addf %2, %4 : vector<16x128xf32>
    %c0_5 = arith.constant 0 : index
    %c0_6 = arith.constant 0 : index
    %6 = vector.load %arg4[%c0_5, %c0_6] : memref<16x128xf32, #tpu.memory_space<vmem>>, vector<16x128xf32>
    tpu.vector_store %arg4[%c0_5, %c0_6], %5 {strides = array<i32>} : memref<16x128xf32, #tpu.memory_space<vmem>>, vector<16x128xf32>,
    return
  }
  func.func @transform_0(%arg0: i32) -> (i32, i32) {
    %c0_i32 = arith.constant 0 : i32
    %c0_i32_0 = arith.constant 0 : i32
    %c0_i32_1 = arith.constant 0 : i32
    return %c0_i32, %c0_i32_0 : i32, i32
  }
  func.func @transform_1(%arg0: i32) -> (i32, i32) {
    %c0_i32 = arith.constant 0 : i32
    %c0_i32_0 = arith.constant 0 : i32
    %c0_i32_1 = arith.constant 0 : i32
    return %c0_i32, %c0_i32_0 : i32, i32
  }
  func.func @transform_2(%arg0: i32) -> (i32, i32) {
    %c0_i32 = arith.constant 0 : i32
    %c0_i32_0 = arith.constant 0 : i32
    %c0_i32_1 = arith.constant 0 : i32
    return %c0_i32, %c0_i32_0 : i32, i32
  }
  func.func @transform_3(%arg0: i32) -> (i32, i32) {
    %c0_i32 = arith.constant 0 : i32
    %c0_i32_0 = arith.constant 0 : i32
    %c0_i32_1 = arith.constant 0 : i32
    return %c0_i32, %c0_i32_0 : i32, i32
  }
}

module attributes {stable_mosaic.version = 11 : i64} {
  func.func @decoder_layer_kernel(%arg0: i32, %arg1: memref<1x8x32xf32, #tpu.memory_space<vmem>>, %arg2: memref<1x9x32xf32, #tpu.memory_space<vmem>>, %arg3: memref<1x8x8xf32, #tpu.memory_space<vmem>>, %arg4: memref<1x1x9xf32, #tpu.memory_space<vmem>>, %arg5: memref<32x96xf32, #tpu.memory_space<vmem>>, %arg6: memref<1x96xf32, #tpu.memory_space<vmem>>, %arg7: memref<32x32xf32, #tpu.memory_space<vmem>>, %arg8: memref<1x32xf32, #tpu.memory_space<vmem>>, %arg9: memref<1x32xf32, #tpu.memory_space<vmem>>, %arg10: memref<1x32xf32, #tpu.memory_space<vmem>>, %arg11: memref<32x32xf32, #tpu.memory_space<vmem>>, %arg12: memref<1x32xf32, #tpu.memory_space<vmem>>, %arg13: memref<32x64xf32, #tpu.memory_space<vmem>>, %arg14: memref<1x64xf32, #tpu.memory_space<vmem>>, %arg15: memref<32x32xf32, #tpu.memory_space<vmem>>, %arg16: memref<1x32xf32, #tpu.memory_space<vmem>>, %arg17: memref<1x32xf32, #tpu.memory_space<vmem>>, %arg18: memref<1x32xf32, #tpu.memory_space<vmem>>, %arg19: memref<32x64xf32, #tpu.memory_space<vmem>>, %arg20: memref<1x64xf32, #tpu.memory_space<vmem>>, %arg21: memref<64x32xf32, #tpu.memory_space<vmem>>, %arg22: memref<1x32xf32, #tpu.memory_space<vmem>>, %arg23: memref<1x32xf32, #tpu.memory_space<vmem>>, %arg24: memref<1x32xf32, #tpu.memory_space<vmem>>, %arg25: memref<1x8x32xf32, #tpu.memory_space<vmem>>) attributes {dimension_semantics = [#tpu.dimension_semantics<parallel>], iteration_bounds = array<i64: 2>, scalar_prefetch = 0 : i64, scratch_operands = 0 : i64, tpu.core_type = #tpu.core_type<tc>, window_params = [{transform_indices = @transform_0, window_bounds = array<i64: 1, 8, 32>}, {transform_indices = @transform_1, window_bounds = array<i64: 1, 9, 32>}, {transform_indices = @transform_2, window_bounds = array<i64: 1, 8, 8>}, {transform_indices = @transform_3, window_bounds = array<i64: 1, 1, 9>}, {pipeline_mode = #tpu.pipeline_mode<synchronous>, transform_indices = @transform_4, window_bounds = array<i64: 32, 96>}, {pipeline_mode = #tpu.pipeline_mode<synchronous>, transform_indices = @transform_5, window_bounds = array<i64: 1, 96>}, {pipeline_mode = #tpu.pipeline_mode<synchronous>, transform_indices = @transform_6, window_bounds = array<i64: 32, 32>}, {pipeline_mode = #tpu.pipeline_mode<synchronous>, transform_indices = @transform_7, window_bounds = array<i64: 1, 32>}, {pipeline_mode = #tpu.pipeline_mode<synchronous>, transform_indices = @transform_8, window_bounds = array<i64: 1, 32>}, {pipeline_mode = #tpu.pipeline_mode<synchronous>, transform_indices = @transform_9, window_bounds = array<i64: 1, 32>}, {pipeline_mode = #tpu.pipeline_mode<synchronous>, transform_indices = @transform_10, window_bounds = array<i64: 32, 32>}, {pipeline_mode = #tpu.pipeline_mode<synchronous>, transform_indices = @transform_11, window_bounds = array<i64: 1, 32>}, {pipeline_mode = #tpu.pipeline_mode<synchronous>, transform_indices = @transform_12, window_bounds = array<i64: 32, 64>}, {pipeline_mode = #tpu.pipeline_mode<synchronous>, transform_indices = @transform_13, window_bounds = array<i64: 1, 64>}, {pipeline_mode = #tpu.pipeline_mode<synchronous>, transform_indices = @transform_14, window_bounds = array<i64: 32, 32>}, {pipeline_mode = #tpu.pipeline_mode<synchronous>, transform_indices = @transform_15, window_bounds = array<i64: 1, 32>}, {pipeline_mode = #tpu.pipeline_mode<synchronous>, transform_indices = @transform_16, window_bounds = array<i64: 1, 32>}, {pipeline_mode = #tpu.pipeline_mode<synchronous>, transform_indices = @transform_17, window_bounds = array<i64: 1, 32>}, {pipeline_mode = #tpu.pipeline_mode<synchronous>, transform_indices = @transform_18, window_bounds = array<i64: 32, 64>}, {pipeline_mode = #tpu.pipeline_mode<synchronous>, transform_indices = @transform_19, window_bounds = array<i64: 1, 64>}, {pipeline_mode = #tpu.pipeline_mode<synchronous>, transform_indices = @transform_20, window_bounds = array<i64: 64, 32>}, {pipeline_mode = #tpu.pipeline_mode<synchronous>, transform_indices = @transform_21, window_bounds = array<i64: 1, 32>}, {pipeline_mode = #tpu.pipeline_mode<synchronous>, transform_indices = @transform_22, window_bounds = array<i64: 1, 32>}, {pipeline_mode = #tpu.pipeline_mode<synchronous>, transform_indices = @transform_23, window_bounds = array<i64: 1, 32>}, {transform_indices = @transform_24, window_bounds = array<i64: 1, 8, 32>}]} {
    %c0 = arith.constant 0 : index
    %c0_0 = arith.constant 0 : index
    %c0_1 = arith.constant 0 : index
    %0 = vector.load %arg1[%c0, %c0_0, %c0_1] : memref<1x8x32xf32, #tpu.memory_space<vmem>>, vector<1x8x32xf32>
    %1 = vector.shape_cast %0 : vector<1x8x32xf32> to vector<8x32xf32>
    %c0_2 = arith.constant 0 : index
    %c0_3 = arith.constant 0 : index
    %c0_4 = arith.constant 0 : index
    %2 = vector.load %arg2[%c0_2, %c0_3, %c0_4] : memref<1x9x32xf32, #tpu.memory_space<vmem>>, vector<1x9x32xf32>
    %3 = vector.shape_cast %2 : vector<1x9x32xf32> to vector<9x32xf32>
    %c0_5 = arith.constant 0 : index
    %c0_6 = arith.constant 0 : index
    %c0_7 = arith.constant 0 : index
    %4 = vector.load %arg3[%c0_5, %c0_6, %c0_7] : memref<1x8x8xf32, #tpu.memory_space<vmem>>, vector<1x8x8xf32>
    %5 = vector.shape_cast %4 : vector<1x8x8xf32> to vector<8x8xf32>
    %c0_8 = arith.constant 0 : index
    %c0_9 = arith.constant 0 : index
    %c0_10 = arith.constant 0 : index
    %6 = vector.load %arg4[%c0_8, %c0_9, %c0_10] : memref<1x1x9xf32, #tpu.memory_space<vmem>>, vector<1x1x9xf32>
    %7 = vector.shape_cast %6 : vector<1x1x9xf32> to vector<1x9xf32>
    %c0_11 = arith.constant 0 : index
    %c0_12 = arith.constant 0 : index
    %8 = vector.load %arg5[%c0_11, %c0_12] : memref<32x96xf32, #tpu.memory_space<vmem>>, vector<32x96xf32>
    %cst = arith.constant dense<0.000000e+00> : vector<8x96xf32>
    %9 = tpu.matmul %1, %8, %cst {dimension_numbers = #tpu.dot_dimension_numbers<[1], [0], [0], [1], [0, 0, 1, 1], [], []>} : vector<8x32xf32>, vector<32x96xf32>, vector<8x96xf32> -> vector<8x96xf32>
    %c0_13 = arith.constant 0 : index
    %c0_14 = arith.constant 0 : index
    %10 = vector.load %arg6[%c0_13, %c0_14] : memref<1x96xf32, #tpu.memory_space<vmem>>, vector<1x96xf32>
    %11 = vector.broadcast %10 : vector<1x96xf32> to vector<8x96xf32>
    %12 = arith.addf %9, %11 : vector<8x96xf32>
    %13 = vector.extract_strided_slice %12 {offsets = [0, 0], sizes = [8, 32], strides = [1, 1]} : vector<8x96xf32> to vector<8x32xf32>
    %14 = vector.extract_strided_slice %12 {offsets = [0, 32], sizes = [8, 32], strides = [1, 1]} : vector<8x96xf32> to vector<8x32xf32>
    %15 = vector.extract_strided_slice %12 {offsets = [0, 64], sizes = [8, 32], strides = [1, 1]} : vector<8x96xf32> to vector<8x32xf32>
    %c0_15 = arith.constant 0 : index
    %c0_16 = arith.constant 0 : index
    %16 = vector.load %arg7[%c0_15, %c0_16] : memref<32x32xf32, #tpu.memory_space<vmem>>, vector<32x32xf32>
    %17 = vector.extract_strided_slice %13 {offsets = [0, 0], sizes = [8, 8], strides = [1, 1]} : vector<8x32xf32> to vector<8x8xf32>
    %cst_17 = arith.constant 0.353553385 : f32
    %18 = vector.broadcast %cst_17 : f32 to vector<8x8xf32>
    %19 = arith.mulf %17, %18 : vector<8x8xf32>
    %20 = vector.extract_strided_slice %14 {offsets = [0, 0], sizes = [8, 8], strides = [1, 1]} : vector<8x32xf32> to vector<8x8xf32>
    %21 = vector.extract_strided_slice %15 {offsets = [0, 0], sizes = [8, 8], strides = [1, 1]} : vector<8x32xf32> to vector<8x8xf32>
    %cst_18 = arith.constant dense<0.000000e+00> : vector<8x8xf32>
    %22 = tpu.matmul %19, %20, %cst_18 {dimension_numbers = #tpu.dot_dimension_numbers<[1], [1], [0], [0], [0, 0, 1, 0], [], []>} : vector<8x8xf32>, vector<8x8xf32>, vector<8x8xf32> -> vector<8x8xf32>
    %23 = arith.addf %22, %5 : vector<8x8xf32>
    %cst_19 = arith.constant dense<0xFF800000> : vector<8xf32>
    %24 = vector.multi_reduction <maximumf>, %23, %cst_19 [1] : vector<8x8xf32> to vector<8xf32>
    %25 = vector.shape_cast %24 : vector<8xf32> to vector<8x1xf32>
    %26 = vector.broadcast %25 : vector<8x1xf32> to vector<8x8xf32>
    %27 = arith.subf %23, %26 : vector<8x8xf32>
    %28 = math.exp %27 : vector<8x8xf32>
    %cst_20 = arith.constant dense<0.000000e+00> : vector<8xf32>
    %29 = vector.multi_reduction <add>, %28, %cst_20 [1] : vector<8x8xf32> to vector<8xf32>
    %30 = vector.shape_cast %29 : vector<8xf32> to vector<8x1xf32>
    %cst_21 = arith.constant 1.000000e+00 : f32
    %31 = vector.broadcast %cst_21 : f32 to vector<8x1xf32>
    %32 = arith.divf %31, %30 : vector<8x1xf32>
    %33 = vector.broadcast %32 : vector<8x1xf32> to vector<8x8xf32>
    %34 = arith.mulf %28, %33 : vector<8x8xf32>
    %cst_22 = arith.constant dense<0.000000e+00> : vector<8x8xf32>
    %35 = tpu.matmul %34, %21, %cst_22 {dimension_numbers = #tpu.dot_dimension_numbers<[1], [0], [0], [1], [0, 0, 1, 1], [], []>} : vector<8x8xf32>, vector<8x8xf32>, vector<8x8xf32> -> vector<8x8xf32>
    %36 = vector.extract_strided_slice %16 {offsets = [0, 0], sizes = [8, 32], strides = [1, 1]} : vector<32x32xf32> to vector<8x32xf32>
    %cst_23 = arith.constant dense<0.000000e+00> : vector<8x32xf32>
    %37 = tpu.matmul %35, %36, %cst_23 {dimension_numbers = #tpu.dot_dimension_numbers<[1], [0], [0], [1], [0, 0, 1, 1], [], []>} : vector<8x8xf32>, vector<8x32xf32>, vector<8x32xf32> -> vector<8x32xf32>
    %38 = vector.extract_strided_slice %13 {offsets = [0, 8], sizes = [8, 8], strides = [1, 1]} : vector<8x32xf32> to vector<8x8xf32>
    %cst_24 = arith.constant 0.353553385 : f32
    %39 = vector.broadcast %cst_24 : f32 to vector<8x8xf32>
    %40 = arith.mulf %38, %39 : vector<8x8xf32>
    %41 = vector.extract_strided_slice %14 {offsets = [0, 8], sizes = [8, 8], strides = [1, 1]} : vector<8x32xf32> to vector<8x8xf32>
    %42 = vector.extract_strided_slice %15 {offsets = [0, 8], sizes = [8, 8], strides = [1, 1]} : vector<8x32xf32> to vector<8x8xf32>
    %cst_25 = arith.constant dense<0.000000e+00> : vector<8x8xf32>
    %43 = tpu.matmul %40, %41, %cst_25 {dimension_numbers = #tpu.dot_dimension_numbers<[1], [1], [0], [0], [0, 0, 1, 0], [], []>} : vector<8x8xf32>, vector<8x8xf32>, vector<8x8xf32> -> vector<8x8xf32>
    %44 = arith.addf %43, %5 : vector<8x8xf32>
    %cst_26 = arith.constant dense<0xFF800000> : vector<8xf32>
    %45 = vector.multi_reduction <maximumf>, %44, %cst_26 [1] : vector<8x8xf32> to vector<8xf32>
    %46 = vector.shape_cast %45 : vector<8xf32> to vector<8x1xf32>
    %47 = vector.broadcast %46 : vector<8x1xf32> to vector<8x8xf32>
    %48 = arith.subf %44, %47 : vector<8x8xf32>
    %49 = math.exp %48 : vector<8x8xf32>
    %cst_27 = arith.constant dense<0.000000e+00> : vector<8xf32>
    %50 = vector.multi_reduction <add>, %49, %cst_27 [1] : vector<8x8xf32> to vector<8xf32>
    %51 = vector.shape_cast %50 : vector<8xf32> to vector<8x1xf32>
    %cst_28 = arith.constant 1.000000e+00 : f32
    %52 = vector.broadcast %cst_28 : f32 to vector<8x1xf32>
    %53 = arith.divf %52, %51 : vector<8x1xf32>
    %54 = vector.broadcast %53 : vector<8x1xf32> to vector<8x8xf32>
    %55 = arith.mulf %49, %54 : vector<8x8xf32>
    %cst_29 = arith.constant dense<0.000000e+00> : vector<8x8xf32>
    %56 = tpu.matmul %55, %42, %cst_29 {dimension_numbers = #tpu.dot_dimension_numbers<[1], [0], [0], [1], [0, 0, 1, 1], [], []>} : vector<8x8xf32>, vector<8x8xf32>, vector<8x8xf32> -> vector<8x8xf32>
    %57 = vector.extract_strided_slice %16 {offsets = [8, 0], sizes = [8, 32], strides = [1, 1]} : vector<32x32xf32> to vector<8x32xf32>
    %cst_30 = arith.constant dense<0.000000e+00> : vector<8x32xf32>
    %58 = tpu.matmul %56, %57, %cst_30 {dimension_numbers = #tpu.dot_dimension_numbers<[1], [0], [0], [1], [0, 0, 1, 1], [], []>} : vector<8x8xf32>, vector<8x32xf32>, vector<8x32xf32> -> vector<8x32xf32>
    %59 = arith.addf %37, %58 : vector<8x32xf32>
    %60 = vector.extract_strided_slice %13 {offsets = [0, 16], sizes = [8, 8], strides = [1, 1]} : vector<8x32xf32> to vector<8x8xf32>
    %cst_31 = arith.constant 0.353553385 : f32
    %61 = vector.broadcast %cst_31 : f32 to vector<8x8xf32>
    %62 = arith.mulf %60, %61 : vector<8x8xf32>
    %63 = vector.extract_strided_slice %14 {offsets = [0, 16], sizes = [8, 8], strides = [1, 1]} : vector<8x32xf32> to vector<8x8xf32>
    %64 = vector.extract_strided_slice %15 {offsets = [0, 16], sizes = [8, 8], strides = [1, 1]} : vector<8x32xf32> to vector<8x8xf32>
    %cst_32 = arith.constant dense<0.000000e+00> : vector<8x8xf32>
    %65 = tpu.matmul %62, %63, %cst_32 {dimension_numbers = #tpu.dot_dimension_numbers<[1], [1], [0], [0], [0, 0, 1, 0], [], []>} : vector<8x8xf32>, vector<8x8xf32>, vector<8x8xf32> -> vector<8x8xf32>
    %66 = arith.addf %65, %5 : vector<8x8xf32>
    %cst_33 = arith.constant dense<0xFF800000> : vector<8xf32>
    %67 = vector.multi_reduction <maximumf>, %66, %cst_33 [1] : vector<8x8xf32> to vector<8xf32>
    %68 = vector.shape_cast %67 : vector<8xf32> to vector<8x1xf32>
    %69 = vector.broadcast %68 : vector<8x1xf32> to vector<8x8xf32>
    %70 = arith.subf %66, %69 : vector<8x8xf32>
    %71 = math.exp %70 : vector<8x8xf32>
    %cst_34 = arith.constant dense<0.000000e+00> : vector<8xf32>
    %72 = vector.multi_reduction <add>, %71, %cst_34 [1] : vector<8x8xf32> to vector<8xf32>
    %73 = vector.shape_cast %72 : vector<8xf32> to vector<8x1xf32>
    %cst_35 = arith.constant 1.000000e+00 : f32
    %74 = vector.broadcast %cst_35 : f32 to vector<8x1xf32>
    %75 = arith.divf %74, %73 : vector<8x1xf32>
    %76 = vector.broadcast %75 : vector<8x1xf32> to vector<8x8xf32>
    %77 = arith.mulf %71, %76 : vector<8x8xf32>
    %cst_36 = arith.constant dense<0.000000e+00> : vector<8x8xf32>
    %78 = tpu.matmul %77, %64, %cst_36 {dimension_numbers = #tpu.dot_dimension_numbers<[1], [0], [0], [1], [0, 0, 1, 1], [], []>} : vector<8x8xf32>, vector<8x8xf32>, vector<8x8xf32> -> vector<8x8xf32>
    %79 = vector.extract_strided_slice %16 {offsets = [16, 0], sizes = [8, 32], strides = [1, 1]} : vector<32x32xf32> to vector<8x32xf32>
    %cst_37 = arith.constant dense<0.000000e+00> : vector<8x32xf32>
    %80 = tpu.matmul %78, %79, %cst_37 {dimension_numbers = #tpu.dot_dimension_numbers<[1], [0], [0], [1], [0, 0, 1, 1], [], []>} : vector<8x8xf32>, vector<8x32xf32>, vector<8x32xf32> -> vector<8x32xf32>
    %81 = arith.addf %59, %80 : vector<8x32xf32>
    %82 = vector.extract_strided_slice %13 {offsets = [0, 24], sizes = [8, 8], strides = [1, 1]} : vector<8x32xf32> to vector<8x8xf32>
    %cst_38 = arith.constant 0.353553385 : f32
    %83 = vector.broadcast %cst_38 : f32 to vector<8x8xf32>
    %84 = arith.mulf %82, %83 : vector<8x8xf32>
    %85 = vector.extract_strided_slice %14 {offsets = [0, 24], sizes = [8, 8], strides = [1, 1]} : vector<8x32xf32> to vector<8x8xf32>
    %86 = vector.extract_strided_slice %15 {offsets = [0, 24], sizes = [8, 8], strides = [1, 1]} : vector<8x32xf32> to vector<8x8xf32>
    %cst_39 = arith.constant dense<0.000000e+00> : vector<8x8xf32>
    %87 = tpu.matmul %84, %85, %cst_39 {dimension_numbers = #tpu.dot_dimension_numbers<[1], [1], [0], [0], [0, 0, 1, 0], [], []>} : vector<8x8xf32>, vector<8x8xf32>, vector<8x8xf32> -> vector<8x8xf32>
    %88 = arith.addf %87, %5 : vector<8x8xf32>
    %cst_40 = arith.constant dense<0xFF800000> : vector<8xf32>
    %89 = vector.multi_reduction <maximumf>, %88, %cst_40 [1] : vector<8x8xf32> to vector<8xf32>
    %90 = vector.shape_cast %89 : vector<8xf32> to vector<8x1xf32>
    %91 = vector.broadcast %90 : vector<8x1xf32> to vector<8x8xf32>
    %92 = arith.subf %88, %91 : vector<8x8xf32>
    %93 = math.exp %92 : vector<8x8xf32>
    %cst_41 = arith.constant dense<0.000000e+00> : vector<8xf32>
    %94 = vector.multi_reduction <add>, %93, %cst_41 [1] : vector<8x8xf32> to vector<8xf32>
    %95 = vector.shape_cast %94 : vector<8xf32> to vector<8x1xf32>
    %cst_42 = arith.constant 1.000000e+00 : f32
    %96 = vector.broadcast %cst_42 : f32 to vector<8x1xf32>
    %97 = arith.divf %96, %95 : vector<8x1xf32>
    %98 = vector.broadcast %97 : vector<8x1xf32> to vector<8x8xf32>
    %99 = arith.mulf %93, %98 : vector<8x8xf32>
    %cst_43 = arith.constant dense<0.000000e+00> : vector<8x8xf32>
    %100 = tpu.matmul %99, %86, %cst_43 {dimension_numbers = #tpu.dot_dimension_numbers<[1], [0], [0], [1], [0, 0, 1, 1], [], []>} : vector<8x8xf32>, vector<8x8xf32>, vector<8x8xf32> -> vector<8x8xf32>
    %101 = vector.extract_strided_slice %16 {offsets = [24, 0], sizes = [8, 32], strides = [1, 1]} : vector<32x32xf32> to vector<8x32xf32>
    %cst_44 = arith.constant dense<0.000000e+00> : vector<8x32xf32>
    %102 = tpu.matmul %100, %101, %cst_44 {dimension_numbers = #tpu.dot_dimension_numbers<[1], [0], [0], [1], [0, 0, 1, 1], [], []>} : vector<8x8xf32>, vector<8x32xf32>, vector<8x32xf32> -> vector<8x32xf32>
    %103 = arith.addf %81, %102 : vector<8x32xf32>
    %104 = arith.addf %1, %103 : vector<8x32xf32>
    %c0_45 = arith.constant 0 : index
    %c0_46 = arith.constant 0 : index
    %105 = vector.load %arg8[%c0_45, %c0_46] : memref<1x32xf32, #tpu.memory_space<vmem>>, vector<1x32xf32>
    %106 = vector.broadcast %105 : vector<1x32xf32> to vector<8x32xf32>
    %107 = arith.addf %104, %106 : vector<8x32xf32>
    %c0_47 = arith.constant 0 : index
    %c0_48 = arith.constant 0 : index
    %108 = vector.load %arg9[%c0_47, %c0_48] : memref<1x32xf32, #tpu.memory_space<vmem>>, vector<1x32xf32>
    %c0_49 = arith.constant 0 : index
    %c0_50 = arith.constant 0 : index
    %109 = vector.load %arg10[%c0_49, %c0_50] : memref<1x32xf32, #tpu.memory_space<vmem>>, vector<1x32xf32>
    %cst_51 = arith.constant dense<0.000000e+00> : vector<8xf32>
    %110 = vector.multi_reduction <add>, %107, %cst_51 [1] : vector<8x32xf32> to vector<8xf32>
    %111 = vector.shape_cast %110 : vector<8xf32> to vector<8x1xf32>
    %cst_52 = arith.constant 3.200000e+01 : f32
    %112 = vector.broadcast %cst_52 : f32 to vector<8x1xf32>
    %113 = arith.divf %111, %112 : vector<8x1xf32>
    %114 = vector.broadcast %113 : vector<8x1xf32> to vector<8x32xf32>
    %115 = arith.subf %107, %114 : vector<8x32xf32>
    %116 = arith.mulf %115, %115 : vector<8x32xf32>
    %cst_53 = arith.constant dense<0.000000e+00> : vector<8xf32>
    %117 = vector.multi_reduction <add>, %116, %cst_53 [1] : vector<8x32xf32> to vector<8xf32>
    %118 = vector.shape_cast %117 : vector<8xf32> to vector<8x1xf32>
    %cst_54 = arith.constant 3.200000e+01 : f32
    %119 = vector.broadcast %cst_54 : f32 to vector<8x1xf32>
    %120 = arith.divf %118, %119 : vector<8x1xf32>
    %121 = vector.broadcast %113 : vector<8x1xf32> to vector<8x32xf32>
    %122 = arith.subf %107, %121 : vector<8x32xf32>
    %cst_55 = arith.constant 9.99999974E-6 : f32
    %123 = vector.broadcast %cst_55 : f32 to vector<8x1xf32>
    %124 = arith.addf %120, %123 : vector<8x1xf32>
    %125 = math.rsqrt %124 : vector<8x1xf32>
    %126 = vector.broadcast %125 : vector<8x1xf32> to vector<8x32xf32>
    %127 = arith.mulf %122, %126 : vector<8x32xf32>
    %128 = vector.broadcast %108 : vector<1x32xf32> to vector<8x32xf32>
    %129 = arith.mulf %127, %128 : vector<8x32xf32>
    %130 = vector.broadcast %109 : vector<1x32xf32> to vector<8x32xf32>
    %131 = arith.addf %129, %130 : vector<8x32xf32>
    %c0_56 = arith.constant 0 : index
    %c0_57 = arith.constant 0 : index
    %132 = vector.load %arg11[%c0_56, %c0_57] : memref<32x32xf32, #tpu.memory_space<vmem>>, vector<32x32xf32>
    %cst_58 = arith.constant dense<0.000000e+00> : vector<8x32xf32>
    %133 = tpu.matmul %131, %132, %cst_58 {dimension_numbers = #tpu.dot_dimension_numbers<[1], [0], [0], [1], [0, 0, 1, 1], [], []>} : vector<8x32xf32>, vector<32x32xf32>, vector<8x32xf32> -> vector<8x32xf32>
    %c0_59 = arith.constant 0 : index
    %c0_60 = arith.constant 0 : index
    %134 = vector.load %arg12[%c0_59, %c0_60] : memref<1x32xf32, #tpu.memory_space<vmem>>, vector<1x32xf32>
    %135 = vector.broadcast %134 : vector<1x32xf32> to vector<8x32xf32>
    %136 = arith.addf %133, %135 : vector<8x32xf32>
    %c0_61 = arith.constant 0 : index
    %c0_62 = arith.constant 0 : index
    %137 = vector.load %arg13[%c0_61, %c0_62] : memref<32x64xf32, #tpu.memory_space<vmem>>, vector<32x64xf32>
    %cst_63 = arith.constant dense<0.000000e+00> : vector<9x64xf32>
    %138 = tpu.matmul %3, %137, %cst_63 {dimension_numbers = #tpu.dot_dimension_numbers<[1], [0], [0], [1], [0, 0, 1, 1], [], []>} : vector<9x32xf32>, vector<32x64xf32>, vector<9x64xf32> -> vector<9x64xf32>
    %c0_64 = arith.constant 0 : index
    %c0_65 = arith.constant 0 : index
    %139 = vector.load %arg14[%c0_64, %c0_65] : memref<1x64xf32, #tpu.memory_space<vmem>>, vector<1x64xf32>
    %140 = vector.broadcast %139 : vector<1x64xf32> to vector<9x64xf32>
    %141 = arith.addf %138, %140 : vector<9x64xf32>
    %142 = vector.extract_strided_slice %141 {offsets = [0, 0], sizes = [9, 32], strides = [1, 1]} : vector<9x64xf32> to vector<9x32xf32>
    %143 = vector.extract_strided_slice %141 {offsets = [0, 32], sizes = [9, 32], strides = [1, 1]} : vector<9x64xf32> to vector<9x32xf32>
    %c0_66 = arith.constant 0 : index
    %c0_67 = arith.constant 0 : index
    %144 = vector.load %arg15[%c0_66, %c0_67] : memref<32x32xf32, #tpu.memory_space<vmem>>, vector<32x32xf32>
    %145 = vector.extract_strided_slice %136 {offsets = [0, 0], sizes = [8, 8], strides = [1, 1]} : vector<8x32xf32> to vector<8x8xf32>
    %cst_68 = arith.constant 0.353553385 : f32
    %146 = vector.broadcast %cst_68 : f32 to vector<8x8xf32>
    %147 = arith.mulf %145, %146 : vector<8x8xf32>
    %148 = vector.extract_strided_slice %142 {offsets = [0, 0], sizes = [9, 8], strides = [1, 1]} : vector<9x32xf32> to vector<9x8xf32>
    %149 = vector.extract_strided_slice %143 {offsets = [0, 0], sizes = [9, 8], strides = [1, 1]} : vector<9x32xf32> to vector<9x8xf32>
    %cst_69 = arith.constant dense<0.000000e+00> : vector<8x9xf32>
    %150 = tpu.matmul %147, %148, %cst_69 {dimension_numbers = #tpu.dot_dimension_numbers<[1], [1], [0], [0], [0, 0, 1, 0], [], []>} : vector<8x8xf32>, vector<9x8xf32>, vector<8x9xf32> -> vector<8x9xf32>
    %151 = vector.broadcast %7 : vector<1x9xf32> to vector<8x9xf32>
    %152 = arith.addf %150, %151 : vector<8x9xf32>
    %cst_70 = arith.constant dense<0xFF800000> : vector<8xf32>
    %153 = vector.multi_reduction <maximumf>, %152, %cst_70 [1] : vector<8x9xf32> to vector<8xf32>
    %154 = vector.shape_cast %153 : vector<8xf32> to vector<8x1xf32>
    %155 = vector.broadcast %154 : vector<8x1xf32> to vector<8x9xf32>
    %156 = arith.subf %152, %155 : vector<8x9xf32>
    %157 = math.exp %156 : vector<8x9xf32>
    %cst_71 = arith.constant dense<0.000000e+00> : vector<8xf32>
    %158 = vector.multi_reduction <add>, %157, %cst_71 [1] : vector<8x9xf32> to vector<8xf32>
    %159 = vector.shape_cast %158 : vector<8xf32> to vector<8x1xf32>
    %cst_72 = arith.constant 1.000000e+00 : f32
    %160 = vector.broadcast %cst_72 : f32 to vector<8x1xf32>
    %161 = arith.divf %160, %159 : vector<8x1xf32>
    %162 = vector.broadcast %161 : vector<8x1xf32> to vector<8x9xf32>
    %163 = arith.mulf %157, %162 : vector<8x9xf32>
    %cst_73 = arith.constant dense<0.000000e+00> : vector<8x8xf32>
    %164 = tpu.matmul %163, %149, %cst_73 {dimension_numbers = #tpu.dot_dimension_numbers<[1], [0], [0], [1], [0, 0, 1, 1], [], []>} : vector<8x9xf32>, vector<9x8xf32>, vector<8x8xf32> -> vector<8x8xf32>
    %165 = vector.extract_strided_slice %144 {offsets = [0, 0], sizes = [8, 32], strides = [1, 1]} : vector<32x32xf32> to vector<8x32xf32>
    %cst_74 = arith.constant dense<0.000000e+00> : vector<8x32xf32>
    %166 = tpu.matmul %164, %165, %cst_74 {dimension_numbers = #tpu.dot_dimension_numbers<[1], [0], [0], [1], [0, 0, 1, 1], [], []>} : vector<8x8xf32>, vector<8x32xf32>, vector<8x32xf32> -> vector<8x32xf32>
    %167 = vector.extract_strided_slice %136 {offsets = [0, 8], sizes = [8, 8], strides = [1, 1]} : vector<8x32xf32> to vector<8x8xf32>
    %cst_75 = arith.constant 0.353553385 : f32
    %168 = vector.broadcast %cst_75 : f32 to vector<8x8xf32>
    %169 = arith.mulf %167, %168 : vector<8x8xf32>
    %170 = vector.extract_strided_slice %142 {offsets = [0, 8], sizes = [9, 8], strides = [1, 1]} : vector<9x32xf32> to vector<9x8xf32>
    %171 = vector.extract_strided_slice %143 {offsets = [0, 8], sizes = [9, 8], strides = [1, 1]} : vector<9x32xf32> to vector<9x8xf32>
    %cst_76 = arith.constant dense<0.000000e+00> : vector<8x9xf32>
    %172 = tpu.matmul %169, %170, %cst_76 {dimension_numbers = #tpu.dot_dimension_numbers<[1], [1], [0], [0], [0, 0, 1, 0], [], []>} : vector<8x8xf32>, vector<9x8xf32>, vector<8x9xf32> -> vector<8x9xf32>
    %173 = vector.broadcast %7 : vector<1x9xf32> to vector<8x9xf32>
    %174 = arith.addf %172, %173 : vector<8x9xf32>
    %cst_77 = arith.constant dense<0xFF800000> : vector<8xf32>
    %175 = vector.multi_reduction <maximumf>, %174, %cst_77 [1] : vector<8x9xf32> to vector<8xf32>
    %176 = vector.shape_cast %175 : vector<8xf32> to vector<8x1xf32>
    %177 = vector.broadcast %176 : vector<8x1xf32> to vector<8x9xf32>
    %178 = arith.subf %174, %177 : vector<8x9xf32>
    %179 = math.exp %178 : vector<8x9xf32>
    %cst_78 = arith.constant dense<0.000000e+00> : vector<8xf32>
    %180 = vector.multi_reduction <add>, %179, %cst_78 [1] : vector<8x9xf32> to vector<8xf32>
    %181 = vector.shape_cast %180 : vector<8xf32> to vector<8x1xf32>
    %cst_79 = arith.constant 1.000000e+00 : f32
    %182 = vector.broadcast %cst_79 : f32 to vector<8x1xf32>
    %183 = arith.divf %182, %181 : vector<8x1xf32>
    %184 = vector.broadcast %183 : vector<8x1xf32> to vector<8x9xf32>
    %185 = arith.mulf %179, %184 : vector<8x9xf32>
    %cst_80 = arith.constant dense<0.000000e+00> : vector<8x8xf32>
    %186 = tpu.matmul %185, %171, %cst_80 {dimension_numbers = #tpu.dot_dimension_numbers<[1], [0], [0], [1], [0, 0, 1, 1], [], []>} : vector<8x9xf32>, vector<9x8xf32>, vector<8x8xf32> -> vector<8x8xf32>
    %187 = vector.extract_strided_slice %144 {offsets = [8, 0], sizes = [8, 32], strides = [1, 1]} : vector<32x32xf32> to vector<8x32xf32>
    %cst_81 = arith.constant dense<0.000000e+00> : vector<8x32xf32>
    %188 = tpu.matmul %186, %187, %cst_81 {dimension_numbers = #tpu.dot_dimension_numbers<[1], [0], [0], [1], [0, 0, 1, 1], [], []>} : vector<8x8xf32>, vector<8x32xf32>, vector<8x32xf32> -> vector<8x32xf32>
    %189 = arith.addf %166, %188 : vector<8x32xf32>
    %190 = vector.extract_strided_slice %136 {offsets = [0, 16], sizes = [8, 8], strides = [1, 1]} : vector<8x32xf32> to vector<8x8xf32>
    %cst_82 = arith.constant 0.353553385 : f32
    %191 = vector.broadcast %cst_82 : f32 to vector<8x8xf32>
    %192 = arith.mulf %190, %191 : vector<8x8xf32>
    %193 = vector.extract_strided_slice %142 {offsets = [0, 16], sizes = [9, 8], strides = [1, 1]} : vector<9x32xf32> to vector<9x8xf32>
    %194 = vector.extract_strided_slice %143 {offsets = [0, 16], sizes = [9, 8], strides = [1, 1]} : vector<9x32xf32> to vector<9x8xf32>
    %cst_83 = arith.constant dense<0.000000e+00> : vector<8x9xf32>
    %195 = tpu.matmul %192, %193, %cst_83 {dimension_numbers = #tpu.dot_dimension_numbers<[1], [1], [0], [0], [0, 0, 1, 0], [], []>} : vector<8x8xf32>, vector<9x8xf32>, vector<8x9xf32> -> vector<8x9xf32>
    %196 = vector.broadcast %7 : vector<1x9xf32> to vector<8x9xf32>
    %197 = arith.addf %195, %196 : vector<8x9xf32>
    %cst_84 = arith.constant dense<0xFF800000> : vector<8xf32>
    %198 = vector.multi_reduction <maximumf>, %197, %cst_84 [1] : vector<8x9xf32> to vector<8xf32>
    %199 = vector.shape_cast %198 : vector<8xf32> to vector<8x1xf32>
    %200 = vector.broadcast %199 : vector<8x1xf32> to vector<8x9xf32>
    %201 = arith.subf %197, %200 : vector<8x9xf32>
    %202 = math.exp %201 : vector<8x9xf32>
    %cst_85 = arith.constant dense<0.000000e+00> : vector<8xf32>
    %203 = vector.multi_reduction <add>, %202, %cst_85 [1] : vector<8x9xf32> to vector<8xf32>
    %204 = vector.shape_cast %203 : vector<8xf32> to vector<8x1xf32>
    %cst_86 = arith.constant 1.000000e+00 : f32
    %205 = vector.broadcast %cst_86 : f32 to vector<8x1xf32>
    %206 = arith.divf %205, %204 : vector<8x1xf32>
    %207 = vector.broadcast %206 : vector<8x1xf32> to vector<8x9xf32>
    %208 = arith.mulf %202, %207 : vector<8x9xf32>
    %cst_87 = arith.constant dense<0.000000e+00> : vector<8x8xf32>
    %209 = tpu.matmul %208, %194, %cst_87 {dimension_numbers = #tpu.dot_dimension_numbers<[1], [0], [0], [1], [0, 0, 1, 1], [], []>} : vector<8x9xf32>, vector<9x8xf32>, vector<8x8xf32> -> vector<8x8xf32>
    %210 = vector.extract_strided_slice %144 {offsets = [16, 0], sizes = [8, 32], strides = [1, 1]} : vector<32x32xf32> to vector<8x32xf32>
    %cst_88 = arith.constant dense<0.000000e+00> : vector<8x32xf32>
    %211 = tpu.matmul %209, %210, %cst_88 {dimension_numbers = #tpu.dot_dimension_numbers<[1], [0], [0], [1], [0, 0, 1, 1], [], []>} : vector<8x8xf32>, vector<8x32xf32>, vector<8x32xf32> -> vector<8x32xf32>
    %212 = arith.addf %189, %211 : vector<8x32xf32>
    %213 = vector.extract_strided_slice %136 {offsets = [0, 24], sizes = [8, 8], strides = [1, 1]} : vector<8x32xf32> to vector<8x8xf32>
    %cst_89 = arith.constant 0.353553385 : f32
    %214 = vector.broadcast %cst_89 : f32 to vector<8x8xf32>
    %215 = arith.mulf %213, %214 : vector<8x8xf32>
    %216 = vector.extract_strided_slice %142 {offsets = [0, 24], sizes = [9, 8], strides = [1, 1]} : vector<9x32xf32> to vector<9x8xf32>
    %217 = vector.extract_strided_slice %143 {offsets = [0, 24], sizes = [9, 8], strides = [1, 1]} : vector<9x32xf32> to vector<9x8xf32>
    %cst_90 = arith.constant dense<0.000000e+00> : vector<8x9xf32>
    %218 = tpu.matmul %215, %216, %cst_90 {dimension_numbers = #tpu.dot_dimension_numbers<[1], [1], [0], [0], [0, 0, 1, 0], [], []>} : vector<8x8xf32>, vector<9x8xf32>, vector<8x9xf32> -> vector<8x9xf32>
    %219 = vector.broadcast %7 : vector<1x9xf32> to vector<8x9xf32>
    %220 = arith.addf %218, %219 : vector<8x9xf32>
    %cst_91 = arith.constant dense<0xFF800000> : vector<8xf32>
    %221 = vector.multi_reduction <maximumf>, %220, %cst_91 [1] : vector<8x9xf32> to vector<8xf32>
    %222 = vector.shape_cast %221 : vector<8xf32> to vector<8x1xf32>
    %223 = vector.broadcast %222 : vector<8x1xf32> to vector<8x9xf32>
    %224 = arith.subf %220, %223 : vector<8x9xf32>
    %225 = math.exp %224 : vector<8x9xf32>
    %cst_92 = arith.constant dense<0.000000e+00> : vector<8xf32>
    %226 = vector.multi_reduction <add>, %225, %cst_92 [1] : vector<8x9xf32> to vector<8xf32>
    %227 = vector.shape_cast %226 : vector<8xf32> to vector<8x1xf32>
    %cst_93 = arith.constant 1.000000e+00 : f32
    %228 = vector.broadcast %cst_93 : f32 to vector<8x1xf32>
    %229 = arith.divf %228, %227 : vector<8x1xf32>
    %230 = vector.broadcast %229 : vector<8x1xf32> to vector<8x9xf32>
    %231 = arith.mulf %225, %230 : vector<8x9xf32>
    %cst_94 = arith.constant dense<0.000000e+00> : vector<8x8xf32>
    %232 = tpu.matmul %231, %217, %cst_94 {dimension_numbers = #tpu.dot_dimension_numbers<[1], [0], [0], [1], [0, 0, 1, 1], [], []>} : vector<8x9xf32>, vector<9x8xf32>, vector<8x8xf32> -> vector<8x8xf32>
    %233 = vector.extract_strided_slice %144 {offsets = [24, 0], sizes = [8, 32], strides = [1, 1]} : vector<32x32xf32> to vector<8x32xf32>
    %cst_95 = arith.constant dense<0.000000e+00> : vector<8x32xf32>
    %234 = tpu.matmul %232, %233, %cst_95 {dimension_numbers = #tpu.dot_dimension_numbers<[1], [0], [0], [1], [0, 0, 1, 1], [], []>} : vector<8x8xf32>, vector<8x32xf32>, vector<8x32xf32> -> vector<8x32xf32>
    %235 = arith.addf %212, %234 : vector<8x32xf32>
    %236 = arith.addf %131, %235 : vector<8x32xf32>
    %c0_96 = arith.constant 0 : index
    %c0_97 = arith.constant 0 : index
    %237 = vector.load %arg16[%c0_96, %c0_97] : memref<1x32xf32, #tpu.memory_space<vmem>>, vector<1x32xf32>
    %238 = vector.broadcast %237 : vector<1x32xf32> to vector<8x32xf32>
    %239 = arith.addf %236, %238 : vector<8x32xf32>
    %c0_98 = arith.constant 0 : index
    %c0_99 = arith.constant 0 : index
    %240 = vector.load %arg17[%c0_98, %c0_99] : memref<1x32xf32, #tpu.memory_space<vmem>>, vector<1x32xf32>
    %c0_100 = arith.constant 0 : index
    %c0_101 = arith.constant 0 : index
    %241 = vector.load %arg18[%c0_100, %c0_101] : memref<1x32xf32, #tpu.memory_space<vmem>>, vector<1x32xf32>
    %cst_102 = arith.constant dense<0.000000e+00> : vector<8xf32>
    %242 = vector.multi_reduction <add>, %239, %cst_102 [1] : vector<8x32xf32> to vector<8xf32>
    %243 = vector.shape_cast %242 : vector<8xf32> to vector<8x1xf32>
    %cst_103 = arith.constant 3.200000e+01 : f32
    %244 = vector.broadcast %cst_103 : f32 to vector<8x1xf32>
    %245 = arith.divf %243, %244 : vector<8x1xf32>
    %246 = vector.broadcast %245 : vector<8x1xf32> to vector<8x32xf32>
    %247 = arith.subf %239, %246 : vector<8x32xf32>
    %248 = arith.mulf %247, %247 : vector<8x32xf32>
    %cst_104 = arith.constant dense<0.000000e+00> : vector<8xf32>
    %249 = vector.multi_reduction <add>, %248, %cst_104 [1] : vector<8x32xf32> to vector<8xf32>
    %250 = vector.shape_cast %249 : vector<8xf32> to vector<8x1xf32>
    %cst_105 = arith.constant 3.200000e+01 : f32
    %251 = vector.broadcast %cst_105 : f32 to vector<8x1xf32>
    %252 = arith.divf %250, %251 : vector<8x1xf32>
    %253 = vector.broadcast %245 : vector<8x1xf32> to vector<8x32xf32>
    %254 = arith.subf %239, %253 : vector<8x32xf32>
    %cst_106 = arith.constant 9.99999974E-6 : f32
    %255 = vector.broadcast %cst_106 : f32 to vector<8x1xf32>
    %256 = arith.addf %252, %255 : vector<8x1xf32>
    %257 = math.rsqrt %256 : vector<8x1xf32>
    %258 = vector.broadcast %257 : vector<8x1xf32> to vector<8x32xf32>
    %259 = arith.mulf %254, %258 : vector<8x32xf32>
    %260 = vector.broadcast %240 : vector<1x32xf32> to vector<8x32xf32>
    %261 = arith.mulf %259, %260 : vector<8x32xf32>
    %262 = vector.broadcast %241 : vector<1x32xf32> to vector<8x32xf32>
    %263 = arith.addf %261, %262 : vector<8x32xf32>
    %c0_107 = arith.constant 0 : index
    %c0_108 = arith.constant 0 : index
    %264 = vector.load %arg19[%c0_107, %c0_108] : memref<32x64xf32, #tpu.memory_space<vmem>>, vector<32x64xf32>
    %cst_109 = arith.constant dense<0.000000e+00> : vector<8x64xf32>
    %265 = tpu.matmul %263, %264, %cst_109 {dimension_numbers = #tpu.dot_dimension_numbers<[1], [0], [0], [1], [0, 0, 1, 1], [], []>} : vector<8x32xf32>, vector<32x64xf32>, vector<8x64xf32> -> vector<8x64xf32>
    %c0_110 = arith.constant 0 : index
    %c0_111 = arith.constant 0 : index
    %266 = vector.load %arg20[%c0_110, %c0_111] : memref<1x64xf32, #tpu.memory_space<vmem>>, vector<1x64xf32>
    %267 = vector.broadcast %266 : vector<1x64xf32> to vector<8x64xf32>
    %268 = arith.addf %265, %267 : vector<8x64xf32>
    %cst_112 = arith.constant 0.000000e+00 : f32
    %269 = vector.broadcast %cst_112 : f32 to vector<8x64xf32>
    %270 = arith.maximumf %268, %269 : vector<8x64xf32>
    %c0_113 = arith.constant 0 : index
    %c0_114 = arith.constant 0 : index
    %271 = vector.load %arg21[%c0_113, %c0_114] : memref<64x32xf32, #tpu.memory_space<vmem>>, vector<64x32xf32>
    %cst_115 = arith.constant dense<0.000000e+00> : vector<8x32xf32>
    %272 = tpu.matmul %270, %271, %cst_115 {dimension_numbers = #tpu.dot_dimension_numbers<[1], [0], [0], [1], [0, 0, 1, 1], [], []>} : vector<8x64xf32>, vector<64x32xf32>, vector<8x32xf32> -> vector<8x32xf32>
    %c0_116 = arith.constant 0 : index
    %c0_117 = arith.constant 0 : index
    %273 = vector.load %arg22[%c0_116, %c0_117] : memref<1x32xf32, #tpu.memory_space<vmem>>, vector<1x32xf32>
    %274 = vector.broadcast %273 : vector<1x32xf32> to vector<8x32xf32>
    %275 = arith.addf %272, %274 : vector<8x32xf32>
    %276 = arith.addf %263, %275 : vector<8x32xf32>
    %c0_118 = arith.constant 0 : index
    %c0_119 = arith.constant 0 : index
    %277 = vector.load %arg23[%c0_118, %c0_119] : memref<1x32xf32, #tpu.memory_space<vmem>>, vector<1x32xf32>
    %c0_120 = arith.constant 0 : index
    %c0_121 = arith.constant 0 : index
    %278 = vector.load %arg24[%c0_120, %c0_121] : memref<1x32xf32, #tpu.memory_space<vmem>>, vector<1x32xf32>
    %cst_122 = arith.constant dense<0.000000e+00> : vector<8xf32>
    %279 = vector.multi_reduction <add>, %276, %cst_122 [1] : vector<8x32xf32> to vector<8xf32>
    %280 = vector.shape_cast %279 : vector<8xf32> to vector<8x1xf32>
    %cst_123 = arith.constant 3.200000e+01 : f32
    %281 = vector.broadcast %cst_123 : f32 to vector<8x1xf32>
    %282 = arith.divf %280, %281 : vector<8x1xf32>
    %283 = vector.broadcast %282 : vector<8x1xf32> to vector<8x32xf32>
    %284 = arith.subf %276, %283 : vector<8x32xf32>
    %285 = arith.mulf %284, %284 : vector<8x32xf32>
    %cst_124 = arith.constant dense<0.000000e+00> : vector<8xf32>
    %286 = vector.multi_reduction <add>, %285, %cst_124 [1] : vector<8x32xf32> to vector<8xf32>
    %287 = vector.shape_cast %286 : vector<8xf32> to vector<8x1xf32>
    %cst_125 = arith.constant 3.200000e+01 : f32
    %288 = vector.broadcast %cst_125 : f32 to vector<8x1xf32>
    %289 = arith.divf %287, %288 : vector<8x1xf32>
    %290 = vector.broadcast %282 : vector<8x1xf32> to vector<8x32xf32>
    %291 = arith.subf %276, %290 : vector<8x32xf32>
    %cst_126 = arith.constant 9.99999974E-6 : f32
    %292 = vector.broadcast %cst_126 : f32 to vector<8x1xf32>
    %293 = arith.addf %289, %292 : vector<8x1xf32>
    %294 = math.rsqrt %293 : vector<8x1xf32>
    %295 = vector.broadcast %294 : vector<8x1xf32> to vector<8x32xf32>
    %296 = arith.mulf %291, %295 : vector<8x32xf32>
    %297 = vector.broadcast %277 : vector<1x32xf32> to vector<8x32xf32>
    %298 = arith.mulf %296, %297 : vector<8x32xf32>
    %299 = vector.broadcast %278 : vector<1x32xf32> to vector<8x32xf32>
    %300 = arith.addf %298, %299 : vector<8x32xf32>
    %c0_127 = arith.constant 0 : index
    %c0_128 = arith.constant 0 : index
    %c0_129 = arith.constant 0 : index
    %301 = vector.load %arg25[%c0_127, %c0_128, %c0_129] : memref<1x8x32xf32, #tpu.memory_space<vmem>>, vector<1x8x32xf32>
    %302 = vector.shape_cast %301 : vector<1x8x32xf32> to vector<8x32xf32>
    %303 = vector.shape_cast %300 : vector<8x32xf32> to vector<1x8x32xf32>
    tpu.vector_store %arg25[%c0_127, %c0_128, %c0_129], %303 {strides = array<i32>} : memref<1x8x32xf32, #tpu.memory_space<vmem>>, vector<1x8x32xf32>,
    return
  }
  func.func @transform_0(%arg0: i32) -> (i32, i32, i32) {
    %c0_i32 = arith.constant 0 : i32
    %c0_i32_0 = arith.constant 0 : i32
    %c0_i32_1 = arith.constant 0 : i32
    return %arg0, %c0_i32, %c0_i32_0 : i32, i32, i32
  }
  func.func @transform_1(%arg0: i32) -> (i32, i32, i32) {
    %c0_i32 = arith.constant 0 : i32
    %c0_i32_0 = arith.constant 0 : i32
    %c0_i32_1 = arith.constant 0 : i32
    return %arg0, %c0_i32, %c0_i32_0 : i32, i32, i32
  }
  func.func @transform_2(%arg0: i32) -> (i32, i32, i32) {
    %c0_i32 = arith.constant 0 : i32
    %c0_i32_0 = arith.constant 0 : i32
    %c0_i32_1 = arith.constant 0 : i32
    return %arg0, %c0_i32, %c0_i32_0 : i32, i32, i32
  }
  func.func @transform_3(%arg0: i32) -> (i32, i32, i32) {
    %c0_i32 = arith.constant 0 : i32
    %c0_i32_0 = arith.constant 0 : i32
    %c0_i32_1 = arith.constant 0 : i32
    return %arg0, %c0_i32, %c0_i32_0 : i32, i32, i32
  }
  func.func @transform_4(%arg0: i32) -> (i32, i32) {
    %c0_i32 = arith.constant 0 : i32
    %c0_i32_0 = arith.constant 0 : i32
    %c0_i32_1 = arith.constant 0 : i32
    return %c0_i32, %c0_i32_0 : i32, i32
  }
  func.func @transform_5(%arg0: i32) -> (i32, i32) {
    %c0_i32 = arith.constant 0 : i32
    %c0_i32_0 = arith.constant 0 : i32
    %c0_i32_1 = arith.constant 0 : i32
    return %c0_i32, %c0_i32_0 : i32, i32
  }
  func.func @transform_6(%arg0: i32) -> (i32, i32) {
    %c0_i32 = arith.constant 0 : i32
    %c0_i32_0 = arith.constant 0 : i32
    %c0_i32_1 = arith.constant 0 : i32
    return %c0_i32, %c0_i32_0 : i32, i32
  }
  func.func @transform_7(%arg0: i32) -> (i32, i32) {
    %c0_i32 = arith.constant 0 : i32
    %c0_i32_0 = arith.constant 0 : i32
    %c0_i32_1 = arith.constant 0 : i32
    return %c0_i32, %c0_i32_0 : i32, i32
  }
  func.func @transform_8(%arg0: i32) -> (i32, i32) {
    %c0_i32 = arith.constant 0 : i32
    %c0_i32_0 = arith.constant 0 : i32
    %c0_i32_1 = arith.constant 0 : i32
    return %c0_i32, %c0_i32_0 : i32, i32
  }
  func.func @transform_9(%arg0: i32) -> (i32, i32) {
    %c0_i32 = arith.constant 0 : i32
    %c0_i32_0 = arith.constant 0 : i32
    %c0_i32_1 = arith.constant 0 : i32
    return %c0_i32, %c0_i32_0 : i32, i32
  }
  func.func @transform_10(%arg0: i32) -> (i32, i32) {
    %c0_i32 = arith.constant 0 : i32
    %c0_i32_0 = arith.constant 0 : i32
    %c0_i32_1 = arith.constant 0 : i32
    return %c0_i32, %c0_i32_0 : i32, i32
  }
  func.func @transform_11(%arg0: i32) -> (i32, i32) {
    %c0_i32 = arith.constant 0 : i32
    %c0_i32_0 = arith.constant 0 : i32
    %c0_i32_1 = arith.constant 0 : i32
    return %c0_i32, %c0_i32_0 : i32, i32
  }
  func.func @transform_12(%arg0: i32) -> (i32, i32) {
    %c0_i32 = arith.constant 0 : i32
    %c0_i32_0 = arith.constant 0 : i32
    %c0_i32_1 = arith.constant 0 : i32
    return %c0_i32, %c0_i32_0 : i32, i32
  }
  func.func @transform_13(%arg0: i32) -> (i32, i32) {
    %c0_i32 = arith.constant 0 : i32
    %c0_i32_0 = arith.constant 0 : i32
    %c0_i32_1 = arith.constant 0 : i32
    return %c0_i32, %c0_i32_0 : i32, i32
  }
  func.func @transform_14(%arg0: i32) -> (i32, i32) {
    %c0_i32 = arith.constant 0 : i32
    %c0_i32_0 = arith.constant 0 : i32
    %c0_i32_1 = arith.constant 0 : i32
    return %c0_i32, %c0_i32_0 : i32, i32
  }
  func.func @transform_15(%arg0: i32) -> (i32, i32) {
    %c0_i32 = arith.constant 0 : i32
    %c0_i32_0 = arith.constant 0 : i32
    %c0_i32_1 = arith.constant 0 : i32
    return %c0_i32, %c0_i32_0 : i32, i32
  }
  func.func @transform_16(%arg0: i32) -> (i32, i32) {
    %c0_i32 = arith.constant 0 : i32
    %c0_i32_0 = arith.constant 0 : i32
    %c0_i32_1 = arith.constant 0 : i32
    return %c0_i32, %c0_i32_0 : i32, i32
  }
  func.func @transform_17(%arg0: i32) -> (i32, i32) {
    %c0_i32 = arith.constant 0 : i32
    %c0_i32_0 = arith.constant 0 : i32
    %c0_i32_1 = arith.constant 0 : i32
    return %c0_i32, %c0_i32_0 : i32, i32
  }
  func.func @transform_18(%arg0: i32) -> (i32, i32) {
    %c0_i32 = arith.constant 0 : i32
    %c0_i32_0 = arith.constant 0 : i32
    %c0_i32_1 = arith.constant 0 : i32
    return %c0_i32, %c0_i32_0 : i32, i32
  }
  func.func @transform_19(%arg0: i32) -> (i32, i32) {
    %c0_i32 = arith.constant 0 : i32
    %c0_i32_0 = arith.constant 0 : i32
    %c0_i32_1 = arith.constant 0 : i32
    return %c0_i32, %c0_i32_0 : i32, i32
  }
  func.func @transform_20(%arg0: i32) -> (i32, i32) {
    %c0_i32 = arith.constant 0 : i32
    %c0_i32_0 = arith.constant 0 : i32
    %c0_i32_1 = arith.constant 0 : i32
    return %c0_i32, %c0_i32_0 : i32, i32
  }
  func.func @transform_21(%arg0: i32) -> (i32, i32) {
    %c0_i32 = arith.constant 0 : i32
    %c0_i32_0 = arith.constant 0 : i32
    %c0_i32_1 = arith.constant 0 : i32
    return %c0_i32, %c0_i32_0 : i32, i32
  }
  func.func @transform_22(%arg0: i32) -> (i32, i32) {
    %c0_i32 = arith.constant 0 : i32
    %c0_i32_0 = arith.constant 0 : i32
    %c0_i32_1 = arith.constant 0 : i32
    return %c0_i32, %c0_i32_0 : i32, i32
  }
  func.func @transform_23(%arg0: i32) -> (i32, i32) {
    %c0_i32 = arith.constant 0 : i32
    %c0_i32_0 = arith.constant 0 : i32
    %c0_i32_1 = arith.constant 0 : i32
    return %c0_i32, %c0_i32_0 : i32, i32
  }
  func.func @transform_24(%arg0: i32) -> (i32, i32, i32) {
    %c0_i32 = arith.constant 0 : i32
    %c0_i32_0 = arith.constant 0 : i32
    %c0_i32_1 = arith.constant 0 : i32
    return %arg0, %c0_i32, %c0_i32_0 : i32, i32, i32
  }
}

module attributes {stable_mosaic.version = 11 : i64} {
  func.func @decoder_layer_kernel(%arg0: i32, %arg1: memref<1x8x32xf32, #tpu.memory_space<vmem>>, %arg2: memref<1x9x32xf32, #tpu.memory_space<vmem>>, %arg3: memref<1x8x8xf32, #tpu.memory_space<vmem>>, %arg4: memref<1x1x9xf32, #tpu.memory_space<vmem>>, %arg5: memref<32x96xf32, #tpu.memory_space<vmem>>, %arg6: memref<1x96xf32, #tpu.memory_space<vmem>>, %arg7: memref<32x32xf32, #tpu.memory_space<vmem>>, %arg8: memref<1x32xf32, #tpu.memory_space<vmem>>, %arg9: memref<1x32xf32, #tpu.memory_space<vmem>>, %arg10: memref<1x32xf32, #tpu.memory_space<vmem>>, %arg11: memref<32x32xf32, #tpu.memory_space<vmem>>, %arg12: memref<1x32xf32, #tpu.memory_space<vmem>>, %arg13: memref<32x64xf32, #tpu.memory_space<vmem>>, %arg14: memref<1x64xf32, #tpu.memory_space<vmem>>, %arg15: memref<32x32xf32, #tpu.memory_space<vmem>>, %arg16: memref<1x32xf32, #tpu.memory_space<vmem>>, %arg17: memref<1x32xf32, #tpu.memory_space<vmem>>, %arg18: memref<1x32xf32, #tpu.memory_space<vmem>>, %arg19: memref<32x64xf32, #tpu.memory_space<vmem>>, %arg20: memref<1x64xf32, #tpu.memory_space<vmem>>, %arg21: memref<64x32xf32, #tpu.memory_space<vmem>>, %arg22: memref<1x32xf32, #tpu.memory_space<vmem>>, %arg23: memref<1x32xf32, #tpu.memory_space<vmem>>, %arg24: memref<1x32xf32, #tpu.memory_space<vmem>>, %arg25: memref<1x8x32xf32, #tpu.memory_space<vmem>>, %arg26: memref<4x1x8x9xf32, #tpu.memory_space<vmem>>) attributes {dimension_semantics = [#tpu.dimension_semantics<parallel>], iteration_bounds = array<i64: 2>, scalar_prefetch = 0 : i64, scratch_operands = 0 : i64, tpu.core_type = #tpu.core_type<tc>, window_params = [{transform_indices = @transform_0, window_bounds = array<i64: 1, 8, 32>}, {transform_indices = @transform_1, window_bounds = array<i64: 1, 9, 32>}, {transform_indices = @transform_2, window_bounds = array<i64: 1, 8, 8>}, {transform_indices = @transform_3, window_bounds = array<i64: 1, 1, 9>}, {pipeline_mode = #tpu.pipeline_mode<synchronous>, transform_indices = @transform_4, window_bounds = array<i64: 32, 96>}, {pipeline_mode = #tpu.pipeline_mode<synchronous>, transform_indices = @transform_5, window_bounds = array<i64: 1, 96>}, {pipeline_mode = #tpu.pipeline_mode<synchronous>, transform_indices = @transform_6, window_bounds = array<i64: 32, 32>}, {pipeline_mode = #tpu.pipeline_mode<synchronous>, transform_indices = @transform_7, window_bounds = array<i64: 1, 32>}, {pipeline_mode = #tpu.pipeline_mode<synchronous>, transform_indices = @transform_8, window_bounds = array<i64: 1, 32>}, {pipeline_mode = #tpu.pipeline_mode<synchronous>, transform_indices = @transform_9, window_bounds = array<i64: 1, 32>}, {pipeline_mode = #tpu.pipeline_mode<synchronous>, transform_indices = @transform_10, window_bounds = array<i64: 32, 32>}, {pipeline_mode = #tpu.pipeline_mode<synchronous>, transform_indices = @transform_11, window_bounds = array<i64: 1, 32>}, {pipeline_mode = #tpu.pipeline_mode<synchronous>, transform_indices = @transform_12, window_bounds = array<i64: 32, 64>}, {pipeline_mode = #tpu.pipeline_mode<synchronous>, transform_indices = @transform_13, window_bounds = array<i64: 1, 64>}, {pipeline_mode = #tpu.pipeline_mode<synchronous>, transform_indices = @transform_14, window_bounds = array<i64: 32, 32>}, {pipeline_mode = #tpu.pipeline_mode<synchronous>, transform_indices = @transform_15, window_bounds = array<i64: 1, 32>}, {pipeline_mode = #tpu.pipeline_mode<synchronous>, transform_indices = @transform_16, window_bounds = array<i64: 1, 32>}, {pipeline_mode = #tpu.pipeline_mode<synchronous>, transform_indices = @transform_17, window_bounds = array<i64: 1, 32>}, {pipeline_mode = #tpu.pipeline_mode<synchronous>, transform_indices = @transform_18, window_bounds = array<i64: 32, 64>}, {pipeline_mode = #tpu.pipeline_mode<synchronous>, transform_indices = @transform_19, window_bounds = array<i64: 1, 64>}, {pipeline_mode = #tpu.pipeline_mode<synchronous>, transform_indices = @transform_20, window_bounds = array<i64: 64, 32>}, {pipeline_mode = #tpu.pipeline_mode<synchronous>, transform_indices = @transform_21, window_bounds = array<i64: 1, 32>}, {pipeline_mode = #tpu.pipeline_mode<synchronous>, transform_indices = @transform_22, window_bounds = array<i64: 1, 32>}, {pipeline_mode = #tpu.pipeline_mode<synchronous>, transform_indices = @transform_23, window_bounds = array<i64: 1, 32>}, {transform_indices = @transform_24, window_bounds = array<i64: 1, 8, 32>}, {transform_indices = @transform_25, window_bounds = array<i64: 4, 1, 8, 9>}]} {
    %c0 = arith.constant 0 : index
    %c0_0 = arith.constant 0 : index
    %c0_1 = arith.constant 0 : index
    %0 = vector.load %arg1[%c0, %c0_0, %c0_1] : memref<1x8x32xf32, #tpu.memory_space<vmem>>, vector<1x8x32xf32>
    %1 = vector.shape_cast %0 : vector<1x8x32xf32> to vector<8x32xf32>
    %c0_2 = arith.constant 0 : index
    %c0_3 = arith.constant 0 : index
    %c0_4 = arith.constant 0 : index
    %2 = vector.load %arg2[%c0_2, %c0_3, %c0_4] : memref<1x9x32xf32, #tpu.memory_space<vmem>>, vector<1x9x32xf32>
    %3 = vector.shape_cast %2 : vector<1x9x32xf32> to vector<9x32xf32>
    %c0_5 = arith.constant 0 : index
    %c0_6 = arith.constant 0 : index
    %c0_7 = arith.constant 0 : index
    %4 = vector.load %arg3[%c0_5, %c0_6, %c0_7] : memref<1x8x8xf32, #tpu.memory_space<vmem>>, vector<1x8x8xf32>
    %5 = vector.shape_cast %4 : vector<1x8x8xf32> to vector<8x8xf32>
    %c0_8 = arith.constant 0 : index
    %c0_9 = arith.constant 0 : index
    %c0_10 = arith.constant 0 : index
    %6 = vector.load %arg4[%c0_8, %c0_9, %c0_10] : memref<1x1x9xf32, #tpu.memory_space<vmem>>, vector<1x1x9xf32>
    %7 = vector.shape_cast %6 : vector<1x1x9xf32> to vector<1x9xf32>
    %c0_11 = arith.constant 0 : index
    %c0_12 = arith.constant 0 : index
    %8 = vector.load %arg5[%c0_11, %c0_12] : memref<32x96xf32, #tpu.memory_space<vmem>>, vector<32x96xf32>
    %cst = arith.constant dense<0.000000e+00> : vector<8x96xf32>
    %9 = tpu.matmul %1, %8, %cst {dimension_numbers = #tpu.dot_dimension_numbers<[1], [0], [0], [1], [0, 0, 1, 1], [], []>} : vector<8x32xf32>, vector<32x96xf32>, vector<8x96xf32> -> vector<8x96xf32>
    %c0_13 = arith.constant 0 : index
    %c0_14 = arith.constant 0 : index
    %10 = vector.load %arg6[%c0_13, %c0_14] : memref<1x96xf32, #tpu.memory_space<vmem>>, vector<1x96xf32>
    %11 = vector.broadcast %10 : vector<1x96xf32> to vector<8x96xf32>
    %12 = arith.addf %9, %11 : vector<8x96xf32>
    %13 = vector.extract_strided_slice %12 {offsets = [0, 0], sizes = [8, 32], strides = [1, 1]} : vector<8x96xf32> to vector<8x32xf32>
    %14 = vector.extract_strided_slice %12 {offsets = [0, 32], sizes = [8, 32], strides = [1, 1]} : vector<8x96xf32> to vector<8x32xf32>
    %15 = vector.extract_strided_slice %12 {offsets = [0, 64], sizes = [8, 32], strides = [1, 1]} : vector<8x96xf32> to vector<8x32xf32>
    %c0_15 = arith.constant 0 : index
    %c0_16 = arith.constant 0 : index
    %16 = vector.load %arg7[%c0_15, %c0_16] : memref<32x32xf32, #tpu.memory_space<vmem>>, vector<32x32xf32>
    %17 = vector.extract_strided_slice %13 {offsets = [0, 0], sizes = [8, 8], strides = [1, 1]} : vector<8x32xf32> to vector<8x8xf32>
    %cst_17 = arith.constant 0.353553385 : f32
    %18 = vector.broadcast %cst_17 : f32 to vector<8x8xf32>
    %19 = arith.mulf %17, %18 : vector<8x8xf32>
    %20 = vector.extract_strided_slice %14 {offsets = [0, 0], sizes = [8, 8], strides = [1, 1]} : vector<8x32xf32> to vector<8x8xf32>
    %21 = vector.extract_strided_slice %15 {offsets = [0, 0], sizes = [8, 8], strides = [1, 1]} : vector<8x32xf32> to vector<8x8xf32>
    %cst_18 = arith.constant dense<0.000000e+00> : vector<8x8xf32>
    %22 = tpu.matmul %19, %20, %cst_18 {dimension_numbers = #tpu.dot_dimension_numbers<[1], [1], [0], [0], [0, 0, 1, 0], [], []>} : vector<8x8xf32>, vector<8x8xf32>, vector<8x8xf32> -> vector<8x8xf32>
    %23 = arith.addf %22, %5 : vector<8x8xf32>
    %cst_19 = arith.constant dense<0xFF800000> : vector<8xf32>
    %24 = vector.multi_reduction <maximumf>, %23, %cst_19 [1] : vector<8x8xf32> to vector<8xf32>
    %25 = vector.shape_cast %24 : vector<8xf32> to vector<8x1xf32>
    %26 = vector.broadcast %25 : vector<8x1xf32> to vector<8x8xf32>
    %27 = arith.subf %23, %26 : vector<8x8xf32>
    %28 = math.exp %27 : vector<8x8xf32>
    %cst_20 = arith.constant dense<0.000000e+00> : vector<8xf32>
    %29 = vector.multi_reduction <add>, %28, %cst_20 [1] : vector<8x8xf32> to vector<8xf32>
    %30 = vector.shape_cast %29 : vector<8xf32> to vector<8x1xf32>
    %cst_21 = arith.constant 1.000000e+00 : f32
    %31 = vector.broadcast %cst_21 : f32 to vector<8x1xf32>
    %32 = arith.divf %31, %30 : vector<8x1xf32>
    %33 = vector.broadcast %32 : vector<8x1xf32> to vector<8x8xf32>
    %34 = arith.mulf %28, %33 : vector<8x8xf32>
    %cst_22 = arith.constant dense<0.000000e+00> : vector<8x8xf32>
    %35 = tpu.matmul %34, %21, %cst_22 {dimension_numbers = #tpu.dot_dimension_numbers<[1], [0], [0], [1], [0, 0, 1, 1], [], []>} : vector<8x8xf32>, vector<8x8xf32>, vector<8x8xf32> -> vector<8x8xf32>
    %36 = vector.extract_strided_slice %16 {offsets = [0, 0], sizes = [8, 32], strides = [1, 1]} : vector<32x32xf32> to vector<8x32xf32>
    %cst_23 = arith.constant dense<0.000000e+00> : vector<8x32xf32>
    %37 = tpu.matmul %35, %36, %cst_23 {dimension_numbers = #tpu.dot_dimension_numbers<[1], [0], [0], [1], [0, 0, 1, 1], [], []>} : vector<8x8xf32>, vector<8x32xf32>, vector<8x32xf32> -> vector<8x32xf32>
    %38 = vector.extract_strided_slice %13 {offsets = [0, 8], sizes = [8, 8], strides = [1, 1]} : vector<8x32xf32> to vector<8x8xf32>
    %cst_24 = arith.constant 0.353553385 : f32
    %39 = vector.broadcast %cst_24 : f32 to vector<8x8xf32>
    %40 = arith.mulf %38, %39 : vector<8x8xf32>
    %41 = vector.extract_strided_slice %14 {offsets = [0, 8], sizes = [8, 8], strides = [1, 1]} : vector<8x32xf32> to vector<8x8xf32>
    %42 = vector.extract_strided_slice %15 {offsets = [0, 8], sizes = [8, 8], strides = [1, 1]} : vector<8x32xf32> to vector<8x8xf32>
    %cst_25 = arith.constant dense<0.000000e+00> : vector<8x8xf32>
    %43 = tpu.matmul %40, %41, %cst_25 {dimension_numbers = #tpu.dot_dimension_numbers<[1], [1], [0], [0], [0, 0, 1, 0], [], []>} : vector<8x8xf32>, vector<8x8xf32>, vector<8x8xf32> -> vector<8x8xf32>
    %44 = arith.addf %43, %5 : vector<8x8xf32>
    %cst_26 = arith.constant dense<0xFF800000> : vector<8xf32>
    %45 = vector.multi_reduction <maximumf>, %44, %cst_26 [1] : vector<8x8xf32> to vector<8xf32>
    %46 = vector.shape_cast %45 : vector<8xf32> to vector<8x1xf32>
    %47 = vector.broadcast %46 : vector<8x1xf32> to vector<8x8xf32>
    %48 = arith.subf %44, %47 : vector<8x8xf32>
    %49 = math.exp %48 : vector<8x8xf32>
    %cst_27 = arith.constant dense<0.000000e+00> : vector<8xf32>
    %50 = vector.multi_reduction <add>, %49, %cst_27 [1] : vector<8x8xf32> to vector<8xf32>
    %51 = vector.shape_cast %50 : vector<8xf32> to vector<8x1xf32>
    %cst_28 = arith.constant 1.000000e+00 : f32
    %52 = vector.broadcast %cst_28 : f32 to vector<8x1xf32>
    %53 = arith.divf %52, %51 : vector<8x1xf32>
    %54 = vector.broadcast %53 : vector<8x1xf32> to vector<8x8xf32>
    %55 = arith.mulf %49, %54 : vector<8x8xf32>
    %cst_29 = arith.constant dense<0.000000e+00> : vector<8x8xf32>
    %56 = tpu.matmul %55, %42, %cst_29 {dimension_numbers = #tpu.dot_dimension_numbers<[1], [0], [0], [1], [0, 0, 1, 1], [], []>} : vector<8x8xf32>, vector<8x8xf32>, vector<8x8xf32> -> vector<8x8xf32>
    %57 = vector.extract_strided_slice %16 {offsets = [8, 0], sizes = [8, 32], strides = [1, 1]} : vector<32x32xf32> to vector<8x32xf32>
    %cst_30 = arith.constant dense<0.000000e+00> : vector<8x32xf32>
    %58 = tpu.matmul %56, %57, %cst_30 {dimension_numbers = #tpu.dot_dimension_numbers<[1], [0], [0], [1], [0, 0, 1, 1], [], []>} : vector<8x8xf32>, vector<8x32xf32>, vector<8x32xf32> -> vector<8x32xf32>
    %59 = arith.addf %37, %58 : vector<8x32xf32>
    %60 = vector.extract_strided_slice %13 {offsets = [0, 16], sizes = [8, 8], strides = [1, 1]} : vector<8x32xf32> to vector<8x8xf32>
    %cst_31 = arith.constant 0.353553385 : f32
    %61 = vector.broadcast %cst_31 : f32 to vector<8x8xf32>
    %62 = arith.mulf %60, %61 : vector<8x8xf32>
    %63 = vector.extract_strided_slice %14 {offsets = [0, 16], sizes = [8, 8], strides = [1, 1]} : vector<8x32xf32> to vector<8x8xf32>
    %64 = vector.extract_strided_slice %15 {offsets = [0, 16], sizes = [8, 8], strides = [1, 1]} : vector<8x32xf32> to vector<8x8xf32>
    %cst_32 = arith.constant dense<0.000000e+00> : vector<8x8xf32>
    %65 = tpu.matmul %62, %63, %cst_32 {dimension_numbers = #tpu.dot_dimension_numbers<[1], [1], [0], [0], [0, 0, 1, 0], [], []>} : vector<8x8xf32>, vector<8x8xf32>, vector<8x8xf32> -> vector<8x8xf32>
    %66 = arith.addf %65, %5 : vector<8x8xf32>
    %cst_33 = arith.constant dense<0xFF800000> : vector<8xf32>
    %67 = vector.multi_reduction <maximumf>, %66, %cst_33 [1] : vector<8x8xf32> to vector<8xf32>
    %68 = vector.shape_cast %67 : vector<8xf32> to vector<8x1xf32>
    %69 = vector.broadcast %68 : vector<8x1xf32> to vector<8x8xf32>
    %70 = arith.subf %66, %69 : vector<8x8xf32>
    %71 = math.exp %70 : vector<8x8xf32>
    %cst_34 = arith.constant dense<0.000000e+00> : vector<8xf32>
    %72 = vector.multi_reduction <add>, %71, %cst_34 [1] : vector<8x8xf32> to vector<8xf32>
    %73 = vector.shape_cast %72 : vector<8xf32> to vector<8x1xf32>
    %cst_35 = arith.constant 1.000000e+00 : f32
    %74 = vector.broadcast %cst_35 : f32 to vector<8x1xf32>
    %75 = arith.divf %74, %73 : vector<8x1xf32>
    %76 = vector.broadcast %75 : vector<8x1xf32> to vector<8x8xf32>
    %77 = arith.mulf %71, %76 : vector<8x8xf32>
    %cst_36 = arith.constant dense<0.000000e+00> : vector<8x8xf32>
    %78 = tpu.matmul %77, %64, %cst_36 {dimension_numbers = #tpu.dot_dimension_numbers<[1], [0], [0], [1], [0, 0, 1, 1], [], []>} : vector<8x8xf32>, vector<8x8xf32>, vector<8x8xf32> -> vector<8x8xf32>
    %79 = vector.extract_strided_slice %16 {offsets = [16, 0], sizes = [8, 32], strides = [1, 1]} : vector<32x32xf32> to vector<8x32xf32>
    %cst_37 = arith.constant dense<0.000000e+00> : vector<8x32xf32>
    %80 = tpu.matmul %78, %79, %cst_37 {dimension_numbers = #tpu.dot_dimension_numbers<[1], [0], [0], [1], [0, 0, 1, 1], [], []>} : vector<8x8xf32>, vector<8x32xf32>, vector<8x32xf32> -> vector<8x32xf32>
    %81 = arith.addf %59, %80 : vector<8x32xf32>
    %82 = vector.extract_strided_slice %13 {offsets = [0, 24], sizes = [8, 8], strides = [1, 1]} : vector<8x32xf32> to vector<8x8xf32>
    %cst_38 = arith.constant 0.353553385 : f32
    %83 = vector.broadcast %cst_38 : f32 to vector<8x8xf32>
    %84 = arith.mulf %82, %83 : vector<8x8xf32>
    %85 = vector.extract_strided_slice %14 {offsets = [0, 24], sizes = [8, 8], strides = [1, 1]} : vector<8x32xf32> to vector<8x8xf32>
    %86 = vector.extract_strided_slice %15 {offsets = [0, 24], sizes = [8, 8], strides = [1, 1]} : vector<8x32xf32> to vector<8x8xf32>
    %cst_39 = arith.constant dense<0.000000e+00> : vector<8x8xf32>
    %87 = tpu.matmul %84, %85, %cst_39 {dimension_numbers = #tpu.dot_dimension_numbers<[1], [1], [0], [0], [0, 0, 1, 0], [], []>} : vector<8x8xf32>, vector<8x8xf32>, vector<8x8xf32> -> vector<8x8xf32>
    %88 = arith.addf %87, %5 : vector<8x8xf32>
    %cst_40 = arith.constant dense<0xFF800000> : vector<8xf32>
    %89 = vector.multi_reduction <maximumf>, %88, %cst_40 [1] : vector<8x8xf32> to vector<8xf32>
    %90 = vector.shape_cast %89 : vector<8xf32> to vector<8x1xf32>
    %91 = vector.broadcast %90 : vector<8x1xf32> to vector<8x8xf32>
    %92 = arith.subf %88, %91 : vector<8x8xf32>
    %93 = math.exp %92 : vector<8x8xf32>
    %cst_41 = arith.constant dense<0.000000e+00> : vector<8xf32>
    %94 = vector.multi_reduction <add>, %93, %cst_41 [1] : vector<8x8xf32> to vector<8xf32>
    %95 = vector.shape_cast %94 : vector<8xf32> to vector<8x1xf32>
    %cst_42 = arith.constant 1.000000e+00 : f32
    %96 = vector.broadcast %cst_42 : f32 to vector<8x1xf32>
    %97 = arith.divf %96, %95 : vector<8x1xf32>
    %98 = vector.broadcast %97 : vector<8x1xf32> to vector<8x8xf32>
    %99 = arith.mulf %93, %98 : vector<8x8xf32>
    %cst_43 = arith.constant dense<0.000000e+00> : vector<8x8xf32>
    %100 = tpu.matmul %99, %86, %cst_43 {dimension_numbers = #tpu.dot_dimension_numbers<[1], [0], [0], [1], [0, 0, 1, 1], [], []>} : vector<8x8xf32>, vector<8x8xf32>, vector<8x8xf32> -> vector<8x8xf32>
    %101 = vector.extract_strided_slice %16 {offsets = [24, 0], sizes = [8, 32], strides = [1, 1]} : vector<32x32xf32> to vector<8x32xf32>
    %cst_44 = arith.constant dense<0.000000e+00> : vector<8x32xf32>
    %102 = tpu.matmul %100, %101, %cst_44 {dimension_numbers = #tpu.dot_dimension_numbers<[1], [0], [0], [1], [0, 0, 1, 1], [], []>} : vector<8x8xf32>, vector<8x32xf32>, vector<8x32xf32> -> vector<8x32xf32>
    %103 = arith.addf %81, %102 : vector<8x32xf32>
    %104 = arith.addf %1, %103 : vector<8x32xf32>
    %c0_45 = arith.constant 0 : index
    %c0_46 = arith.constant 0 : index
    %105 = vector.load %arg8[%c0_45, %c0_46] : memref<1x32xf32, #tpu.memory_space<vmem>>, vector<1x32xf32>
    %106 = vector.broadcast %105 : vector<1x32xf32> to vector<8x32xf32>
    %107 = arith.addf %104, %106 : vector<8x32xf32>
    %c0_47 = arith.constant 0 : index
    %c0_48 = arith.constant 0 : index
    %108 = vector.load %arg9[%c0_47, %c0_48] : memref<1x32xf32, #tpu.memory_space<vmem>>, vector<1x32xf32>
    %c0_49 = arith.constant 0 : index
    %c0_50 = arith.constant 0 : index
    %109 = vector.load %arg10[%c0_49, %c0_50] : memref<1x32xf32, #tpu.memory_space<vmem>>, vector<1x32xf32>
    %cst_51 = arith.constant dense<0.000000e+00> : vector<8xf32>
    %110 = vector.multi_reduction <add>, %107, %cst_51 [1] : vector<8x32xf32> to vector<8xf32>
    %111 = vector.shape_cast %110 : vector<8xf32> to vector<8x1xf32>
    %cst_52 = arith.constant 3.200000e+01 : f32
    %112 = vector.broadcast %cst_52 : f32 to vector<8x1xf32>
    %113 = arith.divf %111, %112 : vector<8x1xf32>
    %114 = vector.broadcast %113 : vector<8x1xf32> to vector<8x32xf32>
    %115 = arith.subf %107, %114 : vector<8x32xf32>
    %116 = arith.mulf %115, %115 : vector<8x32xf32>
    %cst_53 = arith.constant dense<0.000000e+00> : vector<8xf32>
    %117 = vector.multi_reduction <add>, %116, %cst_53 [1] : vector<8x32xf32> to vector<8xf32>
    %118 = vector.shape_cast %117 : vector<8xf32> to vector<8x1xf32>
    %cst_54 = arith.constant 3.200000e+01 : f32
    %119 = vector.broadcast %cst_54 : f32 to vector<8x1xf32>
    %120 = arith.divf %118, %119 : vector<8x1xf32>
    %121 = vector.broadcast %113 : vector<8x1xf32> to vector<8x32xf32>
    %122 = arith.subf %107, %121 : vector<8x32xf32>
    %cst_55 = arith.constant 9.99999974E-6 : f32
    %123 = vector.broadcast %cst_55 : f32 to vector<8x1xf32>
    %124 = arith.addf %120, %123 : vector<8x1xf32>
    %125 = math.rsqrt %124 : vector<8x1xf32>
    %126 = vector.broadcast %125 : vector<8x1xf32> to vector<8x32xf32>
    %127 = arith.mulf %122, %126 : vector<8x32xf32>
    %128 = vector.broadcast %108 : vector<1x32xf32> to vector<8x32xf32>
    %129 = arith.mulf %127, %128 : vector<8x32xf32>
    %130 = vector.broadcast %109 : vector<1x32xf32> to vector<8x32xf32>
    %131 = arith.addf %129, %130 : vector<8x32xf32>
    %c0_56 = arith.constant 0 : index
    %c0_57 = arith.constant 0 : index
    %132 = vector.load %arg11[%c0_56, %c0_57] : memref<32x32xf32, #tpu.memory_space<vmem>>, vector<32x32xf32>
    %cst_58 = arith.constant dense<0.000000e+00> : vector<8x32xf32>
    %133 = tpu.matmul %131, %132, %cst_58 {dimension_numbers = #tpu.dot_dimension_numbers<[1], [0], [0], [1], [0, 0, 1, 1], [], []>} : vector<8x32xf32>, vector<32x32xf32>, vector<8x32xf32> -> vector<8x32xf32>
    %c0_59 = arith.constant 0 : index
    %c0_60 = arith.constant 0 : index
    %134 = vector.load %arg12[%c0_59, %c0_60] : memref<1x32xf32, #tpu.memory_space<vmem>>, vector<1x32xf32>
    %135 = vector.broadcast %134 : vector<1x32xf32> to vector<8x32xf32>
    %136 = arith.addf %133, %135 : vector<8x32xf32>
    %c0_61 = arith.constant 0 : index
    %c0_62 = arith.constant 0 : index
    %137 = vector.load %arg13[%c0_61, %c0_62] : memref<32x64xf32, #tpu.memory_space<vmem>>, vector<32x64xf32>
    %cst_63 = arith.constant dense<0.000000e+00> : vector<9x64xf32>
    %138 = tpu.matmul %3, %137, %cst_63 {dimension_numbers = #tpu.dot_dimension_numbers<[1], [0], [0], [1], [0, 0, 1, 1], [], []>} : vector<9x32xf32>, vector<32x64xf32>, vector<9x64xf32> -> vector<9x64xf32>
    %c0_64 = arith.constant 0 : index
    %c0_65 = arith.constant 0 : index
    %139 = vector.load %arg14[%c0_64, %c0_65] : memref<1x64xf32, #tpu.memory_space<vmem>>, vector<1x64xf32>
    %140 = vector.broadcast %139 : vector<1x64xf32> to vector<9x64xf32>
    %141 = arith.addf %138, %140 : vector<9x64xf32>
    %142 = vector.extract_strided_slice %141 {offsets = [0, 0], sizes = [9, 32], strides = [1, 1]} : vector<9x64xf32> to vector<9x32xf32>
    %143 = vector.extract_strided_slice %141 {offsets = [0, 32], sizes = [9, 32], strides = [1, 1]} : vector<9x64xf32> to vector<9x32xf32>
    %c0_66 = arith.constant 0 : index
    %c0_67 = arith.constant 0 : index
    %144 = vector.load %arg15[%c0_66, %c0_67] : memref<32x32xf32, #tpu.memory_space<vmem>>, vector<32x32xf32>
    %145 = vector.extract_strided_slice %136 {offsets = [0, 0], sizes = [8, 8], strides = [1, 1]} : vector<8x32xf32> to vector<8x8xf32>
    %cst_68 = arith.constant 0.353553385 : f32
    %146 = vector.broadcast %cst_68 : f32 to vector<8x8xf32>
    %147 = arith.mulf %145, %146 : vector<8x8xf32>
    %148 = vector.extract_strided_slice %142 {offsets = [0, 0], sizes = [9, 8], strides = [1, 1]} : vector<9x32xf32> to vector<9x8xf32>
    %149 = vector.extract_strided_slice %143 {offsets = [0, 0], sizes = [9, 8], strides = [1, 1]} : vector<9x32xf32> to vector<9x8xf32>
    %cst_69 = arith.constant dense<0.000000e+00> : vector<8x9xf32>
    %150 = tpu.matmul %147, %148, %cst_69 {dimension_numbers = #tpu.dot_dimension_numbers<[1], [1], [0], [0], [0, 0, 1, 0], [], []>} : vector<8x8xf32>, vector<9x8xf32>, vector<8x9xf32> -> vector<8x9xf32>
    %151 = vector.broadcast %7 : vector<1x9xf32> to vector<8x9xf32>
    %152 = arith.addf %150, %151 : vector<8x9xf32>
    %cst_70 = arith.constant dense<0xFF800000> : vector<8xf32>
    %153 = vector.multi_reduction <maximumf>, %152, %cst_70 [1] : vector<8x9xf32> to vector<8xf32>
    %154 = vector.shape_cast %153 : vector<8xf32> to vector<8x1xf32>
    %155 = vector.broadcast %154 : vector<8x1xf32> to vector<8x9xf32>
    %156 = arith.subf %152, %155 : vector<8x9xf32>
    %157 = math.exp %156 : vector<8x9xf32>
    %cst_71 = arith.constant dense<0.000000e+00> : vector<8xf32>
    %158 = vector.multi_reduction <add>, %157, %cst_71 [1] : vector<8x9xf32> to vector<8xf32>
    %159 = vector.shape_cast %158 : vector<8xf32> to vector<8x1xf32>
    %cst_72 = arith.constant 1.000000e+00 : f32
    %160 = vector.broadcast %cst_72 : f32 to vector<8x1xf32>
    %161 = arith.divf %160, %159 : vector<8x1xf32>
    %162 = vector.broadcast %161 : vector<8x1xf32> to vector<8x9xf32>
    %163 = arith.mulf %157, %162 : vector<8x9xf32>
    %cst_73 = arith.constant dense<0.000000e+00> : vector<8x8xf32>
    %164 = tpu.matmul %163, %149, %cst_73 {dimension_numbers = #tpu.dot_dimension_numbers<[1], [0], [0], [1], [0, 0, 1, 1], [], []>} : vector<8x9xf32>, vector<9x8xf32>, vector<8x8xf32> -> vector<8x8xf32>
    %165 = vector.extract_strided_slice %144 {offsets = [0, 0], sizes = [8, 32], strides = [1, 1]} : vector<32x32xf32> to vector<8x32xf32>
    %cst_74 = arith.constant dense<0.000000e+00> : vector<8x32xf32>
    %166 = tpu.matmul %164, %165, %cst_74 {dimension_numbers = #tpu.dot_dimension_numbers<[1], [0], [0], [1], [0, 0, 1, 1], [], []>} : vector<8x8xf32>, vector<8x32xf32>, vector<8x32xf32> -> vector<8x32xf32>
    %167 = vector.extract_strided_slice %136 {offsets = [0, 8], sizes = [8, 8], strides = [1, 1]} : vector<8x32xf32> to vector<8x8xf32>
    %cst_75 = arith.constant 0.353553385 : f32
    %168 = vector.broadcast %cst_75 : f32 to vector<8x8xf32>
    %169 = arith.mulf %167, %168 : vector<8x8xf32>
    %170 = vector.extract_strided_slice %142 {offsets = [0, 8], sizes = [9, 8], strides = [1, 1]} : vector<9x32xf32> to vector<9x8xf32>
    %171 = vector.extract_strided_slice %143 {offsets = [0, 8], sizes = [9, 8], strides = [1, 1]} : vector<9x32xf32> to vector<9x8xf32>
    %cst_76 = arith.constant dense<0.000000e+00> : vector<8x9xf32>
    %172 = tpu.matmul %169, %170, %cst_76 {dimension_numbers = #tpu.dot_dimension_numbers<[1], [1], [0], [0], [0, 0, 1, 0], [], []>} : vector<8x8xf32>, vector<9x8xf32>, vector<8x9xf32> -> vector<8x9xf32>
    %173 = vector.broadcast %7 : vector<1x9xf32> to vector<8x9xf32>
    %174 = arith.addf %172, %173 : vector<8x9xf32>
    %cst_77 = arith.constant dense<0xFF800000> : vector<8xf32>
    %175 = vector.multi_reduction <maximumf>, %174, %cst_77 [1] : vector<8x9xf32> to vector<8xf32>
    %176 = vector.shape_cast %175 : vector<8xf32> to vector<8x1xf32>
    %177 = vector.broadcast %176 : vector<8x1xf32> to vector<8x9xf32>
    %178 = arith.subf %174, %177 : vector<8x9xf32>
    %179 = math.exp %178 : vector<8x9xf32>
    %cst_78 = arith.constant dense<0.000000e+00> : vector<8xf32>
    %180 = vector.multi_reduction <add>, %179, %cst_78 [1] : vector<8x9xf32> to vector<8xf32>
    %181 = vector.shape_cast %180 : vector<8xf32> to vector<8x1xf32>
    %cst_79 = arith.constant 1.000000e+00 : f32
    %182 = vector.broadcast %cst_79 : f32 to vector<8x1xf32>
    %183 = arith.divf %182, %181 : vector<8x1xf32>
    %184 = vector.broadcast %183 : vector<8x1xf32> to vector<8x9xf32>
    %185 = arith.mulf %179, %184 : vector<8x9xf32>
    %cst_80 = arith.constant dense<0.000000e+00> : vector<8x8xf32>
    %186 = tpu.matmul %185, %171, %cst_80 {dimension_numbers = #tpu.dot_dimension_numbers<[1], [0], [0], [1], [0, 0, 1, 1], [], []>} : vector<8x9xf32>, vector<9x8xf32>, vector<8x8xf32> -> vector<8x8xf32>
    %187 = vector.extract_strided_slice %144 {offsets = [8, 0], sizes = [8, 32], strides = [1, 1]} : vector<32x32xf32> to vector<8x32xf32>
    %cst_81 = arith.constant dense<0.000000e+00> : vector<8x32xf32>
    %188 = tpu.matmul %186, %187, %cst_81 {dimension_numbers = #tpu.dot_dimension_numbers<[1], [0], [0], [1], [0, 0, 1, 1], [], []>} : vector<8x8xf32>, vector<8x32xf32>, vector<8x32xf32> -> vector<8x32xf32>
    %189 = arith.addf %166, %188 : vector<8x32xf32>
    %190 = vector.extract_strided_slice %136 {offsets = [0, 16], sizes = [8, 8], strides = [1, 1]} : vector<8x32xf32> to vector<8x8xf32>
    %cst_82 = arith.constant 0.353553385 : f32
    %191 = vector.broadcast %cst_82 : f32 to vector<8x8xf32>
    %192 = arith.mulf %190, %191 : vector<8x8xf32>
    %193 = vector.extract_strided_slice %142 {offsets = [0, 16], sizes = [9, 8], strides = [1, 1]} : vector<9x32xf32> to vector<9x8xf32>
    %194 = vector.extract_strided_slice %143 {offsets = [0, 16], sizes = [9, 8], strides = [1, 1]} : vector<9x32xf32> to vector<9x8xf32>
    %cst_83 = arith.constant dense<0.000000e+00> : vector<8x9xf32>
    %195 = tpu.matmul %192, %193, %cst_83 {dimension_numbers = #tpu.dot_dimension_numbers<[1], [1], [0], [0], [0, 0, 1, 0], [], []>} : vector<8x8xf32>, vector<9x8xf32>, vector<8x9xf32> -> vector<8x9xf32>
    %196 = vector.broadcast %7 : vector<1x9xf32> to vector<8x9xf32>
    %197 = arith.addf %195, %196 : vector<8x9xf32>
    %cst_84 = arith.constant dense<0xFF800000> : vector<8xf32>
    %198 = vector.multi_reduction <maximumf>, %197, %cst_84 [1] : vector<8x9xf32> to vector<8xf32>
    %199 = vector.shape_cast %198 : vector<8xf32> to vector<8x1xf32>
    %200 = vector.broadcast %199 : vector<8x1xf32> to vector<8x9xf32>
    %201 = arith.subf %197, %200 : vector<8x9xf32>
    %202 = math.exp %201 : vector<8x9xf32>
    %cst_85 = arith.constant dense<0.000000e+00> : vector<8xf32>
    %203 = vector.multi_reduction <add>, %202, %cst_85 [1] : vector<8x9xf32> to vector<8xf32>
    %204 = vector.shape_cast %203 : vector<8xf32> to vector<8x1xf32>
    %cst_86 = arith.constant 1.000000e+00 : f32
    %205 = vector.broadcast %cst_86 : f32 to vector<8x1xf32>
    %206 = arith.divf %205, %204 : vector<8x1xf32>
    %207 = vector.broadcast %206 : vector<8x1xf32> to vector<8x9xf32>
    %208 = arith.mulf %202, %207 : vector<8x9xf32>
    %cst_87 = arith.constant dense<0.000000e+00> : vector<8x8xf32>
    %209 = tpu.matmul %208, %194, %cst_87 {dimension_numbers = #tpu.dot_dimension_numbers<[1], [0], [0], [1], [0, 0, 1, 1], [], []>} : vector<8x9xf32>, vector<9x8xf32>, vector<8x8xf32> -> vector<8x8xf32>
    %210 = vector.extract_strided_slice %144 {offsets = [16, 0], sizes = [8, 32], strides = [1, 1]} : vector<32x32xf32> to vector<8x32xf32>
    %cst_88 = arith.constant dense<0.000000e+00> : vector<8x32xf32>
    %211 = tpu.matmul %209, %210, %cst_88 {dimension_numbers = #tpu.dot_dimension_numbers<[1], [0], [0], [1], [0, 0, 1, 1], [], []>} : vector<8x8xf32>, vector<8x32xf32>, vector<8x32xf32> -> vector<8x32xf32>
    %212 = arith.addf %189, %211 : vector<8x32xf32>
    %213 = vector.extract_strided_slice %136 {offsets = [0, 24], sizes = [8, 8], strides = [1, 1]} : vector<8x32xf32> to vector<8x8xf32>
    %cst_89 = arith.constant 0.353553385 : f32
    %214 = vector.broadcast %cst_89 : f32 to vector<8x8xf32>
    %215 = arith.mulf %213, %214 : vector<8x8xf32>
    %216 = vector.extract_strided_slice %142 {offsets = [0, 24], sizes = [9, 8], strides = [1, 1]} : vector<9x32xf32> to vector<9x8xf32>
    %217 = vector.extract_strided_slice %143 {offsets = [0, 24], sizes = [9, 8], strides = [1, 1]} : vector<9x32xf32> to vector<9x8xf32>
    %cst_90 = arith.constant dense<0.000000e+00> : vector<8x9xf32>
    %218 = tpu.matmul %215, %216, %cst_90 {dimension_numbers = #tpu.dot_dimension_numbers<[1], [1], [0], [0], [0, 0, 1, 0], [], []>} : vector<8x8xf32>, vector<9x8xf32>, vector<8x9xf32> -> vector<8x9xf32>
    %219 = vector.broadcast %7 : vector<1x9xf32> to vector<8x9xf32>
    %220 = arith.addf %218, %219 : vector<8x9xf32>
    %cst_91 = arith.constant dense<0xFF800000> : vector<8xf32>
    %221 = vector.multi_reduction <maximumf>, %220, %cst_91 [1] : vector<8x9xf32> to vector<8xf32>
    %222 = vector.shape_cast %221 : vector<8xf32> to vector<8x1xf32>
    %223 = vector.broadcast %222 : vector<8x1xf32> to vector<8x9xf32>
    %224 = arith.subf %220, %223 : vector<8x9xf32>
    %225 = math.exp %224 : vector<8x9xf32>
    %cst_92 = arith.constant dense<0.000000e+00> : vector<8xf32>
    %226 = vector.multi_reduction <add>, %225, %cst_92 [1] : vector<8x9xf32> to vector<8xf32>
    %227 = vector.shape_cast %226 : vector<8xf32> to vector<8x1xf32>
    %cst_93 = arith.constant 1.000000e+00 : f32
    %228 = vector.broadcast %cst_93 : f32 to vector<8x1xf32>
    %229 = arith.divf %228, %227 : vector<8x1xf32>
    %230 = vector.broadcast %229 : vector<8x1xf32> to vector<8x9xf32>
    %231 = arith.mulf %225, %230 : vector<8x9xf32>
    %cst_94 = arith.constant dense<0.000000e+00> : vector<8x8xf32>
    %232 = tpu.matmul %231, %217, %cst_94 {dimension_numbers = #tpu.dot_dimension_numbers<[1], [0], [0], [1], [0, 0, 1, 1], [], []>} : vector<8x9xf32>, vector<9x8xf32>, vector<8x8xf32> -> vector<8x8xf32>
    %233 = vector.extract_strided_slice %144 {offsets = [24, 0], sizes = [8, 32], strides = [1, 1]} : vector<32x32xf32> to vector<8x32xf32>
    %cst_95 = arith.constant dense<0.000000e+00> : vector<8x32xf32>
    %234 = tpu.matmul %232, %233, %cst_95 {dimension_numbers = #tpu.dot_dimension_numbers<[1], [0], [0], [1], [0, 0, 1, 1], [], []>} : vector<8x8xf32>, vector<8x32xf32>, vector<8x32xf32> -> vector<8x32xf32>
    %235 = arith.addf %212, %234 : vector<8x32xf32>
    %236 = arith.addf %131, %235 : vector<8x32xf32>
    %c0_96 = arith.constant 0 : index
    %c0_97 = arith.constant 0 : index
    %237 = vector.load %arg16[%c0_96, %c0_97] : memref<1x32xf32, #tpu.memory_space<vmem>>, vector<1x32xf32>
    %238 = vector.broadcast %237 : vector<1x32xf32> to vector<8x32xf32>
    %239 = arith.addf %236, %238 : vector<8x32xf32>
    %c0_98 = arith.constant 0 : index
    %c0_99 = arith.constant 0 : index
    %240 = vector.load %arg17[%c0_98, %c0_99] : memref<1x32xf32, #tpu.memory_space<vmem>>, vector<1x32xf32>
    %c0_100 = arith.constant 0 : index
    %c0_101 = arith.constant 0 : index
    %241 = vector.load %arg18[%c0_100, %c0_101] : memref<1x32xf32, #tpu.memory_space<vmem>>, vector<1x32xf32>
    %cst_102 = arith.constant dense<0.000000e+00> : vector<8xf32>
    %242 = vector.multi_reduction <add>, %239, %cst_102 [1] : vector<8x32xf32> to vector<8xf32>
    %243 = vector.shape_cast %242 : vector<8xf32> to vector<8x1xf32>
    %cst_103 = arith.constant 3.200000e+01 : f32
    %244 = vector.broadcast %cst_103 : f32 to vector<8x1xf32>
    %245 = arith.divf %243, %244 : vector<8x1xf32>
    %246 = vector.broadcast %245 : vector<8x1xf32> to vector<8x32xf32>
    %247 = arith.subf %239, %246 : vector<8x32xf32>
    %248 = arith.mulf %247, %247 : vector<8x32xf32>
    %cst_104 = arith.constant dense<0.000000e+00> : vector<8xf32>
    %249 = vector.multi_reduction <add>, %248, %cst_104 [1] : vector<8x32xf32> to vector<8xf32>
    %250 = vector.shape_cast %249 : vector<8xf32> to vector<8x1xf32>
    %cst_105 = arith.constant 3.200000e+01 : f32
    %251 = vector.broadcast %cst_105 : f32 to vector<8x1xf32>
    %252 = arith.divf %250, %251 : vector<8x1xf32>
    %253 = vector.broadcast %245 : vector<8x1xf32> to vector<8x32xf32>
    %254 = arith.subf %239, %253 : vector<8x32xf32>
    %cst_106 = arith.constant 9.99999974E-6 : f32
    %255 = vector.broadcast %cst_106 : f32 to vector<8x1xf32>
    %256 = arith.addf %252, %255 : vector<8x1xf32>
    %257 = math.rsqrt %256 : vector<8x1xf32>
    %258 = vector.broadcast %257 : vector<8x1xf32> to vector<8x32xf32>
    %259 = arith.mulf %254, %258 : vector<8x32xf32>
    %260 = vector.broadcast %240 : vector<1x32xf32> to vector<8x32xf32>
    %261 = arith.mulf %259, %260 : vector<8x32xf32>
    %262 = vector.broadcast %241 : vector<1x32xf32> to vector<8x32xf32>
    %263 = arith.addf %261, %262 : vector<8x32xf32>
    %c0_107 = arith.constant 0 : index
    %c0_108 = arith.constant 0 : index
    %264 = vector.load %arg19[%c0_107, %c0_108] : memref<32x64xf32, #tpu.memory_space<vmem>>, vector<32x64xf32>
    %cst_109 = arith.constant dense<0.000000e+00> : vector<8x64xf32>
    %265 = tpu.matmul %263, %264, %cst_109 {dimension_numbers = #tpu.dot_dimension_numbers<[1], [0], [0], [1], [0, 0, 1, 1], [], []>} : vector<8x32xf32>, vector<32x64xf32>, vector<8x64xf32> -> vector<8x64xf32>
    %c0_110 = arith.constant 0 : index
    %c0_111 = arith.constant 0 : index
    %266 = vector.load %arg20[%c0_110, %c0_111] : memref<1x64xf32, #tpu.memory_space<vmem>>, vector<1x64xf32>
    %267 = vector.broadcast %266 : vector<1x64xf32> to vector<8x64xf32>
    %268 = arith.addf %265, %267 : vector<8x64xf32>
    %cst_112 = arith.constant 0.000000e+00 : f32
    %269 = vector.broadcast %cst_112 : f32 to vector<8x64xf32>
    %270 = arith.maximumf %268, %269 : vector<8x64xf32>
    %c0_113 = arith.constant 0 : index
    %c0_114 = arith.constant 0 : index
    %271 = vector.load %arg21[%c0_113, %c0_114] : memref<64x32xf32, #tpu.memory_space<vmem>>, vector<64x32xf32>
    %cst_115 = arith.constant dense<0.000000e+00> : vector<8x32xf32>
    %272 = tpu.matmul %270, %271, %cst_115 {dimension_numbers = #tpu.dot_dimension_numbers<[1], [0], [0], [1], [0, 0, 1, 1], [], []>} : vector<8x64xf32>, vector<64x32xf32>, vector<8x32xf32> -> vector<8x32xf32>
    %c0_116 = arith.constant 0 : index
    %c0_117 = arith.constant 0 : index
    %273 = vector.load %arg22[%c0_116, %c0_117] : memref<1x32xf32, #tpu.memory_space<vmem>>, vector<1x32xf32>
    %274 = vector.broadcast %273 : vector<1x32xf32> to vector<8x32xf32>
    %275 = arith.addf %272, %274 : vector<8x32xf32>
    %276 = arith.addf %263, %275 : vector<8x32xf32>
    %c0_118 = arith.constant 0 : index
    %c0_119 = arith.constant 0 : index
    %277 = vector.load %arg23[%c0_118, %c0_119] : memref<1x32xf32, #tpu.memory_space<vmem>>, vector<1x32xf32>
    %c0_120 = arith.constant 0 : index
    %c0_121 = arith.constant 0 : index
    %278 = vector.load %arg24[%c0_120, %c0_121] : memref<1x32xf32, #tpu.memory_space<vmem>>, vector<1x32xf32>
    %cst_122 = arith.constant dense<0.000000e+00> : vector<8xf32>
    %279 = vector.multi_reduction <add>, %276, %cst_122 [1] : vector<8x32xf32> to vector<8xf32>
    %280 = vector.shape_cast %279 : vector<8xf32> to vector<8x1xf32>
    %cst_123 = arith.constant 3.200000e+01 : f32
    %281 = vector.broadcast %cst_123 : f32 to vector<8x1xf32>
    %282 = arith.divf %280, %281 : vector<8x1xf32>
    %283 = vector.broadcast %282 : vector<8x1xf32> to vector<8x32xf32>
    %284 = arith.subf %276, %283 : vector<8x32xf32>
    %285 = arith.mulf %284, %284 : vector<8x32xf32>
    %cst_124 = arith.constant dense<0.000000e+00> : vector<8xf32>
    %286 = vector.multi_reduction <add>, %285, %cst_124 [1] : vector<8x32xf32> to vector<8xf32>
    %287 = vector.shape_cast %286 : vector<8xf32> to vector<8x1xf32>
    %cst_125 = arith.constant 3.200000e+01 : f32
    %288 = vector.broadcast %cst_125 : f32 to vector<8x1xf32>
    %289 = arith.divf %287, %288 : vector<8x1xf32>
    %290 = vector.broadcast %282 : vector<8x1xf32> to vector<8x32xf32>
    %291 = arith.subf %276, %290 : vector<8x32xf32>
    %cst_126 = arith.constant 9.99999974E-6 : f32
    %292 = vector.broadcast %cst_126 : f32 to vector<8x1xf32>
    %293 = arith.addf %289, %292 : vector<8x1xf32>
    %294 = math.rsqrt %293 : vector<8x1xf32>
    %295 = vector.broadcast %294 : vector<8x1xf32> to vector<8x32xf32>
    %296 = arith.mulf %291, %295 : vector<8x32xf32>
    %297 = vector.broadcast %277 : vector<1x32xf32> to vector<8x32xf32>
    %298 = arith.mulf %296, %297 : vector<8x32xf32>
    %299 = vector.broadcast %278 : vector<1x32xf32> to vector<8x32xf32>
    %300 = arith.addf %298, %299 : vector<8x32xf32>
    %c0_127 = arith.constant 0 : index
    %c0_128 = arith.constant 0 : index
    %c0_129 = arith.constant 0 : index
    %301 = vector.load %arg25[%c0_127, %c0_128, %c0_129] : memref<1x8x32xf32, #tpu.memory_space<vmem>>, vector<1x8x32xf32>
    %302 = vector.shape_cast %301 : vector<1x8x32xf32> to vector<8x32xf32>
    %303 = vector.shape_cast %300 : vector<8x32xf32> to vector<1x8x32xf32>
    tpu.vector_store %arg25[%c0_127, %c0_128, %c0_129], %303 {strides = array<i32>} : memref<1x8x32xf32, #tpu.memory_space<vmem>>, vector<1x8x32xf32>,
    %c0_130 = arith.constant 0 : index
    %c0_131 = arith.constant 0 : index
    %c0_132 = arith.constant 0 : index
    %c0_133 = arith.constant 0 : index
    %304 = vector.load %arg26[%c0_130, %c0_131, %c0_132, %c0_133] : memref<4x1x8x9xf32, #tpu.memory_space<vmem>>, vector<1x1x8x9xf32>
    %305 = vector.shape_cast %304 : vector<1x1x8x9xf32> to vector<8x9xf32>
    %306 = vector.shape_cast %163 : vector<8x9xf32> to vector<1x1x8x9xf32>
    tpu.vector_store %arg26[%c0_130, %c0_131, %c0_132, %c0_133], %306 {strides = array<i32>} : memref<4x1x8x9xf32, #tpu.memory_space<vmem>>, vector<1x1x8x9xf32>,
    %c1 = arith.constant 1 : index
    %c0_134 = arith.constant 0 : index
    %c0_135 = arith.constant 0 : index
    %c0_136 = arith.constant 0 : index
    %307 = vector.load %arg26[%c1, %c0_134, %c0_135, %c0_136] : memref<4x1x8x9xf32, #tpu.memory_space<vmem>>, vector<1x1x8x9xf32>
    %308 = vector.shape_cast %307 : vector<1x1x8x9xf32> to vector<8x9xf32>
    %309 = vector.shape_cast %185 : vector<8x9xf32> to vector<1x1x8x9xf32>
    tpu.vector_store %arg26[%c1, %c0_134, %c0_135, %c0_136], %309 {strides = array<i32>} : memref<4x1x8x9xf32, #tpu.memory_space<vmem>>, vector<1x1x8x9xf32>,
    %c2 = arith.constant 2 : index
    %c0_137 = arith.constant 0 : index
    %c0_138 = arith.constant 0 : index
    %c0_139 = arith.constant 0 : index
    %310 = vector.load %arg26[%c2, %c0_137, %c0_138, %c0_139] : memref<4x1x8x9xf32, #tpu.memory_space<vmem>>, vector<1x1x8x9xf32>
    %311 = vector.shape_cast %310 : vector<1x1x8x9xf32> to vector<8x9xf32>
    %312 = vector.shape_cast %208 : vector<8x9xf32> to vector<1x1x8x9xf32>
    tpu.vector_store %arg26[%c2, %c0_137, %c0_138, %c0_139], %312 {strides = array<i32>} : memref<4x1x8x9xf32, #tpu.memory_space<vmem>>, vector<1x1x8x9xf32>,
    %c3 = arith.constant 3 : index
    %c0_140 = arith.constant 0 : index
    %c0_141 = arith.constant 0 : index
    %c0_142 = arith.constant 0 : index
    %313 = vector.load %arg26[%c3, %c0_140, %c0_141, %c0_142] : memref<4x1x8x9xf32, #tpu.memory_space<vmem>>, vector<1x1x8x9xf32>
    %314 = vector.shape_cast %313 : vector<1x1x8x9xf32> to vector<8x9xf32>
    %315 = vector.shape_cast %231 : vector<8x9xf32> to vector<1x1x8x9xf32>
    tpu.vector_store %arg26[%c3, %c0_140, %c0_141, %c0_142], %315 {strides = array<i32>} : memref<4x1x8x9xf32, #tpu.memory_space<vmem>>, vector<1x1x8x9xf32>,
    return
  }
  func.func @transform_0(%arg0: i32) -> (i32, i32, i32) {
    %c0_i32 = arith.constant 0 : i32
    %c0_i32_0 = arith.constant 0 : i32
    %c0_i32_1 = arith.constant 0 : i32
    return %arg0, %c0_i32, %c0_i32_0 : i32, i32, i32
  }
  func.func @transform_1(%arg0: i32) -> (i32, i32, i32) {
    %c0_i32 = arith.constant 0 : i32
    %c0_i32_0 = arith.constant 0 : i32
    %c0_i32_1 = arith.constant 0 : i32
    return %arg0, %c0_i32, %c0_i32_0 : i32, i32, i32
  }
  func.func @transform_2(%arg0: i32) -> (i32, i32, i32) {
    %c0_i32 = arith.constant 0 : i32
    %c0_i32_0 = arith.constant 0 : i32
    %c0_i32_1 = arith.constant 0 : i32
    return %arg0, %c0_i32, %c0_i32_0 : i32, i32, i32
  }
  func.func @transform_3(%arg0: i32) -> (i32, i32, i32) {
    %c0_i32 = arith.constant 0 : i32
    %c0_i32_0 = arith.constant 0 : i32
    %c0_i32_1 = arith.constant 0 : i32
    return %arg0, %c0_i32, %c0_i32_0 : i32, i32, i32
  }
  func.func @transform_4(%arg0: i32) -> (i32, i32) {
    %c0_i32 = arith.constant 0 : i32
    %c0_i32_0 = arith.constant 0 : i32
    %c0_i32_1 = arith.constant 0 : i32
    return %c0_i32, %c0_i32_0 : i32, i32
  }
  func.func @transform_5(%arg0: i32) -> (i32, i32) {
    %c0_i32 = arith.constant 0 : i32
    %c0_i32_0 = arith.constant 0 : i32
    %c0_i32_1 = arith.constant 0 : i32
    return %c0_i32, %c0_i32_0 : i32, i32
  }
  func.func @transform_6(%arg0: i32) -> (i32, i32) {
    %c0_i32 = arith.constant 0 : i32
    %c0_i32_0 = arith.constant 0 : i32
    %c0_i32_1 = arith.constant 0 : i32
    return %c0_i32, %c0_i32_0 : i32, i32
  }
  func.func @transform_7(%arg0: i32) -> (i32, i32) {
    %c0_i32 = arith.constant 0 : i32
    %c0_i32_0 = arith.constant 0 : i32
    %c0_i32_1 = arith.constant 0 : i32
    return %c0_i32, %c0_i32_0 : i32, i32
  }
  func.func @transform_8(%arg0: i32) -> (i32, i32) {
    %c0_i32 = arith.constant 0 : i32
    %c0_i32_0 = arith.constant 0 : i32
    %c0_i32_1 = arith.constant 0 : i32
    return %c0_i32, %c0_i32_0 : i32, i32
  }
  func.func @transform_9(%arg0: i32) -> (i32, i32) {
    %c0_i32 = arith.constant 0 : i32
    %c0_i32_0 = arith.constant 0 : i32
    %c0_i32_1 = arith.constant 0 : i32
    return %c0_i32, %c0_i32_0 : i32, i32
  }
  func.func @transform_10(%arg0: i32) -> (i32, i32) {
    %c0_i32 = arith.constant 0 : i32
    %c0_i32_0 = arith.constant 0 : i32
    %c0_i32_1 = arith.constant 0 : i32
    return %c0_i32, %c0_i32_0 : i32, i32
  }
  func.func @transform_11(%arg0: i32) -> (i32, i32) {
    %c0_i32 = arith.constant 0 : i32
    %c0_i32_0 = arith.constant 0 : i32
    %c0_i32_1 = arith.constant 0 : i32
    return %c0_i32, %c0_i32_0 : i32, i32
  }
  func.func @transform_12(%arg0: i32) -> (i32, i32) {
    %c0_i32 = arith.constant 0 : i32
    %c0_i32_0 = arith.constant 0 : i32
    %c0_i32_1 = arith.constant 0 : i32
    return %c0_i32, %c0_i32_0 : i32, i32
  }
  func.func @transform_13(%arg0: i32) -> (i32, i32) {
    %c0_i32 = arith.constant 0 : i32
    %c0_i32_0 = arith.constant 0 : i32
    %c0_i32_1 = arith.constant 0 : i32
    return %c0_i32, %c0_i32_0 : i32, i32
  }
  func.func @transform_14(%arg0: i32) -> (i32, i32) {
    %c0_i32 = arith.constant 0 : i32
    %c0_i32_0 = arith.constant 0 : i32
    %c0_i32_1 = arith.constant 0 : i32
    return %c0_i32, %c0_i32_0 : i32, i32
  }
  func.func @transform_15(%arg0: i32) -> (i32, i32) {
    %c0_i32 = arith.constant 0 : i32
    %c0_i32_0 = arith.constant 0 : i32
    %c0_i32_1 = arith.constant 0 : i32
    return %c0_i32, %c0_i32_0 : i32, i32
  }
  func.func @transform_16(%arg0: i32) -> (i32, i32) {
    %c0_i32 = arith.constant 0 : i32
    %c0_i32_0 = arith.constant 0 : i32
    %c0_i32_1 = arith.constant 0 : i32
    return %c0_i32, %c0_i32_0 : i32, i32
  }
  func.func @transform_17(%arg0: i32) -> (i32, i32) {
    %c0_i32 = arith.constant 0 : i32
    %c0_i32_0 = arith.constant 0 : i32
    %c0_i32_1 = arith.constant 0 : i32
    return %c0_i32, %c0_i32_0 : i32, i32
  }
  func.func @transform_18(%arg0: i32) -> (i32, i32) {
    %c0_i32 = arith.constant 0 : i32
    %c0_i32_0 = arith.constant 0 : i32
    %c0_i32_1 = arith.constant 0 : i32
    return %c0_i32, %c0_i32_0 : i32, i32
  }
  func.func @transform_19(%arg0: i32) -> (i32, i32) {
    %c0_i32 = arith.constant 0 : i32
    %c0_i32_0 = arith.constant 0 : i32
    %c0_i32_1 = arith.constant 0 : i32
    return %c0_i32, %c0_i32_0 : i32, i32
  }
  func.func @transform_20(%arg0: i32) -> (i32, i32) {
    %c0_i32 = arith.constant 0 : i32
    %c0_i32_0 = arith.constant 0 : i32
    %c0_i32_1 = arith.constant 0 : i32
    return %c0_i32, %c0_i32_0 : i32, i32
  }
  func.func @transform_21(%arg0: i32) -> (i32, i32) {
    %c0_i32 = arith.constant 0 : i32
    %c0_i32_0 = arith.constant 0 : i32
    %c0_i32_1 = arith.constant 0 : i32
    return %c0_i32, %c0_i32_0 : i32, i32
  }
  func.func @transform_22(%arg0: i32) -> (i32, i32) {
    %c0_i32 = arith.constant 0 : i32
    %c0_i32_0 = arith.constant 0 : i32
    %c0_i32_1 = arith.constant 0 : i32
    return %c0_i32, %c0_i32_0 : i32, i32
  }
  func.func @transform_23(%arg0: i32) -> (i32, i32) {
    %c0_i32 = arith.constant 0 : i32
    %c0_i32_0 = arith.constant 0 : i32
    %c0_i32_1 = arith.constant 0 : i32
    return %c0_i32, %c0_i32_0 : i32, i32
  }
  func.func @transform_24(%arg0: i32) -> (i32, i32, i32) {
    %c0_i32 = arith.constant 0 : i32
    %c0_i32_0 = arith.constant 0 : i32
    %c0_i32_1 = arith.constant 0 : i32
    return %arg0, %c0_i32, %c0_i32_0 : i32, i32, i32
  }
  func.func @transform_25(%arg0: i32) -> (i32, i32, i32, i32) {
    %c0_i32 = arith.constant 0 : i32
    %c0_i32_0 = arith.constant 0 : i32
    %c0_i32_1 = arith.constant 0 : i32
    %c0_i32_2 = arith.constant 0 : i32
    return %c0_i32, %arg0, %c0_i32_0, %c0_i32_1 : i32, i32, i32, i32
  }
}

</mosaic_0001>

<bundles_post_ra>
// kernel: seq2seq_forward.9
= control target key start
LH: loop header
LB: loop body
LE: loop exit
PB: predicated region body
PF: predicated region fallthrough
CT: control target
= control target key end

     0   :  { %vm27_vm0 = vcmask 261120   ;;  %s190_s1 = inlined_call_operand.vmem [shape: f32[32,128], index: 1, kind: input, shape index: {}]   ;;  %s191_s0 = inlined_call_operand.vmem [shape: f32[16,32], index: 0, kind: input, shape index: {}]   ;;  %s192_s2 = inlined_call_operand.vmem [shape: f32[1,128], index: 2, kind: input, shape index: {}]   ;;  %s193_s3 = inlined_call_operand.vmem [shape: f32[16,128], index: 3, kind: output, shape index: {}]  }
   0x1   :  { %v16_v0 = vld [vmem:[%s190_s1] sm:$0xff]  ;;  %v17_v1 = vld [vmem:[%s190_s1 + $0x8] sm:$0xff]  ;;  %v18_v2 = vld [vmem:[%s190_s1 + $0x10] sm:$0xff] }
   0x2   :  { %v135_v3 = vpack.c.bf16 %v17_v1, %v16_v0  ;;  %v19_v4 = vld [vmem:[%s190_s1 + $0x18] sm:$0xff]  ;;  %v14_v5 = vld [vmem:[%s191_s0] sm:$0xff]  ;;  %v15_v7 = vld [vmem:[%s191_s0 + $0x8] sm:$0xff] }
   0x3   :  { %v139_v6 = vpack.c.bf16 %v19_v4, %v18_v2  ;;  %132 = vmatprep.mubr.msk.f32.mxu0 %vm27_vm0, %v14_v5  ;;  %v115_v8 = vld [vmem:[%s192_s2] ss:$0 sm:$0xff] }
   0x4   :  { %136 = vmatprep.subr.bf16.mxu0 %v135_v3 }
   0x5   :  { %138 = vmatpush3.bf16.msra.mxu0 %v135_v3 }
   0x6   :  { %140 = vmatprep.subr.bf16.mxu0 %v139_v6 }
   0x9   :  { %142 = vmatpush3.bf16.msra.mxu0 %v139_v6 }
   0xc   :  { %133 = vmatmul.mubr.msk.f32.vlgmr.msra.gmra.mrb[0].mxu0 %vm27_vm0, %v15_v7 }
  0xdf   :  { %v134_v9 = vpop.f32.mrb[0].mxu0 }
  0xe0   :  { %v106_v10 = vadd.f32 %v134_v9, %v115_v8  ;;  %v100_v11 = vpop.f32.mrb[1].mxu0 }
  0xe1   :  { %v101_v12 = vadd.f32 %v115_v8, %v100_v11 }
  0xe2   :  { %110 = vst [vmem:[%s193_s3 + $0x8] sm:$0xff] %v106_v10 }
  0xe3   :  { %109 = vst [vmem:[%s193_s3] sm:$0xff] %v101_v12 }

// kernel: seq2seq_forward.5
= control target key start
LH: loop header
LB: loop body
LE: loop exit
PB: predicated region body
PF: predicated region fallthrough
CT: control target
= control target key end

     0   :  { %s2622_s29 = smov 0   ;;  %s2878_s0 = inlined_call_operand.vmem [shape: f32[2,9,32], index: 0, kind: input, shape index: {}]   ;;  %s2879_s1 = inlined_call_operand.vmem [shape: f32[2,1,9], index: 1, kind: input, shape index: {}]   ;;  %s2880_s2 = inlined_call_operand.vmem [shape: f32[32,96], index: 2, kind: input, shape index: {}]   ;;  %s2881_s3 = inlined_call_operand.vmem [shape: f32[1,96], index: 3, kind: input, shape index: {}]   ;;  %s2882_s4 = inlined_call_operand.vmem [shape: f32[32,32], index: 4, kind: input, shape index: {}]   ;;  %s2883_s5 = inlined_call_operand.vmem [shape: f32[1,32], index: 5, kind: input, shape index: {}]   ;;  %s2884_s6 = inlined_call_operand.vmem [shape: f32[1,32], index: 6, kind: input, shape index: {}]   ;;  %s2885_s7 = inlined_call_operand.vmem [shape: f32[1,32], index: 7, kind: input, shape index: {}]   ;;  %s2886_s8 = inlined_call_operand.vmem [shape: f32[32,64], index: 8, kind: input, shape index: {}]   ;;  %s2887_s9 = inlined_call_operand.vmem [shape: f32[1,64], index: 9, kind: input, shape index: {}]   ;;  %s2888_s10 = inlined_call_operand.vmem [shape: f32[64,32], index: 10, kind: input, shape index: {}]   ;;  %s2889_s11 = inlined_call_operand.vmem [shape: f32[1,32], index: 11, kind: input, shape index: {}]   ;;  %s2890_s12 = inlined_call_operand.vmem [shape: f32[1,32], index: 12, kind: input, shape index: {}]   ;;  %s2891_s13 = inlined_call_operand.vmem [shape: f32[1,32], index: 13, kind: input, shape index: {}]   ;;  %s2892_s14 = inlined_call_operand.vmem [shape: f32[2,9,32], index: 14, kind: output, shape index: {}]  }
   0x1 LB: > { %s2094_s30 = sadd.s32 4294967295, %s2533_s29   ;;  %p2098_p0 = scmp.ge.s32.totalorder %s2533_s29, 1  ;;  %s2533_s29 = sphi %s2622_s29, %s24_s29  }
   0x2   : > { %p420_p1 = scmp.lt.s32.totalorder %s2533_s29, 3 }
   0x4   : > { %p421_p2 = pnand %p2098_p0, %p420_p1 }
   0x5   : > { %v485_v0 = vld [vmem:[%s2880_s2] sm:$0xff] (!%p421_p2)  ;;  %v486_v1 = vld [vmem:[%s2880_s2 + $0x8] sm:$0xff] (!%p421_p2)  ;;  %v487_v2 = vld [vmem:[%s2880_s2 + $0x10] sm:$0xff] (!%p421_p2)  ;;  %p469_p3 = scmp.lt.s32.totalorder (!%p421_p2), %s2094_s30, 1  ;;  %vm496_vm0 = vcmask (!%p421_p2), 261120   ;;  %vm596_vm1 = vcmask (!%p421_p2), 64512  }
   0x6   : > { %424 = sbr.rel (%p421_p2) target bundleno = 2939 (0xb7b), region = 76  ;;  %v2341_v3 = vpack.c.bf16 (!%p421_p2), %v486_v1, %v485_v0  ;;  %v488_v4 = vld [vmem:[%s2880_s2 + $0x18] sm:$0xff] (!%p421_p2)  ;;  %v2103_v8 = vld [vmem:[%s2881_s3] ss:$0 sm:$0xff] (!%p421_p2)  ;;  %s2535_s15 = smov (!%p421_p2), 96   ;;  %vm2678_vm2 = vmpackc.low (!%p421_p2), %vm596_vm1, %vm596_vm1  ;;  %vm686_vm3 = vcmask (!%p421_p2), 65536  }
   0x7   : > { %v2345_v5 = vpack.c.bf16 (!%p421_p2), %v488_v4, %v487_v2  ;;  %s2536_s16 = smov (!%p421_p2), 120   ;;  %s2537_s17 = smov (!%p421_p2), 88   ;;  %vm682_vm4 = vcmask (!%p421_p2), 72704   ;;  %vm719_vm5 = vcmask (!%p421_p2), 1040384   ;;  %vm2546_vm6 = vmmov (!%p421_p2), 1  }
   0x8   : > { %2342 = vmatprep.subr.bf16.mxu1 (!%p421_p2), %v2341_v3  ;;  %s2538_s18 = smov (!%p421_p2), 80   ;;  %s2539_s19 = smov (!%p421_p2), 112   ;;  %vm2736_vm7 = vmpackc.low (!%p421_p2), %vm719_vm5, %vm2546_vm6  ;;  %vm1750_vm8 = vcmask (!%p421_p2), 253952   ;;  %vm1900_vm9 = vcmask (!%p421_p2), 523264  }
   0x9   : > { %2344 = vmatpush3.bf16.msra.mxu1 (!%p421_p2), %v2341_v3  ;;  %s2540_s24 = smov (!%p421_p2), 56   ;;  %s2541_s25 = smov (!%p421_p2), 72  }
   0xa   : > { %2346 = vmatprep.subr.bf16.mxu1 (!%p421_p2), %v2345_v5  ;;  %s2543_s27 = smov (!%p421_p2), 104   ;;  %s2544_s28 = smov (!%p421_p2), 48  }
   0xd   : > { %s2898_s30 = smov (!%p469_p3, %s2094_s30), 1  ;;  %2348 = vmatpush3.bf16.msra.mxu1 %v2345_v5 }
   0xe   : > { %s2156_s23 = sshll.u32 %s2898_s30, 4  ;;  %s476_s22 = scalar_lea.vmem %s2879_s1, %s2898_s30 }
   0xf   : > { %s473_s26 = scalar_lea.vmem %s2878_s0, %s2156_s23  ;;  %v2704_v33 = vld [vmem:[%s476_s22] ss:$0 sm:$0xff] }
  0x10   : > { %v2650_v6 = vld [vmem:[%s473_s26] sm:$0xff]  ;;  %v2654_v7 = vld [vmem:[%s473_s26 + $0x8] sm:$0x1]  ;;  %s2542_s26 = smov 64  }
  0x11   : > { %2232 = vmatprep.mubr.msk.f32.mxu1 %vm496_vm0, %v2650_v6 }
  0x12   : > { %2233 = vmatmul.mubr.msk.f32.vlgmr.msra.gmra.mrb[0].mxu1 %vm496_vm0, %v2654_v7 }
  0xe5   : > { %v2234_v9 = vpop.f32.mrb[0].mxu1 }
  0xe6   : > { %v575_v10 = vadd.f32 %v2234_v9, %v2103_v8  ;;  %v569_v11 = vpop.f32.mrb[1].mxu1 }
  0xe7   : > { %v570_v12 = vadd.f32 %v2103_v8, %v569_v11 }
  0xe8   : > { %v2669_v15 = vmul.f32 0.35355338, %v575_v10 }
  0xe9   : > { %v2661_v13 = vpack.i.bf16 %v575_v10, %v570_v12  ;;  %v2663_v14 = vmul.f32 0.35355338, %v570_v12 }
  0xeb   : > { %2448 = vrot.lane.b32.xlu0 %v2661_v13, %s2535_s15  ;;  %797 = vrot.lane.b32.xlu1 %v2663_v14, %s2536_s16  ;;  %s2545_s15 = smov 40  }
  0xec   : > { %2239 = vmatprep.mubr.msk.f32.mxu1 %vm596_vm1, %v2663_v14 }
  0xef   : > { %2453 = vrot.lane.b32.xlu0 %v2661_v13, %s2537_s17  ;;  %799 = vrot.lane.b32.xlu1 %v2669_v15, %s2536_s16 }
  0xf3   : > { %2458 = vrot.lane.b32.xlu0 %v2661_v13, %s2538_s18  ;;  %1162 = vrot.lane.b32.xlu1 %v2663_v14, %s2539_s19 }
  0xf7   : > { %1164 = vrot.lane.b32.xlu0 %v2669_v15, %s2539_s19 }
 0x15d   : > { %v2449_v16 = vpop.permute.xlu0 %2448  ;;  %v798_v26 = vpop.permute.xlu1 %797 }
 0x15e   : > { %v2451_v17 = vunpack.i.h.bf16 %v2449_v16  ;;  %v2450_v18 = vunpack.i.l.bf16 %v2449_v16 }
 0x160   : > { %v2349_v20 = vpack.c.bf16 %v2451_v17, %v2450_v18 }
 0x161   : > { %v2454_v21 = vpop.permute.xlu0 %2453  ;;  %v800_v30 = vpop.permute.xlu1 %799 }
 0x162   : > { %v2456_v22 = vunpack.i.h.bf16 %v2454_v21  ;;  %v2455_v23 = vunpack.i.l.bf16 %v2454_v21  ;;  %2351 = vmatprep.subr.msk.bf16.mxu1 %vm2678_vm2, %v2349_v20 }
 0x163   : > { %2354 = vmatpush3.bf16.xpose.msk.msra.mxu1 %vm2678_vm2, %v2349_v20 }
 0x164   : > { %v2361_v24 = vpack.c.bf16 %v2456_v22, %v2455_v23 }
 0x165   : > { %v2459_v25 = vpop.permute.xlu0 %2458  ;;  %v1163_v31 = vpop.permute.xlu1 %1162 }
 0x166   : > { %v2461_v27 = vunpack.i.h.bf16 %v2459_v25  ;;  %v2460_v28 = vunpack.i.l.bf16 %v2459_v25  ;;  %2363 = vmatprep.subr.msk.bf16.mxu1 %vm2678_vm2, %v2361_v24 }
 0x168   : > { %v2373_v29 = vpack.c.bf16 %v2461_v27, %v2460_v28 }
 0x169   : > { %v1165_v32 = vpop.permute.xlu0 %1164 }
 0x16a   : > { %2240 = vmatmul.mubr.msk.f32.vlgmr.msra.gmra.mrb[2].mxu1 %vm596_vm1, %v2669_v15 }
 0x16b   : > { %2366 = vmatpush3.bf16.xpose.msk.msra.mxu1 %vm2678_vm2, %v2361_v24  ;;  %2253 = vmatprep.mubr.msk.f32.mxu1 %vm596_vm1, %v798_v26 }
 0x16c   : > { %2375 = vmatprep.subr.msk.bf16.mxu1 %vm2678_vm2, %v2373_v29 }
 0x172   : > { %2254 = vmatmul.mubr.msk.f32.vlgmr.msra.gmra.mrb[4].mxu1 %vm596_vm1, %v800_v30 }
 0x173   : > { %2378 = vmatpush3.bf16.xpose.msk.msra.mxu1 %vm2678_vm2, %v2373_v29  ;;  %2277 = vmatprep.mubr.msk.f32.mxu1 %vm596_vm1, %v1163_v31 }
 0x17a   : > { %2278 = vmatmul.mubr.msk.f32.vlgmr.msra.gmra.mrb[6].mxu1 %vm596_vm1, %v1165_v32 }
 0x23d   : > { %v2241_v34 = vpop.f32.mrb[2].mxu1 }
 0x23e   : > { %v679_v35 = vadd.f32 %v2241_v34, %v2704_v33  ;;  %v673_v36 = vpop.f32.mrb[3].mxu1 }
 0x23f   : > { %v674_v37 = vadd.f32 %v2704_v33, %v673_v36 }
 0x240   : > { %v687_v38 = vsel %vm686_vm3, %v679_v35, -inf }
 0x241   : > { %688 = vmax.xlane.f32.xlu0 %v687_v38  ;;  %v683_v39 = vsel %vm682_vm4, %v674_v37, -inf }
 0x242   : > { %684 = vmax.xlane.f32.xlu1 %v683_v39 }
 0x245   : > { %v2255_v40 = vpop.f32.mrb[4].mxu1 }
 0x246   : > { %v885_v41 = vadd.f32 %v2255_v40, %v2704_v33  ;;  %v879_v42 = vpop.f32.mrb[5].mxu1 }
 0x247   : > { %v880_v43 = vadd.f32 %v2704_v33, %v879_v42 }
 0x248   : > { %v891_v44 = vsel %vm686_vm3, %v885_v41, -inf }
 0x249   : > { %892 = vmax.xlane.f32.xlu1 %v891_v44  ;;  %v888_v45 = vsel %vm682_vm4, %v880_v43, -inf }
 0x24a   : > { %889 = vmax.xlane.f32.xlu0 %v888_v45 }
 0x24d   : > { %v2279_v46 = vpop.f32.mrb[6].mxu1 }
 0x24e   : > { %v1244_v47 = vpop.f32.mrb[7].mxu1  ;;  %v1250_v5 = vadd.f32 %v2279_v46, %v2704_v33 }
 0x24f   : > { %v1245_v4 = vadd.f32 %v2704_v33, %v1244_v47 }
 0x250   : > { %v1256_v9 = vsel %vm686_vm3, %v1250_v5, -inf }
 0x251   : > { %v1253_v8 = vsel %vm682_vm4, %v1245_v4, -inf }
 0x2ce   : > { %v689_v48 = vpop.xlane.xlu0 %688 }
 0x2cf   : > { %v691_v49 = vsub.f32 %v679_v35, %v689_v48  ;;  %v685_v50 = vpop.xlane.xlu1 %684  ;;  %v579_v48 = vld [vmem:[%s2882_s4 + $0x8] sm:$0xff] }
 0x2d0   : > { %v690_v51 = vsub.f32 %v674_v37, %v685_v50 }
 0x2d1   : > { %v694_v52 = vmul.f32 1.442695, %v691_v49  ;;  %v578_v49 = vld [vmem:[%s2882_s4] sm:$0xff] }
 0x2d2   : > { %v692_v53 = vmul.f32 1.442695, %v690_v51 }
 0x2d3   : > { %2487 = vpow2.f32 %v694_v52 }
 0x2d4   : > { %2489 = vpow2.f32 %v692_v53 }
 0x2d6   : > { %v893_v54 = vpop.xlane.xlu1 %892 }
 0x2d7   : > { %v895_v55 = vsub.f32 %v885_v41, %v893_v54  ;;  %v890_v56 = vpop.xlane.xlu0 %889 }
 0x2d8   : > { %v894_v57 = vsub.f32 %v880_v43, %v890_v56 }
 0x2d9   : > { %v898_v58 = vmul.f32 1.442695, %v895_v55 }
 0x2da   : > { %v896_v59 = vmul.f32 1.442695, %v894_v57 }
 0x2db   : > { %2491 = vpow2.f32 %v898_v58 }
 0x2dc   : > { %2493 = vpow2.f32 %v896_v59 }
 0x2dd   : > { %v2714_v60 = vpop.eup %2487 }
 0x2de   : > { %v2490_v61 = vpop.eup %2489  ;;  %v699_v62 = vsel %vm686_vm3, %v2714_v60, 0.0 }
 0x2df   : > { %700 = vadd.xlane.f32.xlu1 %v699_v62  ;;  %v696_v63 = vsel %vm682_vm4, %v2490_v61, 0.0 }
 0x2e0   : > { %697 = vadd.xlane.f32.xlu0 %v696_v63 }
 0x2e5   : > { %v2719_v0 = vpop.eup %2491 }
 0x2e6   : > { %v2494_v1 = vpop.eup %2493  ;;  %v903_v2 = vsel %vm686_vm3, %v2719_v0, 0.0 }
 0x2e7   : > { %904 = vadd.xlane.f32.xlu1 %v903_v2  ;;  %v900_v3 = vsel %vm682_vm4, %v2494_v1, 0.0 }
 0x2e8   : > { %901 = vadd.xlane.f32.xlu0 %v900_v3 }
 0x2f8   : > { %2468 = vrot.lane.b32.xlu1 %v2661_v13, %s2540_s24 }
 0x2fc   : > { %2473 = vrot.lane.b32.xlu1 %v2661_v13, %s2541_s25 }
 0x2fe   : > { %2463 = vrot.lane.b32.xlu0 %v2661_v13, %s2542_s26  ;;  %s481_s26 = scalar_lea.vmem %s2892_s14, %s2156_s23 }
 0x300   : > { %1450 = vrot.lane.b32.xlu1 %v2669_v15, %s2543_s27 }
 0x302   : > { %1448 = vrot.lane.b32.xlu0 %v2663_v14, %s2543_s27 }
 0x321   : > { %1254 = vmax.xlane.f32.xlu0 %v1253_v8 }
 0x324   : > { %1257 = vmax.xlane.f32.xlu1 %v1256_v9 }
 0x335   : > { %2478 = vrot.lane.b32.xlu1 %v2661_v13, %s2544_s28 }
 0x339   : > { %2483 = vrot.lane.b32.xlu1 %v2661_v13, %s2545_s15 }
 0x36c   : > { %v701_v11 = vpop.xlane.xlu1 %700 }
 0x36d   : > { %v698_v10 = vpop.xlane.xlu0 %697 }
 0x36e   : > { %2495 = vrcp.f32 %v698_v10 }
 0x36f   : > { %2497 = vrcp.f32 %v701_v11 }
 0x374   : > { %v905_v12 = vpop.xlane.xlu1 %904 }
 0x375   : > { %v902_v14 = vpop.xlane.xlu0 %901 }
 0x376   : > { %2499 = vrcp.f32 %v902_v14 }
 0x377   : > { %2501 = vrcp.f32 %v905_v12 }
 0x378   : > { %v2496_v15 = vpop.eup %2495  ;;  %v2469_v16 = vpop.permute.xlu1 %2468 }
 0x379   : > { %v2464_v17 = vpop.permute.xlu0 %2463  ;;  %v706_v18 = vmul.f32 %v2496_v15, %v2490_v61  ;;  %v2471_v20 = vunpack.i.h.bf16 %v2469_v16  ;;  %v2470_v21 = vunpack.i.l.bf16 %v2469_v16  ;;  %v2498_v26 = vpop.eup %2497 }
 0x37a   : > { %v2466_v22 = vunpack.i.h.bf16 %v2464_v17  ;;  %v2465_v23 = vunpack.i.l.bf16 %v2464_v17  ;;  %v707_v34 = vmul.f32 %v2498_v26, %v2714_v60  ;;  %v581_v26 = vld [vmem:[%s2882_s4 + $0x18] sm:$0xff] }
 0x37b   : > { %2246 = vmatprep.mubr.msk.f32.mxu0 %vm682_vm4, %v706_v18  ;;  %v2367_v30 = vpack.c.bf16 %v2471_v20, %v2470_v21 }
 0x37c   : > { %v2474_v24 = vpop.permute.xlu1 %2473  ;;  %v2355_v25 = vpack.c.bf16 %v2466_v22, %v2465_v23 }
 0x37d   : > { %v2476_v27 = vunpack.i.h.bf16 %v2474_v24  ;;  %v2475_v28 = vunpack.i.l.bf16 %v2474_v24  ;;  %v1449_v29 = vpop.permute.xlu0 %1448 }
 0x37e   : > { %2357 = vmatprep.subr.msk.bf16.mxu0 %vm2736_vm7, %v2355_v25  ;;  %2296 = vmatprep.mubr.msk.f32.mxu1 %vm596_vm1, %v1449_v29 }
 0x37f   : > { %v2385_v31 = vpack.c.bf16 %v2476_v27, %v2475_v28  ;;  %2360 = vmatpush3.bf16.msk.msra.mxu0 %vm2736_vm7, %v2355_v25 }
 0x380   : > { %v2500_v32 = vpop.eup %2499  ;;  %2369 = vmatprep.subr.msk.bf16.mxu0 %vm2736_vm7, %v2367_v30  ;;  %v1451_v38 = vpop.permute.xlu1 %1450 }
 0x381   : > { %v2502_v35 = vpop.eup %2501  ;;  %2387 = vmatprep.subr.msk.bf16.mxu1 %vm2678_vm2, %v2385_v31  ;;  %v910_v36 = vmul.f32 %v2500_v32, %v2494_v1 }
 0x382   : > { %2247 = vmatmul.mubr.msk.f32.vlgmr.msra.gmra.mrb[0].mxu0 %vm682_vm4, %v707_v34  ;;  %2390 = vmatpush3.bf16.xpose.msk.msra.mxu1 %vm2678_vm2, %v2385_v31  ;;  %v911_v37 = vmul.f32 %v2502_v35, %v2719_v0 }
 0x383   : > { %2372 = vmatpush3.bf16.msk.msra.mxu0 %vm2736_vm7, %v2367_v30  ;;  %2260 = vmatprep.mubr.msk.f32.mxu0 %vm682_vm4, %v910_v36  ;;  %v2143_v36 = vld [vmem:[%s2883_s5] ss:$0 sm:$0xff] }
 0x384   : > { %2263 = vmatprep.subr.mxu0 %v579_v48 }
 0x386   : > { %2261 = vmatmul.mubr.msk.f32.vlgmr.msra.gmra.mrb[2].mxu0 %vm682_vm4, %v911_v37 }
 0x387   : > { %2264 = vmatpush3.msra.mxu0 %v579_v48 }
 0x388   : > { %2268 = vmatprep.subr.mxu0 %v578_v49 }
 0x389   : > { %2297 = vmatmul.mubr.msk.f32.vlgmr.msra.gmra.mrb[8].mxu1 %vm596_vm1, %v1451_v38 }
 0x3ae   : > { %v1255_v39 = vpop.xlane.xlu0 %1254 }
 0x3af   : > { %v1259_v40 = vsub.f32 %v1245_v4, %v1255_v39  ;;  %v580_v4 = vld [vmem:[%s2882_s4 + $0x10] sm:$0xff] }
 0x3b1   : > { %v1261_v41 = vmul.f32 1.442695, %v1259_v40  ;;  %v1258_v42 = vpop.xlane.xlu1 %1257 }
 0x3b2   : > { %v1260_v43 = vsub.f32 %v1250_v5, %v1258_v42 }
 0x3b3   : > { %2503 = vpow2.f32 %v1261_v41 }
 0x3b4   : > { %v1263_v19 = vmul.f32 1.442695, %v1260_v43 }
 0x3b5   : > { %v2479_v51 = vpop.permute.xlu1 %2478 }
 0x3b6   : > { %2505 = vpow2.f32 %v1263_v19  ;;  %v2481_v55 = vunpack.i.h.bf16 %v2479_v51  ;;  %v2480_v56 = vunpack.i.l.bf16 %v2479_v51  ;;  %v1791_v51 = vld [vmem:[%s2886_s8] sm:$0xff] }
 0x3b8   : > { %v2379_v59 = vpack.c.bf16 %v2481_v55, %v2480_v56  ;;  %v1794_v55 = vld [vmem:[%s2886_s8 + $0x18] sm:$0xff] }
 0x3b9   : > { %v2484_v2 = vpop.permute.xlu1 %2483 }
 0x3ba   : > { %v2486_v5 = vunpack.i.h.bf16 %v2484_v2  ;;  %v2485_v8 = vunpack.i.l.bf16 %v2484_v2 }
 0x3bc   : > { %v2391_v11 = vpack.c.bf16 %v2486_v5, %v2485_v8 }
 0x3bd   : > { %v2504_v44 = vpop.eup %2503 }
 0x3be   : > { %v1265_v45 = vsel %vm682_vm4, %v2504_v44, 0.0 }
 0x3bf   : > { %1266 = vadd.xlane.f32.xlu0 %v1265_v45 }
 0x3c0   : > { %v2506_v46 = vpop.eup %2505 }
 0x3c1   : > { %v1268_v47 = vsel %vm686_vm3, %v2506_v46, 0.0 }
 0x3c3   : > { %1269 = vadd.xlane.f32.xlu0 %v1268_v47 }
 0x44c   : > { %v1267_v50 = vpop.xlane.xlu0 %1266 }
 0x44d   : > { %2507 = vrcp.f32 %v1267_v50 }
 0x450   : > { %v1270_v53 = vpop.xlane.xlu0 %1269 }
 0x451   : > { %2509 = vrcp.f32 %v1270_v53 }
 0x455   : > { %v2248_v52 = vpop.f32.mrb[0].mxu0 }
 0x456   : > { %v788_v54 = vpop.f32.mrb[1].mxu0 }
 0x457   : > { %v2508_v1 = vpop.eup %2507 }
 0x458   : > { %v1275_v10 = vmul.f32 %v2508_v1, %v2504_v44 }
 0x459   : > { %v2262_v57 = vpop.f32.mrb[2].mxu0 }
 0x45a   : > { %v991_v58 = vpop.f32.mrb[3].mxu0 }
 0x45b   : > { %2265 = vmatprep.mubr.msk.f32.mxu0 %vm596_vm1, %v991_v58  ;;  %v2510_v3 = vpop.eup %2509  ;;  %v1886_v58 = vld [vmem:[%s2888_s10 + $0x8] sm:$0xff] }
 0x45c   : > { %2266 = vmatmul.mubr.msk.f32.vlgmr.msra.gmra.mrb[4].mxu0 %vm596_vm1, %v2262_v57  ;;  %v2298_v60 = vpop.f32.mrb[8].mxu1  ;;  %v1885_v57 = vld [vmem:[%s2888_s10] sm:$0xff] }
 0x45d   : > { %2269 = vmatpush3.msra.mxu0 %v578_v49  ;;  %2270 = vmatprep.mubr.msk.f32.mxu0 %vm596_vm1, %v788_v54  ;;  %v1530_v61 = vpop.f32.mrb[9].mxu1  ;;  %v1536_v63 = vadd.f32 %v2298_v60, %v2704_v33  ;;  %v1793_v54 = vld [vmem:[%s2886_s8 + $0x10] sm:$0xff]  ;;  %v2405_v60 = vpack.c.bf16 %v1886_v58, %v1885_v57 }
 0x45e   : > { %2381 = vmatprep.subr.msk.bf16.mxu0 %vm2736_vm7, %v2379_v59  ;;  %v1531_v62 = vadd.f32 %v2704_v33, %v1530_v61  ;;  %v1276_v33 = vmul.f32 %v2510_v3, %v2506_v46  ;;  %v2401_v56 = vpack.c.bf16 %v1794_v55, %v1793_v54  ;;  %v1888_v61 = vld [vmem:[%s2888_s10 + $0x18] sm:$0xff]  ;;  %v2152_v54 = vld [vmem:[%s2890_s12] ss:$0 sm:$0xff] }
 0x45f   : > { %v1542_v9 = vsel %vm686_vm3, %v1536_v63, -inf }
 0x460   : > { %v1539_v0 = vsel %vm682_vm4, %v1531_v62, -inf }
 0x461   : > { %1540 = vmax.xlane.f32.xlu0 %v1539_v0  ;;  %v1890_v0 = vld [vmem:[%s2888_s10 + $0x28] sm:$0xff] }
 0x464   : > { %2271 = vmatmul.mubr.msk.f32.vlgmr.msra.gmra.mrb[4].mxu0 %vm596_vm1, %v2248_v52  ;;  %v1792_v52 = vld [vmem:[%s2886_s8 + $0x8] sm:$0xff] }
 0x465   : > { %2384 = vmatpush3.bf16.msk.msra.mxu0 %vm2736_vm7, %v2379_v59  ;;  %1543 = vmax.xlane.f32.xlu0 %v1542_v9  ;;  %v2397_v53 = vpack.c.bf16 %v1792_v52, %v1791_v51  ;;  %v1887_v59 = vld [vmem:[%s2888_s10 + $0x10] sm:$0xff] }
 0x466   : > { %2284 = vmatprep.mubr.msk.f32.mxu0 %vm682_vm4, %v1275_v10  ;;  %2287 = vmatprep.subr.mxu0 %v580_v4 }
 0x467   : > { %2398 = vmatprep.subr.bf16.mxu1 %v2397_v53 }
 0x468   : > { %2285 = vmatmul.mubr.msk.f32.vlgmr.msra.gmra.mrb[6].mxu0 %vm682_vm4, %v1276_v33  ;;  %2400 = vmatpush3.bf16.msra.mxu1 %v2397_v53  ;;  %v2144_v33 = vld [vmem:[%s2884_s6] ss:$0 sm:$0xff] }
 0x469   : > { %2288 = vmatpush3.msra.mxu0 %v580_v4  ;;  %2402 = vmatprep.subr.bf16.mxu1 %v2401_v56 }
 0x46a   : > { %2393 = vmatprep.subr.msk.bf16.mxu0 %vm2736_vm7, %v2391_v11 }
 0x46c   : > { %2404 = vmatpush3.bf16.msra.mxu1 %v2401_v56  ;;  %v2153_v56 = vld [vmem:[%s2891_s13] ss:$0 sm:$0xff] }
 0x4ee   : > { %v1541_v12 = vpop.xlane.xlu0 %1540 }
 0x4ef   : > { %v1545_v14 = vsub.f32 %v1531_v62, %v1541_v12  ;;  %v2409_v62 = vpack.c.bf16 %v1888_v61, %v1887_v59  ;;  %v2145_v12 = vld [vmem:[%s2885_s7] ss:$0 sm:$0xff] }
 0x4f1   : > { %v1547_v15 = vmul.f32 1.442695, %v1545_v14 }
 0x4f2   : > { %v1544_v16 = vpop.xlane.xlu0 %1543 }
 0x4f3   : > { %2511 = vpow2.f32 %v1547_v15  ;;  %v1546_v17 = vsub.f32 %v1536_v63, %v1544_v16  ;;  %v1889_v63 = vld [vmem:[%s2888_s10 + $0x20] sm:$0xff] }
 0x4f4   : > { %v2413_v1 = vpack.c.bf16 %v1890_v0, %v1889_v63 }
 0x4f5   : > { %v1549_v18 = vmul.f32 1.442695, %v1546_v17 }
 0x4f7   : > { %2513 = vpow2.f32 %v1549_v18 }
 0x4fd   : > { %v2512_v20 = vpop.eup %2511 }
 0x4fe   : > { %v1551_v21 = vsel %vm682_vm4, %v2512_v20, 0.0 }
 0x4ff   : > { %1552 = vadd.xlane.f32.xlu0 %v1551_v21  ;;  %v1891_v21 = vld [vmem:[%s2888_s10 + $0x30] sm:$0xff] }
 0x501   : > { %v2514_v22 = vpop.eup %2513 }
 0x502   : > { %v1554_v23 = vsel %vm686_vm3, %v2514_v22, 0.0 }
 0x503   : > { %1555 = vadd.xlane.f32.xlu0 %v1554_v23 }
 0x53b   : > { %v2286_v24 = vpop.f32.mrb[6].mxu0 }
 0x53c   : > { %v1356_v25 = vpop.f32.mrb[7].mxu0 }
 0x53d   : > { %2289 = vmatprep.mubr.msk.f32.mxu0 %vm596_vm1, %v1356_v25 }
 0x53e   : > { %2290 = vmatmul.mubr.msk.f32.vlgmr.msra.gmra.mrb[4].mxu0 %vm596_vm1, %v2286_v24  ;;  %v2146_v24 = vld [vmem:[%s2887_s9] ss:$0 sm:$0xff] }
 0x53f   : > { %2396 = vmatpush3.bf16.msk.msra.mxu0 %vm2736_vm7, %v2391_v11 }
 0x540   : > { %2306 = vmatprep.subr.mxu0 %v581_v26 }
 0x58c   : > { %v1553_v27 = vpop.xlane.xlu0 %1552 }
 0x58d   : > { %2515 = vrcp.f32 %v1553_v27 }
 0x590   : > { %v1556_v28 = vpop.xlane.xlu0 %1555 }
 0x591   : > { %2517 = vrcp.f32 %v1556_v28 }
 0x597   : > { %v2516_v29 = vpop.eup %2515 }
 0x598   : > { %v1561_v30 = vmul.f32 %v2516_v29, %v2512_v20 }
 0x59a   : > { %2303 = vmatprep.mubr.msk.f32.mxu0 %vm682_vm4, %v1561_v30 }
 0x59b   : > { %v2518_v31 = vpop.eup %2517 }
 0x59c   : > { %v1562_v32 = vmul.f32 %v2518_v31, %v2514_v22  ;;  %v1892_v22 = vld [vmem:[%s2888_s10 + $0x38] sm:$0xff]  ;;  %v2149_v31 = vld [vmem:[%s2889_s11] ss:$0 sm:$0xff] }
 0x59d   : > { %v2417_v23 = vpack.c.bf16 %v1892_v22, %v1891_v21 }
 0x59e   : > { %2304 = vmatmul.mubr.msk.f32.vlgmr.msra.gmra.mrb[8].mxu0 %vm682_vm4, %v1562_v32 }
 0x59f   : > { %2307 = vmatpush3.msra.mxu0 %v581_v26 }
 0x5a0   : > { %2406 = vmatprep.subr.bf16.mxu0 %v2405_v60 }
 0x671   : > { %v2305_v34 = vpop.f32.mrb[8].mxu0 }
 0x672   : > { %v1642_v35 = vpop.f32.mrb[9].mxu0 }
 0x673   : > { %2308 = vmatprep.mubr.msk.f32.mxu0 %vm596_vm1, %v1642_v35 }
 0x674   : > { %2309 = vmatmul.mubr.msk.f32.vlgmr.msra.gmra.mrb[4].mxu0 %vm596_vm1, %v2305_v34 }
 0x675   : > { %2408 = vmatpush3.bf16.msra.mxu0 %v2405_v60 }
 0x676   : > { %2410 = vmatprep.subr.bf16.mxu0 %v2409_v62 }
 0x679   : > { %2412 = vmatpush3.bf16.msra.mxu0 %v2409_v62 }
 0x67a   : > { %2414 = vmatprep.subr.bf16.mxu0 %v2413_v1 }
 0x67d   : > { %2416 = vmatpush3.bf16.msra.mxu0 %v2413_v1 }
 0x67e   : > { %2418 = vmatprep.subr.bf16.mxu0 %v2417_v23 }
 0x681   : > { %2420 = vmatpush3.bf16.msra.mxu0 %v2417_v23 }
 0x747   : > { %v2310_v13 = vpop.f32.mrb[4].mxu0 }
 0x748   : > { %v1735_v37 = vadd.f32 %v2310_v13, %v2654_v7  ;;  %v1723_v38 = vpop.f32.mrb[5].mxu0 }
 0x749   : > { %v1734_v39 = vadd.f32 %v1723_v38, %v2650_v6 }
 0x74a   : > { %v1744_v40 = vadd.f32 %v2143_v36, %v1735_v37 }
 0x74b   : > { %v1743_v41 = vadd.f32 %v2143_v36, %v1734_v39 }
 0x74c   : > { %v1751_v42 = vsel %vm1750_vm8, %v1744_v40, 0.0 }
 0x74d   : > { %1752 = vadd.xlane.f32.xlu1 %v1751_v42  ;;  %v1747_v43 = vsel %vm496_vm0, %v1743_v41, 0.0 }
 0x74e   : > { %1748 = vadd.xlane.f32.xlu0 %v1747_v43 }
 0x7da   : > { %v1753_v19 = vpop.xlane.xlu1 %1752 }
 0x7db   : > { %v1756_v44 = vmul.f32 0.03125, %v1753_v19  ;;  %v1749_v45 = vpop.xlane.xlu0 %1748 }
 0x7dc   : > { %v1755_v46 = vmul.f32 0.03125, %v1749_v45 }
 0x7dd   : > { %v1758_v47 = vsub.f32 %v1744_v40, %v1756_v44 }
 0x7de   : > { %v1757_v48 = vsub.f32 %v1743_v41, %v1755_v46 }
 0x7df   : > { %v1760_v50 = vmul.f32 %v1758_v47, %v1758_v47 }
 0x7e0   : > { %v1759_v49 = vmul.f32 %v1757_v48, %v1757_v48 }
 0x7e1   : > { %v1764_v6 = vsel %vm1750_vm8, %v1760_v50, 0.0 }
 0x7e2   : > { %v1761_v7 = vsel %vm496_vm0, %v1759_v49, 0.0 }
 0x7e3   : > { %1762 = vadd.xlane.f32.xlu0 %v1761_v7 }
 0x7e7   : > { %1765 = vadd.xlane.f32.xlu0 %v1764_v6 }
 0x870   : > { %v1763_v2 = vpop.xlane.xlu0 %1762 }
 0x871   : > { %v1767_v3 = vmul.f32 0.03125, %v1763_v2 }
 0x873   : > { %v1769_v4 = vadd.f32 1e-05, %v1767_v3 }
 0x874   : > { %v1766_v5 = vpop.xlane.xlu0 %1765 }
 0x875   : > { %2519 = vrsqrt.f32 %v1769_v4  ;;  %v1768_v8 = vmul.f32 0.03125, %v1766_v5 }
 0x877   : > { %v1770_v9 = vadd.f32 1e-05, %v1768_v8 }
 0x879   : > { %2521 = vrsqrt.f32 %v1770_v9 }
 0x87f   : > { %v2520_v10 = vpop.eup %2519 }
 0x880   : > { %v1773_v11 = vmul.f32 %v2520_v10, %v1757_v48 }
 0x882   : > { %v1781_v14 = vmul.f32 %v2144_v33, %v1773_v11 }
 0x883   : > { %v2522_v15 = vpop.eup %2521 }
 0x884   : > { %v1774_v16 = vmul.f32 %v2522_v15, %v1758_v47  ;;  %v1789_v17 = vadd.f32 %v2145_v12, %v1781_v14 }
 0x886   : > { %v1782_v18 = vmul.f32 %v2144_v33, %v1774_v16  ;;  %2319 = vmatprep.mubr.msk.f32.mxu1 %vm496_vm0, %v1789_v17 }
 0x888   : > { %v1790_v20 = vadd.f32 %v2145_v12, %v1782_v18 }
 0x88a   : > { %2320 = vmatmul.mubr.msk.f32.vlgmr.msra.gmra.mrb[10].mxu1 %vm496_vm0, %v1790_v20 }
 0x95d   : > { %v2321_v25 = vpop.f32.mrb[10].mxu1 }
 0x95e   : > { %v1880_v26 = vadd.f32 %v2321_v25, %v2146_v24  ;;  %v1874_v27 = vpop.f32.mrb[11].mxu1 }
 0x95f   : > { %v1875_v28 = vadd.f32 %v2146_v24, %v1874_v27 }
 0x960   : > { %v1884_v30 = vmax.f32 %v1880_v26, 0.0 }
 0x961   : > { %v1883_v29 = vmax.f32 %v1875_v28, 0.0 }
 0x963   : > { %2338 = vmatprep.mubr.msk.f32.mxu0 %vm1900_vm9, %v1883_v29 }
 0x964   : > { %2339 = vmatmul.mubr.msk.f32.vlgmr.msra.gmra.mrb[10].mxu0 %vm1900_vm9, %v1884_v30 }
 0xa37   : > { %v2340_v32 = vpop.f32.mrb[10].mxu0 }
 0xa38   : > { %v1973_v34 = vpop.f32.mrb[11].mxu0  ;;  %v1979_v35 = vadd.f32 %v2340_v32, %v2149_v31 }
 0xa39   : > { %v1974_v13 = vadd.f32 %v2149_v31, %v1973_v34 }
 0xa3a   : > { %v1983_v38 = vadd.f32 %v1979_v35, %v1790_v20 }
 0xa3b   : > { %v1982_v36 = vadd.f32 %v1974_v13, %v1789_v17 }
 0xa3c   : > { %v1989_v39 = vsel %vm1750_vm8, %v1983_v38, 0.0 }
 0xa3d   : > { %v1986_v37 = vsel %vm496_vm0, %v1982_v36, 0.0 }
 0xa3e   : > { %1987 = vadd.xlane.f32.xlu0 %v1986_v37 }
 0xa42   : > { %1990 = vadd.xlane.f32.xlu0 %v1989_v39 }
 0xacb   : > { %v1988_v40 = vpop.xlane.xlu0 %1987 }
 0xacc   : > { %v1992_v41 = vmul.f32 0.03125, %v1988_v40 }
 0xace   : > { %v1994_v42 = vsub.f32 %v1982_v36, %v1992_v41 }
 0xacf   : > { %v1991_v43 = vpop.xlane.xlu0 %1990 }
 0xad0   : > { %v1993_v19 = vmul.f32 0.03125, %v1991_v43  ;;  %v1996_v44 = vmul.f32 %v1994_v42, %v1994_v42 }
 0xad2   : > { %v1995_v45 = vsub.f32 %v1983_v38, %v1993_v19  ;;  %v1998_v46 = vsel %vm496_vm0, %v1996_v44, 0.0 }
 0xad3   : > { %1999 = vadd.xlane.f32.xlu0 %v1998_v46 }
 0xad4   : > { %v1997_v47 = vmul.f32 %v1995_v45, %v1995_v45 }
 0xad6   : > { %v2001_v48 = vsel %vm1750_vm8, %v1997_v47, 0.0 }
 0xad7   : > { %2002 = vadd.xlane.f32.xlu0 %v2001_v48 }
 0xb60   : > { %v2000_v49 = vpop.xlane.xlu0 %1999 }
 0xb61   : > { %v2004_v7 = vmul.f32 0.03125, %v2000_v49 }
 0xb63   : > { %v2006_v50 = vadd.f32 1e-05, %v2004_v7 }
 0xb64   : > { %v2003_v6 = vpop.xlane.xlu0 %2002 }
 0xb65   : > { %2523 = vrsqrt.f32 %v2006_v50  ;;  %v2005_v51 = vmul.f32 0.03125, %v2003_v6 }
 0xb67   : > { %v2007_v52 = vadd.f32 1e-05, %v2005_v51 }
 0xb69   : > { %2525 = vrsqrt.f32 %v2007_v52 }
 0xb6f   : > { %v2524_v53 = vpop.eup %2523 }
 0xb70   : > { %v2010_v55 = vmul.f32 %v2524_v53, %v1994_v42 }
 0xb72   : > { %v2018_v57 = vmul.f32 %v2152_v54, %v2010_v55 }
 0xb73   : > { %v2526_v58 = vpop.eup %2525 }
 0xb74   : > { %v2026_v59 = vadd.f32 %v2153_v56, %v2018_v57  ;;  %v2011_v60 = vmul.f32 %v2526_v58, %v1995_v45 }
 0xb76   : > { %2028 = vst.msk [vmem:[%s481_s26] sm:$0xff] %vm496_vm0, %v2026_v59  ;;  %v2019_v61 = vmul.f32 %v2152_v54, %v2011_v60 }
 0xb78   : > { %v2027_v62 = vadd.f32 %v2153_v56, %v2019_v61 }
 0xb7a   : > { %2029 = vst.msk [vmem:[%s481_s26 + $0x8] sm:$0x1] %vm1750_vm8, %v2027_v62 }
 0xb7b PF: > { %s24_s29 = sadd.s32 1, %s2533_s29  }
 0xb7c   : > { %p21_p4 = scmp.ge.s32.totalorder %s24_s29, 4  }
 0xb7e   :  { %23 = sbr.rel (!%p21_p4) target bundleno = 1 (0x1), region = 109 }

// kernel: seq2seq_forward.7
= control target key start
LH: loop header
LB: loop body
LE: loop exit
PB: predicated region body
PF: predicated region fallthrough
CT: control target
= control target key end

     0   :  { %s4463_s0 = inlined_call_operand.vmem [shape: f32[2,8,32], index: 0, kind: input, shape index: {}]   ;;  %s4464_s1 = inlined_call_operand.vmem [shape: f32[2,9,32], index: 1, kind: input, shape index: {}]   ;;  %s4465_s2 = inlined_call_operand.vmem [shape: f32[2,8,8], index: 2, kind: input, shape index: {}]   ;;  %s4466_s3 = inlined_call_operand.vmem [shape: f32[2,1,9], index: 3, kind: input, shape index: {}]   ;;  %s4467_s4 = inlined_call_operand.vmem [shape: f32[32,96], index: 4, kind: input, shape index: {}]   ;;  %s4468_s5 = inlined_call_operand.vmem [shape: f32[1,96], index: 5, kind: input, shape index: {}]   ;;  %s4469_s6 = inlined_call_operand.vmem [shape: f32[32,32], index: 6, kind: input, shape index: {}]   ;;  %s4470_s7 = inlined_call_operand.vmem [shape: f32[1,32], index: 7, kind: input, shape index: {}]   ;;  %s4471_s8 = inlined_call_operand.vmem [shape: f32[1,32], index: 8, kind: input, shape index: {}]   ;;  %s4472_s9 = inlined_call_operand.vmem [shape: f32[1,32], index: 9, kind: input, shape index: {}]   ;;  %s4473_s10 = inlined_call_operand.vmem [shape: f32[32,32], index: 10, kind: input, shape index: {}]   ;;  %s4474_s11 = inlined_call_operand.vmem [shape: f32[1,32], index: 11, kind: input, shape index: {}]   ;;  %s4475_s12 = inlined_call_operand.vmem [shape: f32[32,64], index: 12, kind: input, shape index: {}]   ;;  %s4476_s13 = inlined_call_operand.vmem [shape: f32[1,64], index: 13, kind: input, shape index: {}]   ;;  %s4477_s14 = inlined_call_operand.vmem [shape: f32[32,32], index: 14, kind: input, shape index: {}]   ;;  %s4478_s15 = inlined_call_operand.vmem [shape: f32[1,32], index: 15, kind: input, shape index: {}]   ;;  %s4479_s16 = inlined_call_operand.vmem [shape: f32[1,32], index: 16, kind: input, shape index: {}]   ;;  %s4480_s17 = inlined_call_operand.vmem [shape: f32[1,32], index: 17, kind: input, shape index: {}]   ;;  %s4481_s18 = inlined_call_operand.vmem [shape: f32[32,64], index: 18, kind: input, shape index: {}]   ;;  %s4482_s19 = inlined_call_operand.vmem [shape: f32[1,64], index: 19, kind: input, shape index: {}]   ;;  %s4483_s20 = inlined_call_operand.vmem [shape: f32[64,32], index: 20, kind: input, shape index: {}]   ;;  %s4484_s21 = inlined_call_operand.vmem [shape: f32[1,32], index: 21, kind: input, shape index: {}]   ;;  %s4485_s22 = inlined_call_operand.vmem [shape: f32[1,32], index: 22, kind: input, shape index: {}]   ;;  %s4486_s23 = inlined_call_operand.vmem [shape: f32[1,32], index: 23, kind: input, shape index: {}]   ;;  %s4487_s24 = inlined_call_operand.vmem [shape: f32[2,8,32], index: 24, kind: output, shape index: {}]  }
   0x1   :  { %4500 = sst [smem:[#allocation2_spill]] %s4463_s0 }
   0x2   :  { %4501 = sst [smem:[#allocation3_spill]] %s4464_s1 }
   0x3   :  { %4502 = sst [smem:[#allocation4_spill]] %s4465_s2 }
   0x4   :  { %4503 = sst [smem:[#allocation5_spill]] %s4466_s3 }
   0x5   :  { %4504 = sst [smem:[#allocation6_spill]] %s4467_s4 }
   0x6   :  { %4505 = sst [smem:[#allocation7_spill]] %s4468_s5  ;;  %s4054_s5 = smov 0  }
   0x7   :  { %4506 = sst [smem:[#allocation8_spill]] %s4469_s6 }
   0x8   :  { %4507 = sst [smem:[#allocation9_spill]] %s4470_s7 }
   0x9   :  { %4508 = sst [smem:[#allocation10_spill]] %s4471_s8 }
   0xa LB: > { %s3382_s26 = sadd.s32 4294967295, %s3912_s5   ;;  %p3386_p0 = scmp.ge.s32.totalorder %s3912_s5, 1  ;;  %s3912_s5 = sphi %s4054_s5, %s34_s5  }
   0xb   : > { %p688_p1 = scmp.lt.s32.totalorder %s3912_s5, 3 }
   0xd   : > { %p689_p2 = pnand %p3386_p0, %p688_p1 }
   0xe   : > { %s4509_s6 = sld [smem:[#allocation6_spill]] (!%p689_p2)  ;;  %v3914_v3 = vmov (!%p689_p2), 0.0|0.0   ;;  %vm3915_vm0 = vmmov (!%p689_p2), 0   ;;  %v3916_v6 = vmov (!%p689_p2), 0.0   ;;  %p764_p3 = scmp.lt.s32.totalorder (!%p689_p2), %s3382_s26, 1  ;;  %vm800_vm1 = vcmask (!%p689_p2), 261120  }
   0xf   : > { %692 = sbr.rel (%p689_p2) target bundleno = 6649 (0x19f9), region = 116  ;;  %3740 = vmatprep.subr.bf16.mxu0 (!%p689_p2), %v3914_v3  ;;  %3549 = vmatprep.mubr.msk.f32.mxu0 (!%p689_p2), %vm3915_vm0, %v3916_v6  ;;  %s4510_s1 = sld [smem:[#allocation2_spill]] (!%p689_p2)  ;;  %vm882_vm2 = vcmask (!%p689_p2), 64512   ;;  %vm2143_vm4 = vcmask (!%p689_p2), 72704   ;;  %vm2164_vm5 = vcmask (!%p689_p2), 1040384   ;;  %vm3928_vm6 = vmmov (!%p689_p2), 1  }
  0x10   : > { %3557 = vmatprep.subr.mxu1 (!%p689_p2), %v3916_v6  ;;  %3559 = vmatprep.mubr.msk.f32.mxu1 (!%p689_p2), %vm3915_vm0, %v3916_v6  ;;  %s4511_s29 = sld [smem:[#allocation7_spill]] (!%p689_p2)  ;;  %s4497_s0 = smov (!%p689_p2), 96   ;;  %vm4261_vm3 = vmpackc.low (!%p689_p2), %vm882_vm2, %vm882_vm2  ;;  %vm3191_vm8 = vcmask (!%p689_p2), 523264  }
  0x11   : > { %s4498_s7 = smov (!%p689_p2), 120   ;;  %s4496_s30 = smov (!%p689_p2), 88   ;;  %vm4290_vm7 = vmpackc.low (!%p689_p2), %vm2164_vm5, %vm3928_vm6 }
  0x12   : > { %s4512_s4 = sld [smem:[#allocation4_spill]] (!%p689_p2)  ;;  %s3921_s28 = smov (!%p689_p2), 64  }
  0x13   : > { %s4491_s2 = smov (!%p689_p2), 80   ;;  %s4492_s3 = smov (!%p689_p2), 104  }
  0x14   : > { %v789_v0 = vld [vmem:[%s4509_s6] sm:$0xff] (!%p689_p2)  ;;  %v790_v1 = vld [vmem:[%s4509_s6 + $0x8] sm:$0xff] (!%p689_p2)  ;;  %v791_v2 = vld [vmem:[%s4509_s6 + $0x10] sm:$0xff] (!%p689_p2)  ;;  %s3926_s8 = smov (!%p689_p2), 48  }
  0x15   : > { %v3741_v4 = vpack.c.bf16 (!%p689_p2), %v790_v1, %v789_v0  ;;  %v792_v5 = vld [vmem:[%s4509_s6 + $0x18] sm:$0xff] (!%p689_p2) }
  0x16   : > { %v3744_v7 = vpack.c.bf16 %v792_v5, %v791_v2  ;;  %s4530_s26 = smov (!%p764_p3, %s3382_s26), 1  ;;  %v3392_v9 = vld [vmem:[%s4511_s29] ss:$0 sm:$0xff]  ;;  %s4494_s29 = smov 112  }
  0x17   : > { %3742 = vmatpush3.bf16.msra.mxu0 %v3741_v4  ;;  %s4084_s25 = sshll.u32 %s4530_s26, 3 }
  0x18   : > { %3743 = vmatprep.subr.bf16.mxu0 %v3914_v3  ;;  %s767_s27 = scalar_lea.vmem %s4510_s1, %s4084_s25  ;;  %s776_s1 = scalar_lea.vmem %s4512_s4, %s4084_s25 }
  0x19   : > { %v4090_v8 = vld [vmem:[%s767_s27] sm:$0xff]  ;;  %s3920_s27 = smov 56   ;;  %s4513_s4 = sld [smem:[#allocation8_spill]] }
  0x1a   : > { %v4126_v17 = vld [vmem:[%s776_s1] sm:$0xff] }
  0x1b   : > { %3745 = vmatpush3.bf16.msra.mxu0 %v3744_v7 }
  0x1c   : > { %3552 = vmatprep.subr.mxu0 %v3916_v6 }
  0x1e   : > { %3550 = vmatmul.mubr.msk.f32.vlgmr.msra.gmra.mrb[0].mxu0 %vm800_vm1, %v4090_v8 }
  0x1f   : > { %3554 = vmatprep.mubr.msk.f32.mxu0 %vm3915_vm0, %v3916_v6  ;;  %v875_v36 = vld [vmem:[%s4513_s4 + $0x8] sm:$0xff]  ;;  %v874_v45 = vld [vmem:[%s4513_s4] sm:$0xff] }
  0xf1   : > { %v870_v10 = vpop.f32.mrb[0].mxu0 }
  0xf2   : > { %v4100_v11 = vadd.f32 %v3392_v9, %v870_v10  ;;  %v3551_v12 = vpop.f32.mrb[1].mxu0 }
  0xf3   : > { %v876_v12 = vld [vmem:[%s4513_s4 + $0x10] sm:$0xff] }
  0xf4   : > { %880 = vrot.lane.b32.xlu0 %v4100_v11, %s4497_s0  ;;  %v4105_v13 = vmul.f32 0.35355338, %v4100_v11  ;;  %s3454_s0 = sshll.u32 %s4530_s26, 4 }
  0xf6   : > { %1046 = vrot.lane.b32.xlu1 %v4105_v13, %s4498_s7  ;;  %s4515_s7 = sld [smem:[#allocation3_spill]] }
  0xf8   : > { %1048 = vrot.lane.b32.xlu0 %v4100_v11, %s4496_s30  ;;  %s4521_s30 = smov 96  }
 0x166   : > { %v881_v14 = vpop.permute.xlu0 %880 }
 0x167   : > { %3553 = vmatpush3.xpose.msk.msra.mxu0 %vm882_vm2, %v881_v14 }
 0x168   : > { %3562 = vmatprep.subr.mxu0 %v3916_v6  ;;  %v1047_v16 = vpop.permute.xlu1 %1046 }
 0x16a   : > { %v1049_v15 = vpop.permute.xlu0 %1048  ;;  %3555 = vmatmul.mubr.msk.f32.vlgmr.msra.gmra.mrb[2].mxu0 %vm882_vm2, %v4105_v13 }
 0x16b   : > { %3563 = vmatpush3.xpose.msk.msra.mxu0 %vm882_vm2, %v1049_v15  ;;  %3564 = vmatprep.mubr.msk.f32.mxu0 %vm3915_vm0, %v3916_v6 }
 0x16c   : > { %3572 = vmatprep.subr.mxu0 %v3916_v6 }
 0x16e   : > { %3565 = vmatmul.mubr.msk.f32.vlgmr.msra.gmra.mrb[4].mxu0 %vm882_vm2, %v1047_v16 }
 0x16f   : > { %3574 = vmatprep.mubr.msk.f32.mxu0 %vm3915_vm0, %v3916_v6  ;;  %3573 = vmatpush3.msra.mxu0 %v875_v36 }
 0x170   : > { %3582 = vmatprep.subr.mxu0 %v3916_v6 }
 0x23d   : > { %v954_v18 = vpop.f32.mrb[2].mxu0 }
 0x23e   : > { %v955_v19 = vadd.f32 %v954_v18, %v4126_v17  ;;  %v3556_v20 = vpop.f32.mrb[3].mxu0 }
 0x240   : > { %v958_v21 = vsel %vm882_vm2, %v955_v19, -inf }
 0x241   : > { %959 = vmax.xlane.f32.xlu1 %v958_v21  ;;  %v1120_v22 = vpop.f32.mrb[4].mxu0 }
 0x242   : > { %v1121_v23 = vadd.f32 %v1120_v22, %v4126_v17  ;;  %v3566_v24 = vpop.f32.mrb[5].mxu0 }
 0x244   : > { %v1124_v25 = vsel %vm882_vm2, %v1121_v23, -inf }
 0x245   : > { %1125 = vmax.xlane.f32.xlu0 %v1124_v25 }
 0x2ce   : > { %v960_v26 = vpop.xlane.xlu1 %959 }
 0x2cf   : > { %v961_v27 = vsub.f32 %v955_v19, %v960_v26 }
 0x2d1   : > { %v962_v28 = vmul.f32 1.442695, %v961_v27 }
 0x2d2   : > { %v1126_v29 = vpop.xlane.xlu0 %1125 }
 0x2d3   : > { %3868 = vpow2.f32 %v962_v28  ;;  %v1127_v30 = vsub.f32 %v1121_v23, %v1126_v29 }
 0x2d5   : > { %v1128_v31 = vmul.f32 1.442695, %v1127_v30 }
 0x2d7   : > { %3870 = vpow2.f32 %v1128_v31 }
 0x2dd   : > { %v3869_v32 = vpop.eup %3868 }
 0x2de   : > { %v964_v33 = vsel %vm882_vm2, %v3869_v32, 0.0 }
 0x2df   : > { %965 = vadd.xlane.f32.xlu0 %v964_v33 }
 0x2e1   : > { %v3871_v34 = vpop.eup %3870 }
 0x2e2   : > { %v1130_v35 = vsel %vm882_vm2, %v3871_v34, 0.0 }
 0x2e3   : > { %1131 = vadd.xlane.f32.xlu1 %v1130_v35 }
 0x2f4   : > { %1136 = vrot.lane.b32.xlu1 %v4100_v11, %s3920_s27  ;;  %s4514_s27 = sld [smem:[#allocation9_spill]] }
 0x2f5   : > { %970 = vrot.lane.b32.xlu0 %v4100_v11, %s3921_s28  ;;  %s4490_s28 = smov 72  }
 0x2f8   : > { %1360 = vrot.lane.b32.xlu1 %v4100_v11, %s4491_s2 }
 0x2f9   : > { %1358 = vrot.lane.b32.xlu0 %v4105_v13, %s4494_s29 }
 0x2fa   : > { %v3410_v36 = vld [vmem:[%s4514_s27] ss:$0 sm:$0xff]  ;;  %s4526_s27 = smov 104  }
 0x36c   : > { %v966_v37 = vpop.xlane.xlu0 %965 }
 0x36d   : > { %3872 = vrcp.f32 %v966_v37 }
 0x370   : > { %v1132_v38 = vpop.xlane.xlu1 %1131  ;;  %v971_v39 = vpop.permute.xlu0 %970 }
 0x371   : > { %3874 = vrcp.f32 %v1132_v38  ;;  %3558 = vmatpush3.msra.mxu1 %v971_v39 }
 0x372   : > { %3567 = vmatprep.subr.mxu1 %v3916_v6 }
 0x374   : > { %v1137_v42 = vpop.permute.xlu1 %1136  ;;  %v1359_v51 = vpop.permute.xlu0 %1358 }
 0x377   : > { %v3873_v40 = vpop.eup %3872 }
 0x378   : > { %v969_v41 = vmul.f32 %v3873_v40, %v3869_v32  ;;  %v1361_v49 = vpop.permute.xlu1 %1360 }
 0x37a   : > { %3560 = vmatmul.mubr.msk.f32.vlgmr.msra.gmra.mrb[0].mxu1 %vm882_vm2, %v969_v41 }
 0x37b   : > { %v3875_v43 = vpop.eup %3874  ;;  %3568 = vmatpush3.msra.mxu1 %v1137_v42  ;;  %3569 = vmatprep.mubr.msk.f32.mxu1 %vm3915_vm0, %v3916_v6 }
 0x37c   : > { %v1135_v44 = vmul.f32 %v3875_v43, %v3871_v34  ;;  %3577 = vmatprep.subr.mxu1 %v3916_v6 }
 0x37e   : > { %3570 = vmatmul.mubr.msk.f32.vlgmr.msra.gmra.mrb[2].mxu1 %vm882_vm2, %v1135_v44 }
 0x37f   : > { %3579 = vmatprep.mubr.msk.f32.mxu1 %vm3915_vm0, %v3916_v6  ;;  %3578 = vmatpush3.msra.mxu1 %v874_v45  ;;  %v1961_v45 = vld [vmem:[%s4475_s12] sm:$0xff] }
 0x380   : > { %3587 = vmatprep.subr.mxu1 %v3916_v6 }
 0x44d   : > { %v1042_v46 = vpop.f32.mrb[0].mxu1 }
 0x44e   : > { %v3561_v47 = vpop.f32.mrb[1].mxu1  ;;  %3580 = vmatmul.mubr.msk.f32.vlgmr.msra.gmra.mrb[4].mxu1 %vm882_vm2, %v1042_v46 }
 0x44f   : > { %3589 = vmatprep.mubr.msk.f32.mxu1 %vm3915_vm0, %v3916_v6  ;;  %v1963_v47 = vld [vmem:[%s4475_s12 + $0x10] sm:$0xff] }
 0x451   : > { %v1208_v48 = vpop.f32.mrb[2].mxu1 }
 0x452   : > { %v3571_v50 = vpop.f32.mrb[3].mxu1  ;;  %3575 = vmatmul.mubr.msk.f32.vlgmr.msra.gmra.mrb[6].mxu0 %vm882_vm2, %v1208_v48  ;;  %v1964_v48 = vld [vmem:[%s4475_s12 + $0x18] sm:$0xff] }
 0x453   : > { %3583 = vmatpush3.xpose.msk.msra.mxu0 %vm882_vm2, %v1361_v49  ;;  %3584 = vmatprep.mubr.msk.f32.mxu0 %vm3915_vm0, %v3916_v6  ;;  %v3756_v49 = vpack.c.bf16 %v1964_v48, %v1963_v47 }
 0x454   : > { %3592 = vmatprep.subr.mxu0 %v3916_v6 }
 0x456   : > { %3585 = vmatmul.mubr.msk.f32.vlgmr.msra.gmra.mrb[8].mxu0 %vm882_vm2, %v1359_v51 }
 0x457   : > { %3594 = vmatprep.mubr.msk.f32.mxu0 %vm3915_vm0, %v3916_v6  ;;  %3593 = vmatpush3.msra.mxu0 %v876_v12 }
 0x458   : > { %3602 = vmatprep.subr.mxu0 %v3916_v6 }
 0x521   : > { %v1354_v52 = vpop.f32.mrb[4].mxu1 }
 0x522   : > { %v3581_v53 = vpop.f32.mrb[5].mxu1 }
 0x523   : > { %v1878_v53 = vld [vmem:[%s4473_s10 + $0x8] sm:$0xff] }
 0x525   : > { %v1281_v54 = vpop.f32.mrb[6].mxu0 }
 0x526   : > { %v1355_v55 = vadd.f32 %v1354_v52, %v1281_v54  ;;  %v3576_v56 = vpop.f32.mrb[7].mxu0  ;;  %v1877_v52 = vld [vmem:[%s4473_s10] sm:$0xff] }
 0x527   : > { %v3747_v54 = vpack.c.bf16 %v1878_v53, %v1877_v52  ;;  %v1880_v56 = vld [vmem:[%s4473_s10 + $0x18] sm:$0xff] }
 0x529   : > { %v1432_v57 = vpop.f32.mrb[8].mxu0 }
 0x52a   : > { %v1433_v58 = vadd.f32 %v1432_v57, %v4126_v17  ;;  %v3586_v59 = vpop.f32.mrb[9].mxu0 }
 0x52c   : > { %v1436_v60 = vsel %vm882_vm2, %v1433_v58, -inf }
 0x52d   : > { %1437 = vmax.xlane.f32.xlu1 %v1436_v60 }
 0x53e   : > { %1600 = vrot.lane.b32.xlu1 %v4100_v11, %s4490_s28 }
 0x542   : > { %1598 = vrot.lane.b32.xlu1 %v4105_v13, %s4492_s3  ;;  %s4516_s3 = sld [smem:[#allocation10_spill]] }
 0x5ba   : > { %v1438_v61 = vpop.xlane.xlu1 %1437 }
 0x5bb   : > { %v1439_v62 = vsub.f32 %v1433_v58, %v1438_v61 }
 0x5bd   : > { %v1440_v63 = vmul.f32 1.442695, %v1439_v62  ;;  %v3411_v62 = vld [vmem:[%s4516_s3] ss:$0 sm:$0xff]  ;;  %s4520_s3 = sld [smem:[#allocation5_spill]] }
 0x5be   : > { %v1601_v7 = vpop.permute.xlu1 %1600 }
 0x5bf   : > { %3876 = vpow2.f32 %v1440_v63 }
 0x5c2   : > { %v1599_v10 = vpop.permute.xlu1 %1598 }
 0x5c3   : > { %s779_s1 = scalar_lea.vmem %s4520_s3, %s4530_s26  ;;  %s4528_s3 = smov 72  }
 0x5c9   : > { %v3877_v0 = vpop.eup %3876 }
 0x5ca   : > { %v1442_v1 = vsel %vm882_vm2, %v3877_v0, 0.0 }
 0x5cb   : > { %1443 = vadd.xlane.f32.xlu0 %v1442_v1 }
 0x5e1   : > { %1448 = vrot.lane.b32.xlu0 %v4100_v11, %s3926_s8  ;;  %s3927_s8 = smov 40  }
 0x658   : > { %v1444_v2 = vpop.xlane.xlu0 %1443 }
 0x659   : > { %3878 = vrcp.f32 %v1444_v2 }
 0x65c   : > { %v1449_v4 = vpop.permute.xlu0 %1448 }
 0x65d   : > { %3588 = vmatpush3.msra.mxu1 %v1449_v4  ;;  %v3415_v4 = vld [vmem:[%s4476_s13] ss:$0 sm:$0xff] }
 0x65e   : > { %3597 = vmatprep.subr.mxu1 %v3916_v6 }
 0x663   : > { %v3879_v5 = vpop.eup %3878 }
 0x664   : > { %v1447_v9 = vmul.f32 %v3879_v5, %v3877_v0  ;;  %v3412_v0 = vld [vmem:[%s4472_s9] ss:$0 sm:$0xff] }
 0x666   : > { %3590 = vmatmul.mubr.msk.f32.vlgmr.msra.gmra.mrb[6].mxu1 %vm882_vm2, %v1447_v9 }
 0x667   : > { %3598 = vmatpush3.xpose.msk.msra.mxu1 %vm882_vm2, %v1601_v7  ;;  %3599 = vmatprep.mubr.msk.f32.mxu1 %vm3915_vm0, %v3916_v6 }
 0x668   : > { %3607 = vmatprep.subr.mxu1 %v3916_v6 }
 0x66a   : > { %3600 = vmatmul.mubr.msk.f32.vlgmr.msra.gmra.mrb[8].mxu1 %vm882_vm2, %v1599_v10 }
 0x66b   : > { %3609 = vmatprep.mubr.msk.f32.mxu1 %vm3915_vm0, %v3916_v6 }
 0x739   : > { %v1520_v13 = vpop.f32.mrb[6].mxu1 }
 0x73a   : > { %v3591_v14 = vpop.f32.mrb[7].mxu1  ;;  %3595 = vmatmul.mubr.msk.f32.vlgmr.msra.gmra.mrb[10].mxu0 %vm882_vm2, %v1520_v13 }
 0x73b   : > { %3604 = vmatprep.mubr.msk.f32.mxu0 %vm3915_vm0, %v3916_v6 }
 0x73d   : > { %v1672_v15 = vpop.f32.mrb[8].mxu1 }
 0x73e   : > { %v1673_v16 = vadd.f32 %v1672_v15, %v4126_v17  ;;  %v3601_v18 = vpop.f32.mrb[9].mxu1  ;;  %v877_v17 = vld [vmem:[%s4513_s4 + $0x18] sm:$0xff]  ;;  %v3413_v15 = vld [vmem:[%s4474_s11] ss:$0 sm:$0xff] }
 0x73f   : > { %3608 = vmatpush3.msra.mxu1 %v877_v17 }
 0x740   : > { %v1676_v19 = vsel %vm882_vm2, %v1673_v16, -inf }
 0x741   : > { %1677 = vmax.xlane.f32.xlu0 %v1676_v19 }
 0x757   : > { %1688 = vrot.lane.b32.xlu0 %v4100_v11, %s3927_s8  ;;  %s772_s8 = scalar_lea.vmem %s4515_s7, %s3454_s0  ;;  %s4519_s7 = smov 120  }
 0x758   : > { %v785_v50 = vld [vmem:[%s772_s8] sm:$0xff]  ;;  %v786_v51 = vld [vmem:[%s772_s8 + $0x8] sm:$0x1]  ;;  %s4524_s0 = smov 88   ;;  %s4527_s8 = smov 80  }
 0x7ce   : > { %v1678_v20 = vpop.xlane.xlu0 %1677 }
 0x7cf   : > { %v1679_v21 = vsub.f32 %v1673_v16, %v1678_v20 }
 0x7d1   : > { %v1680_v22 = vmul.f32 1.442695, %v1679_v21  ;;  %v4283_v21 = vld [vmem:[%s779_s1] ss:$0 sm:$0xff]  ;;  %s783_s1 = scalar_lea.vmem %s4487_s24, %s4084_s25 }
 0x7d2   : > { %v1689_v23 = vpop.permute.xlu0 %1688 }
 0x7d3   : > { %3880 = vpow2.f32 %v1680_v22  ;;  %3603 = vmatpush3.msra.mxu0 %v1689_v23 }
 0x7d4   : > { %3746 = vmatprep.subr.bf16.mxu0 %v3914_v3 }
 0x7dd   : > { %v3881_v24 = vpop.eup %3880 }
 0x7de   : > { %v1682_v25 = vsel %vm882_vm2, %v3881_v24, 0.0 }
 0x7df   : > { %1683 = vadd.xlane.f32.xlu1 %v1682_v25 }
 0x80d   : > { %v1593_v26 = vpop.f32.mrb[10].mxu0 }
 0x80e   : > { %v1597_v27 = vadd.f32 %v1593_v26, %v1355_v55  ;;  %v3596_v11 = vpop.f32.mrb[11].mxu0  ;;  %v1879_v55 = vld [vmem:[%s4473_s10 + $0x10] sm:$0xff] }
 0x80f   : > { %v3750_v57 = vpack.c.bf16 %v1880_v56, %v1879_v55 }
 0x86c   : > { %v1684_v28 = vpop.xlane.xlu1 %1683 }
 0x86d   : > { %3882 = vrcp.f32 %v1684_v28 }
 0x877   : > { %v3883_v29 = vpop.eup %3882 }
 0x878   : > { %v1687_v30 = vmul.f32 %v3883_v29, %v3881_v24 }
 0x87a   : > { %3605 = vmatmul.mubr.msk.f32.vlgmr.msra.gmra.mrb[12].mxu0 %vm882_vm2, %v1687_v30 }
 0x87b   : > { %3620 = vmatprep.mubr.msk.f32.mxu0 %vm3915_vm0, %v3916_v6  ;;  %3748 = vmatpush3.bf16.msra.mxu0 %v3747_v54 }
 0x87c   : > { %3749 = vmatprep.subr.bf16.mxu0 %v3914_v3 }
 0x87f   : > { %3751 = vmatpush3.bf16.msra.mxu0 %v3750_v57 }
 0x880   : > { %3760 = vmatprep.subr.bf16.mxu0 %v3914_v3 }
 0x94d   : > { %v1760_v31 = vpop.f32.mrb[12].mxu0 }
 0x94e   : > { %v3606_v32 = vpop.f32.mrb[13].mxu0  ;;  %3610 = vmatmul.mubr.msk.f32.vlgmr.msra.gmra.mrb[10].mxu1 %vm882_vm2, %v1760_v31 }
 0x94f   : > { %3631 = vmatprep.mubr.msk.f32.mxu1 %vm800_vm1, %v785_v50 }
 0xa21   : > { %v1833_v33 = vpop.f32.mrb[10].mxu1 }
 0xa22   : > { %v1837_v34 = vadd.f32 %v1833_v33, %v1597_v27  ;;  %v3611_v35 = vpop.f32.mrb[11].mxu1 }
 0xa24   : > { %v1838_v37 = vadd.f32 %v1837_v34, %v4090_v8  ;;  %v1962_v8 = vld [vmem:[%s4475_s12 + $0x8] sm:$0xff] }
 0xa25   : > { %v3752_v46 = vpack.c.bf16 %v1962_v8, %v1961_v45 }
 0xa26   : > { %v1846_v38 = vadd.f32 %v3410_v36, %v1838_v37 }
 0xa27   : > { %3753 = vmatprep.subr.bf16.mxu1 %v3752_v46 }
 0xa28   : > { %v1849_v39 = vsel %vm800_vm1, %v1846_v38, 0.0  ;;  %3755 = vmatpush3.bf16.msra.mxu1 %v3752_v46 }
 0xa29   : > { %1850 = vadd.xlane.f32.xlu1 %v1849_v39  ;;  %3757 = vmatprep.subr.bf16.mxu1 %v3756_v49 }
 0xa2c   : > { %3759 = vmatpush3.bf16.msra.mxu1 %v3756_v49 }
 0xa2d   : > { %3764 = vmatprep.subr.bf16.mxu1 %v3914_v3 }
 0xa2f   : > { %3632 = vmatmul.mubr.msk.f32.vlgmr.msra.gmra.mrb[12].mxu1 %vm800_vm1, %v786_v51 }
 0xa30   : > { %3645 = vmatprep.mubr.msk.f32.mxu1 %vm3915_vm0, %v3916_v6 }
 0xab6   : > { %v1851_v40 = vpop.xlane.xlu1 %1850 }
 0xab7   : > { %v1853_v41 = vmul.f32 0.03125, %v1851_v40 }
 0xab9   : > { %v1854_v42 = vsub.f32 %v1846_v38, %v1853_v41 }
 0xabb   : > { %v1855_v43 = vmul.f32 %v1854_v42, %v1854_v42 }
 0xabd   : > { %v1856_v44 = vsel %vm800_vm1, %v1855_v43, 0.0 }
 0xabe   : > { %1857 = vadd.xlane.f32.xlu1 %v1856_v44 }
 0xb02   : > { %v3633_v5 = vpop.f32.mrb[12].mxu1 }
 0xb03   : > { %v2050_v7 = vadd.f32 %v3633_v5, %v3415_v4  ;;  %v2044_v9 = vpop.f32.mrb[13].mxu1 }
 0xb04   : > { %v2045_v10 = vadd.f32 %v3415_v4, %v2044_v9 }
 0xb06   : > { %v4265_v13 = vpack.i.bf16 %v2050_v7, %v2045_v10  ;;  %v3761_v14 = vpack.c.bf16 %v2050_v7, %v2045_v10 }
 0xb08   : > { %3839 = vrot.lane.b32.xlu0 %v4265_v13, %s4519_s7 }
 0xb4b   : > { %v1858_v58 = vpop.xlane.xlu1 %1857 }
 0xb4c   : > { %v1859_v59 = vmul.f32 0.03125, %v1858_v58 }
 0xb4e   : > { %v1860_v60 = vadd.f32 1e-05, %v1859_v59 }
 0xb50   : > { %3884 = vrsqrt.f32 %v1860_v60 }
 0xb5a   : > { %v3885_v61 = vpop.eup %3884 }
 0xb5b   : > { %v1862_v63 = vmul.f32 %v3885_v61, %v1854_v42  ;;  %v2053_v42 = vld [vmem:[%s4477_s14] sm:$0xff] }
 0xb5d   : > { %v1869_v1 = vmul.f32 %v3411_v62, %v1862_v63  ;;  %v2054_v62 = vld [vmem:[%s4477_s14 + $0x8] sm:$0xff] }
 0xb5f   : > { %v4250_v2 = vadd.f32 %v3412_v0, %v1869_v1 }
 0xb61   : > { %3621 = vmatmul.mubr.msk.f32.vlgmr.msra.gmra.mrb[14].mxu0 %vm800_vm1, %v4250_v2 }
 0xb62   : > { %3638 = vmatprep.mubr.msk.f32.mxu0 %vm3915_vm0, %v3916_v6  ;;  %3763 = vmatpush3.bf16.xpose.msk.msra.mxu0 %vm4261_vm3, %v3761_v14 }
 0xb63   : > { %3772 = vmatprep.subr.bf16.mxu0 %v3914_v3 }
 0xb7a   : > { %v3840_v35 = vpop.permute.xlu0 %3839 }
 0xb7b   : > { %v3842_v37 = vunpack.i.h.bf16 %v3840_v35  ;;  %v3841_v38 = vunpack.i.l.bf16 %v3840_v35 }
 0xb7d   : > { %v3769_v40 = vpack.c.bf16 %v3842_v37, %v3841_v38 }
 0xc34   : > { %v1957_v16 = vpop.f32.mrb[14].mxu0 }
 0xc35   : > { %v1958_v18 = vadd.f32 %v3413_v15, %v1957_v16  ;;  %v3622_v19 = vpop.f32.mrb[15].mxu0 }
 0xc37   : > { %v2057_v20 = vmul.f32 0.35355338, %v1958_v18 }
 0xc39   : > { %2237 = vrot.lane.b32.xlu0 %v2057_v20, %s4519_s7  ;;  %3639 = vmatmul.mubr.msk.f32.vlgmr.msra.gmra.mrb[16].mxu0 %vm882_vm2, %v2057_v20  ;;  %s4525_s7 = smov 112  }
 0xc3a   : > { %3659 = vmatprep.mubr.msk.f32.mxu0 %vm3915_vm0, %v3916_v6 }
 0xcab   : > { %v2238_v41 = vpop.permute.xlu0 %2237 }
 0xd0c   : > { %v2139_v22 = vpop.f32.mrb[16].mxu0 }
 0xd0d   : > { %v2140_v23 = vadd.f32 %v4283_v21, %v2139_v22  ;;  %v3640_v24 = vpop.f32.mrb[17].mxu0 }
 0xd0f   : > { %v2144_v25 = vsel %vm2143_vm4, %v2140_v23, -inf }
 0xd10   : > { %2145 = vmax.xlane.f32.xlu1 %v2144_v25 }
 0xd9d   : > { %v2146_v17 = vpop.xlane.xlu1 %2145 }
 0xd9e   : > { %v2147_v26 = vsub.f32 %v2140_v23, %v2146_v17 }
 0xda0   : > { %v2148_v27 = vmul.f32 1.442695, %v2147_v26 }
 0xda2   : > { %3886 = vpow2.f32 %v2148_v27 }
 0xdac   : > { %v3887_v11 = vpop.eup %3886 }
 0xdad   : > { %v2150_v28 = vsel %vm2143_vm4, %v3887_v11, 0.0 }
 0xdae   : > { %2151 = vadd.xlane.f32.xlu1 %v2150_v28 }
 0xdbf   : > { %3834 = vrot.lane.b32.xlu1 %v4265_v13, %s4521_s30 }
 0xe3b   : > { %v2152_v29 = vpop.xlane.xlu1 %2151 }
 0xe3c   : > { %3888 = vrcp.f32 %v2152_v29 }
 0xe3f   : > { %v3835_v30 = vpop.permute.xlu1 %3834 }
 0xe40   : > { %v3837_v31 = vunpack.i.h.bf16 %v3835_v30  ;;  %v3836_v32 = vunpack.i.l.bf16 %v3835_v30 }
 0xe42   : > { %v3765_v34 = vpack.c.bf16 %v3837_v31, %v3836_v32 }
 0xe44   : > { %3767 = vmatpush3.bf16.msk.msra.mxu1 %vm4290_vm7, %v3765_v34 }
 0xe45   : > { %3768 = vmatprep.subr.bf16.mxu1 %v3914_v3 }
 0xe46   : > { %v3889_v36 = vpop.eup %3888 }
 0xe47   : > { %v2155_v39 = vmul.f32 %v3889_v36, %v3887_v11 }
 0xe49   : > { %3646 = vmatmul.mubr.msk.f32.vlgmr.msra.gmra.mrb[14].mxu1 %vm2143_vm4, %v2155_v39 }
 0xe4a   : > { %3652 = vmatprep.mubr.msk.f32.mxu1 %vm3915_vm0, %v3916_v6 }
 0xe4d   : > { %3771 = vmatpush3.bf16.xpose.msk.msra.mxu1 %vm4261_vm3, %v3769_v40 }
 0xe4e   : > { %3667 = vmatprep.subr.mxu1 %v3916_v6 }
 0xe54   : > { %3653 = vmatmul.mubr.msk.f32.vlgmr.msra.gmra.mrb[16].mxu1 %vm882_vm2, %v2238_v41 }
 0xe55   : > { %3669 = vmatprep.mubr.msk.f32.mxu1 %vm3915_vm0, %v3916_v6  ;;  %3668 = vmatpush3.msra.mxu1 %v2053_v42 }
 0xe56   : > { %3780 = vmatprep.subr.bf16.mxu1 %v3914_v3 }
 0xf1c   : > { %v2233_v43 = vpop.f32.mrb[14].mxu1 }
 0xf1d   : > { %v3647_v44 = vpop.f32.mrb[15].mxu1  ;;  %3670 = vmatmul.mubr.msk.f32.vlgmr.msra.gmra.mrb[18].mxu1 %vm882_vm2, %v2233_v43 }
 0xf1e   : > { %3683 = vmatprep.mubr.msk.f32.mxu1 %vm3915_vm0, %v3916_v6 }
 0xf27   : > { %v2315_v45 = vpop.f32.mrb[16].mxu1 }
 0xf28   : > { %v2316_v8 = vadd.f32 %v4283_v21, %v2315_v45  ;;  %v3654_v46 = vpop.f32.mrb[17].mxu1  ;;  %v2055_v45 = vld [vmem:[%s4477_s14 + $0x10] sm:$0xff] }
 0xf2a   : > { %v2319_v47 = vsel %vm2143_vm4, %v2316_v8, -inf }
 0xf2b   : > { %2320 = vmax.xlane.f32.xlu0 %v2319_v47 }
 0xf41   : > { %3844 = vrot.lane.b32.xlu0 %v4265_v13, %s4524_s0 }
 0xf45   : > { %2557 = vrot.lane.b32.xlu0 %v2057_v20, %s4525_s7 }
 0xf49   : > { %3854 = vrot.lane.b32.xlu0 %v4265_v13, %s4526_s27 }
 0xf4d   : > { %2805 = vrot.lane.b32.xlu0 %v2057_v20, %s4526_s27 }
 0xfb8   : > { %v2321_v48 = vpop.xlane.xlu0 %2320 }
 0xfb9   : > { %v2322_v49 = vsub.f32 %v2316_v8, %v2321_v48 }
 0xfbb   : > { %v2323_v50 = vmul.f32 1.442695, %v2322_v49 }
 0xfbc   : > { %v3845_v51 = vpop.permute.xlu0 %3844 }
 0xfbd   : > { %3890 = vpow2.f32 %v2323_v50  ;;  %v3847_v52 = vunpack.i.h.bf16 %v3845_v51  ;;  %v3846_v53 = vunpack.i.l.bf16 %v3845_v51 }
 0xfbf   : > { %v3773_v54 = vpack.c.bf16 %v3847_v52, %v3846_v53  ;;  %v2056_v53 = vld [vmem:[%s4477_s14 + $0x18] sm:$0xff] }
 0xfc0   : > { %v2558_v0 = vpop.permute.xlu0 %2557 }
 0xfc1   : > { %3775 = vmatpush3.bf16.msk.msra.mxu0 %vm4290_vm7, %v3773_v54 }
 0xfc2   : > { %3662 = vmatprep.subr.mxu0 %v3916_v6 }
 0xfc4   : > { %v3855_v9 = vpop.permute.xlu0 %3854 }
 0xfc5   : > { %v3857_v14 = vunpack.i.h.bf16 %v3855_v9  ;;  %v3856_v15 = vunpack.i.l.bf16 %v3855_v9 }
 0xfc7   : > { %v3891_v55 = vpop.eup %3890  ;;  %v3785_v16 = vpack.c.bf16 %v3857_v14, %v3856_v15  ;;  %v3093_v14 = vld [vmem:[%s4481_s18 + $0x10] sm:$0xff]  ;;  %v3094_v15 = vld [vmem:[%s4481_s18 + $0x18] sm:$0xff] }
 0xfc8   : > { %v2325_v56 = vsel %vm2143_vm4, %v3891_v55, 0.0  ;;  %v2806_v18 = vpop.permute.xlu0 %2805 }
 0xfc9   : > { %2326 = vadd.xlane.f32.xlu1 %v2325_v56 }
 0xfda   : > { %3849 = vrot.lane.b32.xlu1 %v4265_v13, %s4525_s7 }
 0xff0   : > { %v2553_v57 = vpop.f32.mrb[18].mxu1 }
 0xff1   : > { %v3671_v58 = vpop.f32.mrb[19].mxu1 }
0x1056   : > { %v2327_v59 = vpop.xlane.xlu1 %2326 }
0x1057   : > { %3892 = vrcp.f32 %v2327_v59 }
0x105a   : > { %v3850_v63 = vpop.permute.xlu1 %3849 }
0x105b   : > { %v3852_v1 = vunpack.i.h.bf16 %v3850_v63  ;;  %v3851_v4 = vunpack.i.l.bf16 %v3850_v63 }
0x105d   : > { %v3777_v5 = vpack.c.bf16 %v3852_v1, %v3851_v4 }
0x1061   : > { %v3893_v60 = vpop.eup %3892 }
0x1062   : > { %v2330_v61 = vmul.f32 %v3893_v60, %v3891_v55 }
0x1064   : > { %3660 = vmatmul.mubr.msk.f32.vlgmr.msra.gmra.mrb[18].mxu0 %vm2143_vm4, %v2330_v61  ;;  %v3443_v61 = vld [vmem:[%s4478_s15] ss:$0 sm:$0xff] }
0x1065   : > { %3663 = vmatpush3.msra.mxu0 %v2054_v62  ;;  %3664 = vmatprep.mubr.msk.f32.mxu0 %vm3915_vm0, %v3916_v6 }
0x1066   : > { %3776 = vmatprep.subr.bf16.mxu0 %v3914_v3 }
0x1137   : > { %v2407_v7 = vpop.f32.mrb[18].mxu0 }
0x1138   : > { %v3661_v10 = vpop.f32.mrb[19].mxu0  ;;  %3665 = vmatmul.mubr.msk.f32.vlgmr.msra.gmra.mrb[20].mxu0 %vm882_vm2, %v2407_v7 }
0x1139   : > { %3779 = vmatpush3.bf16.xpose.msk.msra.mxu0 %vm4261_vm3, %v3777_v5  ;;  %3676 = vmatprep.mubr.msk.f32.mxu0 %vm3915_vm0, %v3916_v6  ;;  %v3092_v10 = vld [vmem:[%s4481_s18 + $0x8] sm:$0xff] }
0x113a   : > { %3784 = vmatprep.subr.bf16.mxu0 %v3914_v3 }
0x1140   : > { %3677 = vmatmul.mubr.msk.f32.vlgmr.msra.gmra.mrb[22].mxu0 %vm882_vm2, %v2558_v0 }
0x1141   : > { %3787 = vmatpush3.bf16.xpose.msk.msra.mxu0 %vm4261_vm3, %v3785_v16  ;;  %3695 = vmatprep.mubr.msk.f32.mxu0 %vm3915_vm0, %v3916_v6  ;;  %v3796_v16 = vpack.c.bf16 %v3094_v15, %v3093_v14 }
0x1142   : > { %3792 = vmatprep.subr.bf16.mxu0 %v3914_v3 }
0x1148   : > { %3696 = vmatmul.mubr.msk.f32.vlgmr.msra.gmra.mrb[24].mxu0 %vm882_vm2, %v2806_v18  ;;  %v3176_v18 = vld [vmem:[%s4483_s20] sm:$0xff] }
0x1149   : > { %3718 = vmatprep.mubr.msk.f32.mxu0 %vm3915_vm0, %v3916_v6 }
0x120b   : > { %v2480_v19 = vpop.f32.mrb[20].mxu0 }
0x120c   : > { %v4349_v20 = vadd.f32 %v2553_v57, %v2480_v19  ;;  %v3666_v22 = vpop.f32.mrb[21].mxu0  ;;  %v3177_v19 = vld [vmem:[%s4483_s20 + $0x8] sm:$0xff] }
0x120d   : > { %v3799_v22 = vpack.c.bf16 %v3177_v19, %v3176_v18 }
0x1213   : > { %v2635_v23 = vpop.f32.mrb[22].mxu0 }
0x1214   : > { %v2636_v24 = vadd.f32 %v4283_v21, %v2635_v23  ;;  %v3678_v12 = vpop.f32.mrb[23].mxu0  ;;  %v3179_v23 = vld [vmem:[%s4483_s20 + $0x18] sm:$0xff] }
0x1215   : > { %v3180_v12 = vld [vmem:[%s4483_s20 + $0x20] sm:$0xff] }
0x1216   : > { %v2639_v25 = vsel %vm2143_vm4, %v2636_v24, -inf }
0x1217   : > { %2640 = vmax.xlane.f32.xlu1 %v2639_v25  ;;  %v3181_v25 = vld [vmem:[%s4483_s20 + $0x28] sm:$0xff] }
0x121b   : > { %v2883_v17 = vpop.f32.mrb[24].mxu0 }
0x121c   : > { %v2884_v26 = vadd.f32 %v4283_v21, %v2883_v17  ;;  %v3697_v27 = vpop.f32.mrb[25].mxu0  ;;  %v3805_v17 = vpack.c.bf16 %v3181_v25, %v3180_v12 }
0x121e   : > { %v2887_v11 = vsel %vm2143_vm4, %v2884_v26, -inf }
0x121f   : > { %2888 = vmax.xlane.f32.xlu1 %v2887_v11 }
0x12a4   : > { %v2641_v28 = vpop.xlane.xlu1 %2640 }
0x12a5   : > { %v2642_v29 = vsub.f32 %v2636_v24, %v2641_v28 }
0x12a7   : > { %v2643_v30 = vmul.f32 1.442695, %v2642_v29  ;;  %v3444_v29 = vld [vmem:[%s4479_s16] ss:$0 sm:$0xff] }
0x12a9   : > { %3894 = vpow2.f32 %v2643_v30 }
0x12ac   : > { %v2889_v31 = vpop.xlane.xlu1 %2888 }
0x12ad   : > { %v2890_v32 = vsub.f32 %v2884_v26, %v2889_v31  ;;  %v3445_v31 = vld [vmem:[%s4480_s17] ss:$0 sm:$0xff] }
0x12af   : > { %v2891_v34 = vmul.f32 1.442695, %v2890_v32 }
0x12b1   : > { %3896 = vpow2.f32 %v2891_v34 }
0x12b3   : > { %v3895_v35 = vpop.eup %3894 }
0x12b4   : > { %v2645_v36 = vsel %vm2143_vm4, %v3895_v35, 0.0 }
0x12b5   : > { %2646 = vadd.xlane.f32.xlu0 %v2645_v36 }
0x12bb   : > { %v3897_v37 = vpop.eup %3896 }
0x12bc   : > { %v2893_v38 = vsel %vm2143_vm4, %v3897_v37, 0.0 }
0x12bd   : > { %2894 = vadd.xlane.f32.xlu1 %v2893_v38 }
0x12cb   : > { %3859 = vrot.lane.b32.xlu0 %v4265_v13, %s4527_s8 }
0x12ce   : > { %3864 = vrot.lane.b32.xlu1 %v4265_v13, %s4528_s3 }
0x1342   : > { %v2647_v21 = vpop.xlane.xlu0 %2646 }
0x1343   : > { %3898 = vrcp.f32 %v2647_v21 }
0x1346   : > { %v3860_v39 = vpop.permute.xlu0 %3859 }
0x1347   : > { %v3862_v40 = vunpack.i.h.bf16 %v3860_v39  ;;  %v3861_v41 = vunpack.i.l.bf16 %v3860_v39 }
0x1349   : > { %v3781_v42 = vpack.c.bf16 %v3862_v40, %v3861_v41  ;;  %v3448_v41 = vld [vmem:[%s4484_s21] ss:$0 sm:$0xff] }
0x134a   : > { %v2895_v13 = vpop.xlane.xlu1 %2894 }
0x134b   : > { %3783 = vmatpush3.bf16.msk.msra.mxu1 %vm4290_vm7, %v3781_v42  ;;  %3900 = vrcp.f32 %v2895_v13 }
0x134c   : > { %3686 = vmatprep.subr.mxu1 %v3916_v6 }
0x134d   : > { %v3899_v43 = vpop.eup %3898 }
0x134e   : > { %v2650_v44 = vmul.f32 %v3899_v43, %v3895_v35  ;;  %v3865_v8 = vpop.permute.xlu1 %3864  ;;  %v3183_v35 = vld [vmem:[%s4483_s20 + $0x38] sm:$0xff] }
0x134f   : > { %v3867_v46 = vunpack.i.h.bf16 %v3865_v8  ;;  %v3866_v47 = vunpack.i.l.bf16 %v3865_v8 }
0x1350   : > { %3684 = vmatmul.mubr.msk.f32.vlgmr.msra.gmra.mrb[20].mxu1 %vm2143_vm4, %v2650_v44 }
0x1351   : > { %3687 = vmatpush3.msra.mxu1 %v2055_v45  ;;  %3688 = vmatprep.mubr.msk.f32.mxu1 %vm3915_vm0, %v3916_v6  ;;  %v3789_v49 = vpack.c.bf16 %v3867_v46, %v3866_v47 }
0x1352   : > { %3788 = vmatprep.subr.bf16.mxu1 %v3914_v3 }
0x1355   : > { %v3901_v48 = vpop.eup %3900 }
0x1356   : > { %v2898_v52 = vmul.f32 %v3901_v48, %v3897_v37  ;;  %v3446_v37 = vld [vmem:[%s4482_s19] ss:$0 sm:$0xff] }
0x1423   : > { %v2727_v50 = vpop.f32.mrb[20].mxu1 }
0x1424   : > { %v3685_v51 = vpop.f32.mrb[21].mxu1  ;;  %3689 = vmatmul.mubr.msk.f32.vlgmr.msra.gmra.mrb[22].mxu1 %vm882_vm2, %v2727_v50 }
0x1425   : > { %3791 = vmatpush3.bf16.msk.msra.mxu1 %vm4290_vm7, %v3789_v49  ;;  %3702 = vmatprep.mubr.msk.f32.mxu1 %vm3915_vm0, %v3916_v6 }
0x1426   : > { %3705 = vmatprep.subr.mxu1 %v3916_v6 }
0x1428   : > { %3703 = vmatmul.mubr.msk.f32.vlgmr.msra.gmra.mrb[24].mxu1 %vm2143_vm4, %v2898_v52 }
0x1429   : > { %3707 = vmatprep.mubr.msk.f32.mxu1 %vm3915_vm0, %v3916_v6  ;;  %3706 = vmatpush3.msra.mxu1 %v2056_v53 }
0x142a   : > { %3798 = vmatprep.subr.bf16.mxu1 %v3914_v3 }
0x14f7   : > { %v2800_v33 = vpop.f32.mrb[22].mxu1 }
0x14f8   : > { %v2804_v54 = vadd.f32 %v2800_v33, %v4349_v20  ;;  %v3690_v55 = vpop.f32.mrb[23].mxu1  ;;  %v3178_v20 = vld [vmem:[%s4483_s20 + $0x10] sm:$0xff]  ;;  %v3450_v33 = vld [vmem:[%s4485_s22] ss:$0 sm:$0xff] }
0x14f9   : > { %v3802_v24 = vpack.c.bf16 %v3179_v23, %v3178_v20  ;;  %v3451_v55 = vld [vmem:[%s4486_s23] ss:$0 sm:$0xff] }
0x14fb   : > { %v2975_v56 = vpop.f32.mrb[24].mxu1 }
0x14fc   : > { %v3704_v57 = vpop.f32.mrb[25].mxu1  ;;  %3708 = vmatmul.mubr.msk.f32.vlgmr.msra.gmra.mrb[26].mxu1 %vm882_vm2, %v2975_v56 }
0x14fd   : > { %3737 = vmatprep.mubr.msk.f32.mxu1 %vm3915_vm0, %v3916_v6  ;;  %v3091_v6 = vld [vmem:[%s4481_s18] sm:$0xff]  ;;  %3800 = vmatpush3.bf16.msra.mxu1 %v3799_v22 }
0x14fe   : > { %3801 = vmatprep.subr.bf16.mxu1 %v3914_v3 }
0x1501   : > { %3803 = vmatpush3.bf16.msra.mxu1 %v3802_v24 }
0x1502   : > { %3804 = vmatprep.subr.bf16.mxu1 %v3914_v3 }
0x1505   : > { %3806 = vmatpush3.bf16.msra.mxu1 %v3805_v17 }
0x1506   : > { %3807 = vmatprep.subr.bf16.mxu1 %v3914_v3 }
0x15cf   : > { %v3048_v58 = vpop.f32.mrb[26].mxu1 }
0x15d0   : > { %v3052_v59 = vadd.f32 %v3048_v58, %v2804_v54  ;;  %v3709_v60 = vpop.f32.mrb[27].mxu1 }
0x15d2   : > { %v3053_v62 = vadd.f32 %v3052_v59, %v4250_v2  ;;  %v3793_v2 = vpack.c.bf16 %v3092_v10, %v3091_v6 }
0x15d4   : > { %v3061_v63 = vadd.f32 %v3443_v61, %v3053_v62  ;;  %3794 = vmatpush3.bf16.msra.mxu0 %v3793_v2 }
0x15d5   : > { %3795 = vmatprep.subr.bf16.mxu0 %v3914_v3  ;;  %v3182_v3 = vld [vmem:[%s4483_s20 + $0x30] sm:$0xff] }
0x15d6   : > { %v3064_v0 = vsel %vm800_vm1, %v3061_v63, 0.0  ;;  %v3808_v36 = vpack.c.bf16 %v3183_v35, %v3182_v3 }
0x15d7   : > { %3065 = vadd.xlane.f32.xlu0 %v3064_v0 }
0x15d8   : > { %3797 = vmatpush3.bf16.msra.mxu0 %v3796_v16  ;;  %3809 = vmatpush3.bf16.msra.mxu1 %v3808_v36 }
0x1664   : > { %v3066_v1 = vpop.xlane.xlu0 %3065 }
0x1665   : > { %v3067_v4 = vmul.f32 0.03125, %v3066_v1 }
0x1667   : > { %v3068_v5 = vsub.f32 %v3061_v63, %v3067_v4 }
0x1669   : > { %v3069_v7 = vmul.f32 %v3068_v5, %v3068_v5 }
0x166b   : > { %v3070_v9 = vsel %vm800_vm1, %v3069_v7, 0.0 }
0x166c   : > { %3071 = vadd.xlane.f32.xlu1 %v3070_v9 }
0x16f9   : > { %v3072_v26 = vpop.xlane.xlu1 %3071 }
0x16fa   : > { %v3073_v27 = vmul.f32 0.03125, %v3072_v26 }
0x16fc   : > { %v3074_v11 = vadd.f32 1e-05, %v3073_v27 }
0x16fe   : > { %3902 = vrsqrt.f32 %v3074_v11 }
0x1708   : > { %v3903_v28 = vpop.eup %3902 }
0x1709   : > { %v3076_v30 = vmul.f32 %v3903_v28, %v3068_v5 }
0x170b   : > { %v3083_v32 = vmul.f32 %v3444_v29, %v3076_v30 }
0x170d   : > { %v3090_v34 = vadd.f32 %v3445_v31, %v3083_v32 }
0x170f   : > { %3719 = vmatmul.mubr.msk.f32.vlgmr.msra.gmra.mrb[26].mxu0 %vm800_vm1, %v3090_v34 }
0x17e2   : > { %v3171_v38 = vpop.f32.mrb[26].mxu0 }
0x17e3   : > { %v3172_v21 = vadd.f32 %v3446_v37, %v3171_v38  ;;  %v3720_v39 = vpop.f32.mrb[27].mxu0 }
0x17e5   : > { %v3175_v40 = vmax.f32 %v3172_v21, 0.0 }
0x17e7   : > { %3738 = vmatmul.mubr.msk.f32.vlgmr.msra.gmra.mrb[28].mxu1 %vm3191_vm8, %v3175_v40 }
0x18ba   : > { %v3261_v42 = vpop.f32.mrb[28].mxu1 }
0x18bb   : > { %v3262_v43 = vadd.f32 %v3448_v41, %v3261_v42  ;;  %v3739_v44 = vpop.f32.mrb[29].mxu1 }
0x18bd   : > { %v3265_v45 = vadd.f32 %v3262_v43, %v3090_v34 }
0x18bf   : > { %v3268_v13 = vsel %vm800_vm1, %v3265_v45, 0.0 }
0x18c0   : > { %3269 = vadd.xlane.f32.xlu0 %v3268_v13 }
0x194d   : > { %v3270_v8 = vpop.xlane.xlu0 %3269 }
0x194e   : > { %v3271_v46 = vmul.f32 0.03125, %v3270_v8 }
0x1950   : > { %v3272_v47 = vsub.f32 %v3265_v45, %v3271_v46 }
0x1952   : > { %v3273_v48 = vmul.f32 %v3272_v47, %v3272_v47 }
0x1954   : > { %v3274_v49 = vsel %vm800_vm1, %v3273_v48, 0.0 }
0x1955   : > { %3275 = vadd.xlane.f32.xlu0 %v3274_v49 }
0x19e2   : > { %v3276_v50 = vpop.xlane.xlu0 %3275 }
0x19e3   : > { %v3277_v51 = vmul.f32 0.03125, %v3276_v50 }
0x19e5   : > { %v3278_v52 = vadd.f32 1e-05, %v3277_v51 }
0x19e7   : > { %3904 = vrsqrt.f32 %v3278_v52 }
0x19f1   : > { %v3905_v53 = vpop.eup %3904 }
0x19f2   : > { %v3280_v54 = vmul.f32 %v3905_v53, %v3272_v47 }
0x19f4   : > { %v3287_v56 = vmul.f32 %v3450_v33, %v3280_v54 }
0x19f6   : > { %v3294_v57 = vadd.f32 %v3451_v55, %v3287_v56 }
0x19f8   : > { %3295 = vst.msk [vmem:[%s783_s1] sm:$0xff] %vm800_vm1, %v3294_v57 }
0x19f9 PF: > { %s34_s5 = sadd.s32 1, %s3912_s5  }
0x19fa   : > { %p31_p4 = scmp.ge.s32.totalorder %s34_s5, 4  }
0x19fc   :  { %33 = sbr.rel (!%p31_p4) target bundleno = 10 (0xa), region = 155 }

// kernel: seq2seq_forward.8
= control target key start
LH: loop header
LB: loop body
LE: loop exit
PB: predicated region body
PF: predicated region fallthrough
CT: control target
= control target key end

     0   :  { %s4679_s0 = inlined_call_operand.vmem [shape: f32[2,8,32], index: 0, kind: input, shape index: {}]   ;;  %s4680_s1 = inlined_call_operand.vmem [shape: f32[2,9,32], index: 1, kind: input, shape index: {}]   ;;  %s4681_s2 = inlined_call_operand.vmem [shape: f32[2,8,8], index: 2, kind: input, shape index: {}]   ;;  %s4682_s3 = inlined_call_operand.vmem [shape: f32[2,1,9], index: 3, kind: input, shape index: {}]   ;;  %s4683_s4 = inlined_call_operand.vmem [shape: f32[32,96], index: 4, kind: input, shape index: {}]   ;;  %s4684_s5 = inlined_call_operand.vmem [shape: f32[1,96], index: 5, kind: input, shape index: {}]   ;;  %s4685_s6 = inlined_call_operand.vmem [shape: f32[32,32], index: 6, kind: input, shape index: {}]   ;;  %s4686_s7 = inlined_call_operand.vmem [shape: f32[1,32], index: 7, kind: input, shape index: {}]   ;;  %s4687_s8 = inlined_call_operand.vmem [shape: f32[1,32], index: 8, kind: input, shape index: {}]   ;;  %s4688_s9 = inlined_call_operand.vmem [shape: f32[1,32], index: 9, kind: input, shape index: {}]   ;;  %s4689_s10 = inlined_call_operand.vmem [shape: f32[32,32], index: 10, kind: input, shape index: {}]   ;;  %s4690_s11 = inlined_call_operand.vmem [shape: f32[1,32], index: 11, kind: input, shape index: {}]   ;;  %s4691_s12 = inlined_call_operand.vmem [shape: f32[32,64], index: 12, kind: input, shape index: {}]   ;;  %s4692_s13 = inlined_call_operand.vmem [shape: f32[1,64], index: 13, kind: input, shape index: {}]   ;;  %s4693_s14 = inlined_call_operand.vmem [shape: f32[32,32], index: 14, kind: input, shape index: {}]   ;;  %s4694_s15 = inlined_call_operand.vmem [shape: f32[1,32], index: 15, kind: input, shape index: {}]   ;;  %s4695_s16 = inlined_call_operand.vmem [shape: f32[1,32], index: 16, kind: input, shape index: {}]   ;;  %s4696_s17 = inlined_call_operand.vmem [shape: f32[1,32], index: 17, kind: input, shape index: {}]   ;;  %s4697_s18 = inlined_call_operand.vmem [shape: f32[32,64], index: 18, kind: input, shape index: {}]   ;;  %s4698_s19 = inlined_call_operand.vmem [shape: f32[1,64], index: 19, kind: input, shape index: {}]   ;;  %s4699_s20 = inlined_call_operand.vmem [shape: f32[64,32], index: 20, kind: input, shape index: {}]   ;;  %s4700_s21 = inlined_call_operand.vmem [shape: f32[1,32], index: 21, kind: input, shape index: {}]   ;;  %s4701_s22 = inlined_call_operand.vmem [shape: f32[1,32], index: 22, kind: input, shape index: {}]   ;;  %s4702_s23 = inlined_call_operand.vmem [shape: f32[1,32], index: 23, kind: input, shape index: {}]   ;;  %s4703_s24 = inlined_call_operand.vmem [shape: f32[2,8,32], index: 24, kind: output, shape index: {0}]   ;;  %s4704_s25 = inlined_call_operand.vmem [shape: f32[4,2,8,9], index: 25, kind: output, shape index: {1}]  }
   0x1   :  { %4722 = sst [smem:[#allocation6_spill]] %s4679_s0 }
   0x2   :  { %4723 = sst [smem:[#allocation7_spill]] %s4680_s1 }
   0x3   :  { %4724 = sst [smem:[#allocation8_spill]] %s4681_s2 }
   0x4   :  { %4725 = sst [smem:[#allocation9_spill]] %s4682_s3 }
   0x5   :  { %4726 = sst [smem:[#allocation10_spill]] %s4683_s4 }
   0x6   :  { %4727 = sst [smem:[#allocation11_spill]] %s4684_s5 }
   0x7   :  { %4728 = sst [smem:[#allocation12_spill]] %s4685_s6 }
   0x8   :  { %4729 = sst [smem:[#allocation13_spill]] %s4686_s7 }
   0x9   :  { %4730 = sst [smem:[#allocation14_spill]] %s4687_s8 }
   0xa   :  { %4731 = sst [smem:[#allocation15_spill]] %s4688_s9 }
   0xb   :  { %s4219_s29 = smov 0   ;;  %s4221_s2 = smov 0  }
   0xc   :  { %s4223_s6 = smov 0  }
   0xd LB: > { %4732 = sst [smem:[#allocation3_spill]] %s4068_s2  ;;  %s4232_s30 = sadd.s32 4294967295, %s4072_s6   ;;  %s4072_s6 = sphi %s4223_s6, %s4757_s6   ;;  %s4068_s2 = sphi %s4221_s2, %s4759_s2   ;;  %s4064_s29 = sphi %s4219_s29, %s4758_s29  }
   0xe   : > { %s4234_s7 = sadd.s32 1, %s4072_s6   ;;  %s593_s26 = sadd.s32 1, %s4068_s2 }
   0xf   : > { %4733 = sst [smem:[#allocation4_spill]] %s4234_s7  ;;  %s590_s3 = ssub.s32 %s4072_s6, %s4234_s7 }
  0x10   : > { %p591_p0 = scmp.eq.s32.totalorder %s590_s3, 0  ;;  %p603_p1 = scmp.ne.s32.totalorder %s4068_s2, %s4064_s29 }
  0x11   : > { %p604_p2 = scmp.eq.s32.totalorder %s4232_s30, 1  ;;  %p3508_p3 = scmp.ge.s32.totalorder %s4072_s6, 1 }
  0x12   : > { %s4242_s1 = scalar_select %p591_p0, %s4068_s2, %s593_s26  }
  0x13   : > { %p4244_p4 = por %p604_p2, %p603_p1  ;;  %p716_p5 = scmp.lt.s32.totalorder %s4072_s6, 3 }
  0x14   : > { %4734 = sst [smem:[#allocation5_spill]] %s4242_s1 }
  0x15   : > { %p717_p6 = pnand %p3508_p3, %p716_p5 }
  0x16   : > { %s4736_s28 = sld [smem:[#allocation10_spill]] (!%p717_p6)  ;;  %v4074_v3 = vmov (!%p717_p6), 0.0|0.0   ;;  %vm4075_vm0 = vmmov (!%p717_p6), 0   ;;  %v4076_v6 = vmov (!%p717_p6), 0.0   ;;  %p798_p7 = scmp.lt.s32.totalorder (!%p717_p6), %s4232_s30, 1  ;;  %vm834_vm1 = vcmask (!%p717_p6), 261120  }
  0x17   : > { %720 = sbr.rel (%p717_p6) target bundleno = 6657 (0x1a01), region = 116  ;;  %3868 = vmatprep.subr.bf16.mxu0 (!%p717_p6), %v4074_v3  ;;  %3677 = vmatprep.mubr.msk.f32.mxu0 (!%p717_p6), %vm4075_vm0, %v4076_v6  ;;  %s4737_s0 = sld [smem:[#allocation6_spill]] (!%p717_p6)  ;;  %vm916_vm2 = vcmask (!%p717_p6), 64512   ;;  %vm2177_vm4 = vcmask (!%p717_p6), 72704   ;;  %vm2198_vm5 = vcmask (!%p717_p6), 1040384   ;;  %vm4088_vm6 = vmmov (!%p717_p6), 1  }
  0x18   : > { %3685 = vmatprep.subr.mxu1 (!%p717_p6), %v4076_v6  ;;  %3687 = vmatprep.mubr.msk.f32.mxu1 (!%p717_p6), %vm4075_vm0, %v4076_v6  ;;  %s4709_s9 = smov (!%p717_p6), 96   ;;  %s4710_s5 = smov (!%p717_p6), 120   ;;  %vm4449_vm3 = vmpackc.low (!%p717_p6), %vm916_vm2, %vm916_vm2  ;;  %vm3225_vm8 = vcmask (!%p717_p6), 523264  }
  0x19   : > { %s4739_s6 = sld [smem:[#allocation8_spill]] (!%p717_p6)  ;;  %s4742_s7 = sld [smem:[#allocation7_spill]] (!%p717_p6)  ;;  %vm4479_vm7 = vmpackc.low (!%p717_p6), %vm2198_vm5, %vm4088_vm6 }
  0x1c   : > { %v823_v0 = vld [vmem:[%s4736_s28] sm:$0xff] (!%p717_p6)  ;;  %v824_v1 = vld [vmem:[%s4736_s28 + $0x8] sm:$0xff] (!%p717_p6)  ;;  %v825_v2 = vld [vmem:[%s4736_s28 + $0x10] sm:$0xff] (!%p717_p6) }
  0x1d   : > { %v3869_v4 = vpack.c.bf16 (!%p717_p6), %v824_v1, %v823_v0  ;;  %v826_v5 = vld [vmem:[%s4736_s28 + $0x18] sm:$0xff] (!%p717_p6)  ;;  %s4738_s28 = sld [smem:[#allocation11_spill]] (!%p717_p6) }
  0x1e   : > { %v3872_v7 = vpack.c.bf16 %v826_v5, %v825_v2  ;;  %s4268_s27 = scalar_select %p798_p7, %s4232_s30, 1 }
  0x1f   : > { %3870 = vmatpush3.bf16.msra.mxu0 %v3869_v4 }
  0x20   : > { %3871 = vmatprep.subr.bf16.mxu0 %v4074_v3  ;;  %s4272_s4 = sshll.u32 %s4268_s27, 3  ;;  %s3582_s2 = sshll.u32 %s4268_s27, 4 }
  0x21   : > { %s801_s3 = scalar_lea.vmem %s4737_s0, %s4272_s4  ;;  %s4708_s0 = smov 88  }
  0x22   : > { %v4278_v8 = vld [vmem:[%s801_s3] sm:$0xff]  ;;  %s810_s26 = scalar_lea.vmem %s4739_s6, %s4272_s4  ;;  %s4081_s3 = smov 64  }
  0x23   : > { %3873 = vmatpush3.bf16.msra.mxu0 %v3872_v7  ;;  %v3515_v9 = vld [vmem:[%s4738_s28] ss:$0 sm:$0xff]  ;;  %s4080_s28 = smov 56   ;;  %s4713_s6 = smov 80  }
  0x24   : > { %3680 = vmatprep.subr.mxu0 %v4076_v6  ;;  %v4314_v17 = vld [vmem:[%s810_s26] sm:$0xff]  ;;  %s4716_s26 = smov 112  }
  0x26   : > { %3678 = vmatmul.mubr.msk.f32.vlgmr.msra.gmra.mrb[0].mxu0 %vm834_vm1, %v4278_v8 }
  0x27   : > { %3682 = vmatprep.mubr.msk.f32.mxu0 %vm4075_vm0, %v4076_v6 }
  0xf9   : > { %v904_v10 = vpop.f32.mrb[0].mxu0 }
  0xfa   : > { %v4288_v11 = vadd.f32 %v3515_v9, %v904_v10  ;;  %v3679_v12 = vpop.f32.mrb[1].mxu0 }
  0xfc   : > { %914 = vrot.lane.b32.xlu0 %v4288_v11, %s4709_s9  ;;  %v4293_v13 = vmul.f32 0.35355338, %v4288_v11  ;;  %s4086_s9 = smov 48  }
  0xfe   : > { %1080 = vrot.lane.b32.xlu1 %v4293_v13, %s4710_s5  ;;  %s4740_s5 = sld [smem:[#allocation12_spill]] }
 0x100   : > { %1082 = vrot.lane.b32.xlu0 %v4288_v11, %s4708_s0  ;;  %s4748_s0 = sld [smem:[#allocation9_spill]] }
 0x104   : > { %v909_v36 = vld [vmem:[%s4740_s5 + $0x8] sm:$0xff]  ;;  %v908_v45 = vld [vmem:[%s4740_s5] sm:$0xff]  ;;  %v910_v12 = vld [vmem:[%s4740_s5 + $0x10] sm:$0xff] }
 0x106   : > { %s813_s1 = scalar_lea.vmem %s4748_s0, %s4268_s27  ;;  %s4749_s27 = smov 96  }
 0x16e   : > { %v915_v14 = vpop.permute.xlu0 %914 }
 0x16f   : > { %3681 = vmatpush3.xpose.msk.msra.mxu0 %vm916_vm2, %v915_v14 }
 0x170   : > { %3690 = vmatprep.subr.mxu0 %v4076_v6  ;;  %v1081_v16 = vpop.permute.xlu1 %1080 }
 0x172   : > { %v1083_v15 = vpop.permute.xlu0 %1082  ;;  %3683 = vmatmul.mubr.msk.f32.vlgmr.msra.gmra.mrb[2].mxu0 %vm916_vm2, %v4293_v13 }
 0x173   : > { %3691 = vmatpush3.xpose.msk.msra.mxu0 %vm916_vm2, %v1083_v15  ;;  %3692 = vmatprep.mubr.msk.f32.mxu0 %vm4075_vm0, %v4076_v6 }
 0x174   : > { %3700 = vmatprep.subr.mxu0 %v4076_v6 }
 0x176   : > { %3693 = vmatmul.mubr.msk.f32.vlgmr.msra.gmra.mrb[4].mxu0 %vm916_vm2, %v1081_v16 }
 0x177   : > { %3702 = vmatprep.mubr.msk.f32.mxu0 %vm4075_vm0, %v4076_v6  ;;  %3701 = vmatpush3.msra.mxu0 %v909_v36 }
 0x178   : > { %3710 = vmatprep.subr.mxu0 %v4076_v6 }
 0x245   : > { %v988_v18 = vpop.f32.mrb[2].mxu0 }
 0x246   : > { %v989_v19 = vadd.f32 %v988_v18, %v4314_v17  ;;  %v3684_v20 = vpop.f32.mrb[3].mxu0 }
 0x248   : > { %v992_v21 = vsel %vm916_vm2, %v989_v19, -inf }
 0x249   : > { %993 = vmax.xlane.f32.xlu1 %v992_v21  ;;  %v1154_v22 = vpop.f32.mrb[4].mxu0 }
 0x24a   : > { %v1155_v23 = vadd.f32 %v1154_v22, %v4314_v17  ;;  %v3694_v24 = vpop.f32.mrb[5].mxu0 }
 0x24c   : > { %v1158_v25 = vsel %vm916_vm2, %v1155_v23, -inf }
 0x24d   : > { %1159 = vmax.xlane.f32.xlu0 %v1158_v25 }
 0x2d6   : > { %v994_v26 = vpop.xlane.xlu1 %993 }
 0x2d7   : > { %v995_v27 = vsub.f32 %v989_v19, %v994_v26 }
 0x2d9   : > { %v996_v28 = vmul.f32 1.442695, %v995_v27 }
 0x2da   : > { %v1160_v29 = vpop.xlane.xlu0 %1159 }
 0x2db   : > { %4012 = vpow2.f32 %v996_v28  ;;  %v1161_v30 = vsub.f32 %v1155_v23, %v1160_v29 }
 0x2dd   : > { %v1162_v31 = vmul.f32 1.442695, %v1161_v30 }
 0x2df   : > { %4014 = vpow2.f32 %v1162_v31 }
 0x2e5   : > { %v4013_v32 = vpop.eup %4012 }
 0x2e6   : > { %v998_v33 = vsel %vm916_vm2, %v4013_v32, 0.0 }
 0x2e7   : > { %999 = vadd.xlane.f32.xlu0 %v998_v33 }
 0x2e9   : > { %v4015_v34 = vpop.eup %4014 }
 0x2ea   : > { %v1164_v35 = vsel %vm916_vm2, %v4015_v34, 0.0 }
 0x2eb   : > { %1165 = vadd.xlane.f32.xlu1 %v1164_v35 }
 0x2fc   : > { %1170 = vrot.lane.b32.xlu1 %v4288_v11, %s4080_s28  ;;  %s4712_s28 = smov 72  }
 0x2fd   : > { %1004 = vrot.lane.b32.xlu0 %v4288_v11, %s4081_s3  ;;  %s4714_s3 = smov 104  }
 0x300   : > { %1394 = vrot.lane.b32.xlu1 %v4288_v11, %s4713_s6  ;;  %s4752_s6 = smov 88  }
 0x301   : > { %1392 = vrot.lane.b32.xlu0 %v4293_v13, %s4716_s26  ;;  %s4743_s26 = sld [smem:[#allocation14_spill]] }
 0x374   : > { %v1000_v37 = vpop.xlane.xlu0 %999 }
 0x375   : > { %4016 = vrcp.f32 %v1000_v37 }
 0x378   : > { %v1166_v38 = vpop.xlane.xlu1 %1165  ;;  %v1005_v39 = vpop.permute.xlu0 %1004 }
 0x379   : > { %4018 = vrcp.f32 %v1166_v38  ;;  %3686 = vmatpush3.msra.mxu1 %v1005_v39 }
 0x37a   : > { %3695 = vmatprep.subr.mxu1 %v4076_v6 }
 0x37c   : > { %v1171_v42 = vpop.permute.xlu1 %1170  ;;  %v1393_v51 = vpop.permute.xlu0 %1392 }
 0x37f   : > { %v4017_v40 = vpop.eup %4016 }
 0x380   : > { %v1003_v41 = vmul.f32 %v4017_v40, %v4013_v32  ;;  %v1395_v49 = vpop.permute.xlu1 %1394 }
 0x382   : > { %3688 = vmatmul.mubr.msk.f32.vlgmr.msra.gmra.mrb[0].mxu1 %vm916_vm2, %v1003_v41 }
 0x383   : > { %v4019_v43 = vpop.eup %4018  ;;  %3696 = vmatpush3.msra.mxu1 %v1171_v42  ;;  %3697 = vmatprep.mubr.msk.f32.mxu1 %vm4075_vm0, %v4076_v6 }
 0x384   : > { %v1169_v44 = vmul.f32 %v4019_v43, %v4015_v34  ;;  %3705 = vmatprep.subr.mxu1 %v4076_v6 }
 0x386   : > { %3698 = vmatmul.mubr.msk.f32.vlgmr.msra.gmra.mrb[2].mxu1 %vm916_vm2, %v1169_v44 }
 0x387   : > { %3707 = vmatprep.mubr.msk.f32.mxu1 %vm4075_vm0, %v4076_v6  ;;  %3706 = vmatpush3.msra.mxu1 %v908_v45  ;;  %v1995_v45 = vld [vmem:[%s4691_s12] sm:$0xff] }
 0x388   : > { %3715 = vmatprep.subr.mxu1 %v4076_v6 }
 0x455   : > { %v1076_v46 = vpop.f32.mrb[0].mxu1 }
 0x456   : > { %v3689_v47 = vpop.f32.mrb[1].mxu1  ;;  %3708 = vmatmul.mubr.msk.f32.vlgmr.msra.gmra.mrb[4].mxu1 %vm916_vm2, %v1076_v46 }
 0x457   : > { %3717 = vmatprep.mubr.msk.f32.mxu1 %vm4075_vm0, %v4076_v6  ;;  %v1997_v47 = vld [vmem:[%s4691_s12 + $0x10] sm:$0xff] }
 0x459   : > { %v1242_v48 = vpop.f32.mrb[2].mxu1 }
 0x45a   : > { %v3699_v50 = vpop.f32.mrb[3].mxu1  ;;  %3703 = vmatmul.mubr.msk.f32.vlgmr.msra.gmra.mrb[6].mxu0 %vm916_vm2, %v1242_v48  ;;  %v1998_v48 = vld [vmem:[%s4691_s12 + $0x18] sm:$0xff] }
 0x45b   : > { %3711 = vmatpush3.xpose.msk.msra.mxu0 %vm916_vm2, %v1395_v49  ;;  %3712 = vmatprep.mubr.msk.f32.mxu0 %vm4075_vm0, %v4076_v6  ;;  %v3884_v49 = vpack.c.bf16 %v1998_v48, %v1997_v47 }
 0x45c   : > { %3720 = vmatprep.subr.mxu0 %v4076_v6 }
 0x45e   : > { %3713 = vmatmul.mubr.msk.f32.vlgmr.msra.gmra.mrb[8].mxu0 %vm916_vm2, %v1393_v51 }
 0x45f   : > { %3722 = vmatprep.mubr.msk.f32.mxu0 %vm4075_vm0, %v4076_v6  ;;  %3721 = vmatpush3.msra.mxu0 %v910_v12 }
 0x460   : > { %3730 = vmatprep.subr.mxu0 %v4076_v6 }
 0x529   : > { %v1388_v52 = vpop.f32.mrb[4].mxu1 }
 0x52a   : > { %v3709_v53 = vpop.f32.mrb[5].mxu1 }
 0x52b   : > { %v1912_v53 = vld [vmem:[%s4689_s10 + $0x8] sm:$0xff] }
 0x52d   : > { %v1315_v54 = vpop.f32.mrb[6].mxu0 }
 0x52e   : > { %v1389_v55 = vadd.f32 %v1388_v52, %v1315_v54  ;;  %v3704_v56 = vpop.f32.mrb[7].mxu0  ;;  %v1911_v52 = vld [vmem:[%s4689_s10] sm:$0xff] }
 0x52f   : > { %v3875_v54 = vpack.c.bf16 %v1912_v53, %v1911_v52  ;;  %v1914_v56 = vld [vmem:[%s4689_s10 + $0x18] sm:$0xff] }
 0x531   : > { %v1466_v57 = vpop.f32.mrb[8].mxu0 }
 0x532   : > { %v1467_v58 = vadd.f32 %v1466_v57, %v4314_v17  ;;  %v3714_v59 = vpop.f32.mrb[9].mxu0 }
 0x534   : > { %v1470_v60 = vsel %vm916_vm2, %v1467_v58, -inf }
 0x535   : > { %1471 = vmax.xlane.f32.xlu1 %v1470_v60 }
 0x546   : > { %1634 = vrot.lane.b32.xlu1 %v4288_v11, %s4712_s28  ;;  %s4087_s28 = smov 40  }
 0x54a   : > { %1632 = vrot.lane.b32.xlu1 %v4293_v13, %s4714_s3  ;;  %s4753_s3 = smov 112  }
 0x5c2   : > { %v1472_v61 = vpop.xlane.xlu1 %1471 }
 0x5c3   : > { %v1473_v62 = vsub.f32 %v1467_v58, %v1472_v61 }
 0x5c5   : > { %v1474_v63 = vmul.f32 1.442695, %v1473_v62  ;;  %v3534_v62 = vld [vmem:[%s4743_s26] ss:$0 sm:$0xff] }
 0x5c6   : > { %v1635_v7 = vpop.permute.xlu1 %1634 }
 0x5c7   : > { %4020 = vpow2.f32 %v1474_v63 }
 0x5ca   : > { %v1633_v10 = vpop.permute.xlu1 %1632 }
 0x5d1   : > { %v4021_v0 = vpop.eup %4020 }
 0x5d2   : > { %v1476_v1 = vsel %vm916_vm2, %v4021_v0, 0.0 }
 0x5d3   : > { %1477 = vadd.xlane.f32.xlu0 %v1476_v1 }
 0x5e9   : > { %1482 = vrot.lane.b32.xlu0 %v4288_v11, %s4086_s9  ;;  %s4741_s9 = sld [smem:[#allocation13_spill]] }
 0x5ef   : > { %v3533_v36 = vld [vmem:[%s4741_s9] ss:$0 sm:$0xff]  ;;  %s4747_s9 = smov 120  }
 0x660   : > { %v1478_v2 = vpop.xlane.xlu0 %1477 }
 0x661   : > { %4022 = vrcp.f32 %v1478_v2 }
 0x664   : > { %v1483_v4 = vpop.permute.xlu0 %1482 }
 0x665   : > { %3716 = vmatpush3.msra.mxu1 %v1483_v4  ;;  %v3538_v4 = vld [vmem:[%s4692_s13] ss:$0 sm:$0xff] }
 0x666   : > { %3725 = vmatprep.subr.mxu1 %v4076_v6 }
 0x66b   : > { %v4023_v5 = vpop.eup %4022 }
 0x66c   : > { %v1481_v9 = vmul.f32 %v4023_v5, %v4021_v0 }
 0x66e   : > { %3718 = vmatmul.mubr.msk.f32.vlgmr.msra.gmra.mrb[6].mxu1 %vm916_vm2, %v1481_v9 }
 0x66f   : > { %3726 = vmatpush3.xpose.msk.msra.mxu1 %vm916_vm2, %v1635_v7  ;;  %3727 = vmatprep.mubr.msk.f32.mxu1 %vm4075_vm0, %v4076_v6 }
 0x670   : > { %3735 = vmatprep.subr.mxu1 %v4076_v6 }
 0x672   : > { %3728 = vmatmul.mubr.msk.f32.vlgmr.msra.gmra.mrb[8].mxu1 %vm916_vm2, %v1633_v10 }
 0x673   : > { %3737 = vmatprep.mubr.msk.f32.mxu1 %vm4075_vm0, %v4076_v6 }
 0x741   : > { %v1554_v13 = vpop.f32.mrb[6].mxu1 }
 0x742   : > { %v3719_v14 = vpop.f32.mrb[7].mxu1  ;;  %3723 = vmatmul.mubr.msk.f32.vlgmr.msra.gmra.mrb[10].mxu0 %vm916_vm2, %v1554_v13 }
 0x743   : > { %3732 = vmatprep.mubr.msk.f32.mxu0 %vm4075_vm0, %v4076_v6 }
 0x745   : > { %v1706_v15 = vpop.f32.mrb[8].mxu1 }
 0x746   : > { %v1707_v16 = vadd.f32 %v1706_v15, %v4314_v17  ;;  %v3729_v18 = vpop.f32.mrb[9].mxu1  ;;  %v911_v17 = vld [vmem:[%s4740_s5 + $0x18] sm:$0xff]  ;;  %s4744_s5 = sld [smem:[#allocation15_spill]]  ;;  %v3536_v15 = vld [vmem:[%s4690_s11] ss:$0 sm:$0xff] }
 0x747   : > { %3736 = vmatpush3.msra.mxu1 %v911_v17 }
 0x748   : > { %v1710_v19 = vsel %vm916_vm2, %v1707_v16, -inf }
 0x749   : > { %1711 = vmax.xlane.f32.xlu0 %v1710_v19 }
 0x74c   : > { %v3535_v0 = vld [vmem:[%s4744_s5] ss:$0 sm:$0xff]  ;;  %s795_s5 = sand.u32 1, %s4064_s29  }
 0x75f   : > { %1722 = vrot.lane.b32.xlu0 %v4288_v11, %s4087_s28  ;;  %s806_s28 = scalar_lea.vmem %s4742_s7, %s3582_s2  ;;  %s3509_s2 = sshll.u32 %s795_s5, 5 }
 0x760   : > { %v819_v50 = vld [vmem:[%s806_s28] sm:$0xff]  ;;  %v820_v51 = vld [vmem:[%s806_s28 + $0x8] sm:$0x1]  ;;  %s4486_s29 = scalar_lea.vmem [#allocation2], %s3509_s2  ;;  %s4754_s28 = smov 104  }
 0x761   : > { %s817_s5 = scalar_lea.vmem %s4703_s24, %s4272_s4  ;;  %s3579_s2 = sshll.u32 (%p4244_p4), %s4232_s30, 3 }
 0x7d6   : > { %v1712_v20 = vpop.xlane.xlu0 %1711 }
 0x7d7   : > { %v1713_v21 = vsub.f32 %v1707_v16, %v1712_v20 }
 0x7d9   : > { %v1714_v22 = vmul.f32 1.442695, %v1713_v21  ;;  %v4471_v21 = vld [vmem:[%s813_s1] ss:$0 sm:$0xff]  ;;  %s4755_s1 = smov 80  }
 0x7da   : > { %v1723_v23 = vpop.permute.xlu0 %1722 }
 0x7db   : > { %4024 = vpow2.f32 %v1714_v22  ;;  %3731 = vmatpush3.msra.mxu0 %v1723_v23 }
 0x7dc   : > { %3874 = vmatprep.subr.bf16.mxu0 %v4074_v3 }
 0x7e5   : > { %v4025_v24 = vpop.eup %4024 }
 0x7e6   : > { %v1716_v25 = vsel %vm916_vm2, %v4025_v24, 0.0 }
 0x7e7   : > { %1717 = vadd.xlane.f32.xlu1 %v1716_v25 }
 0x815   : > { %v1627_v26 = vpop.f32.mrb[10].mxu0 }
 0x816   : > { %v1631_v27 = vadd.f32 %v1627_v26, %v1389_v55  ;;  %v3724_v11 = vpop.f32.mrb[11].mxu0  ;;  %v1913_v55 = vld [vmem:[%s4689_s10 + $0x10] sm:$0xff] }
 0x817   : > { %v3878_v57 = vpack.c.bf16 %v1914_v56, %v1913_v55 }
 0x874   : > { %v1718_v28 = vpop.xlane.xlu1 %1717 }
 0x875   : > { %4026 = vrcp.f32 %v1718_v28 }
 0x87f   : > { %v4027_v29 = vpop.eup %4026 }
 0x880   : > { %v1721_v30 = vmul.f32 %v4027_v29, %v4025_v24 }
 0x882   : > { %3733 = vmatmul.mubr.msk.f32.vlgmr.msra.gmra.mrb[12].mxu0 %vm916_vm2, %v1721_v30 }
 0x883   : > { %3748 = vmatprep.mubr.msk.f32.mxu0 %vm4075_vm0, %v4076_v6  ;;  %3876 = vmatpush3.bf16.msra.mxu0 %v3875_v54 }
 0x884   : > { %3877 = vmatprep.subr.bf16.mxu0 %v4074_v3 }
 0x887   : > { %3879 = vmatpush3.bf16.msra.mxu0 %v3878_v57 }
 0x888   : > { %3888 = vmatprep.subr.bf16.mxu0 %v4074_v3 }
 0x955   : > { %v1794_v31 = vpop.f32.mrb[12].mxu0 }
 0x956   : > { %v3734_v32 = vpop.f32.mrb[13].mxu0  ;;  %3738 = vmatmul.mubr.msk.f32.vlgmr.msra.gmra.mrb[10].mxu1 %vm916_vm2, %v1794_v31 }
 0x957   : > { %3759 = vmatprep.mubr.msk.f32.mxu1 %vm834_vm1, %v819_v50 }
 0xa29   : > { %v1867_v33 = vpop.f32.mrb[10].mxu1 }
 0xa2a   : > { %v1871_v34 = vadd.f32 %v1867_v33, %v1631_v27  ;;  %v3739_v35 = vpop.f32.mrb[11].mxu1 }
 0xa2c   : > { %v1872_v37 = vadd.f32 %v1871_v34, %v4278_v8  ;;  %v1996_v8 = vld [vmem:[%s4691_s12 + $0x8] sm:$0xff] }
 0xa2d   : > { %v3880_v46 = vpack.c.bf16 %v1996_v8, %v1995_v45 }
 0xa2e   : > { %v1880_v38 = vadd.f32 %v3533_v36, %v1872_v37 }
 0xa2f   : > { %3881 = vmatprep.subr.bf16.mxu1 %v3880_v46 }
 0xa30   : > { %v1883_v39 = vsel %vm834_vm1, %v1880_v38, 0.0  ;;  %3883 = vmatpush3.bf16.msra.mxu1 %v3880_v46 }
 0xa31   : > { %1884 = vadd.xlane.f32.xlu1 %v1883_v39  ;;  %3885 = vmatprep.subr.bf16.mxu1 %v3884_v49 }
 0xa34   : > { %3887 = vmatpush3.bf16.msra.mxu1 %v3884_v49 }
 0xa35   : > { %3892 = vmatprep.subr.bf16.mxu1 %v4074_v3 }
 0xa37   : > { %3760 = vmatmul.mubr.msk.f32.vlgmr.msra.gmra.mrb[12].mxu1 %vm834_vm1, %v820_v51 }
 0xa38   : > { %3773 = vmatprep.mubr.msk.f32.mxu1 %vm4075_vm0, %v4076_v6 }
 0xabe   : > { %v1885_v40 = vpop.xlane.xlu1 %1884 }
 0xabf   : > { %v1887_v41 = vmul.f32 0.03125, %v1885_v40 }
 0xac1   : > { %v1888_v42 = vsub.f32 %v1880_v38, %v1887_v41 }
 0xac3   : > { %v1889_v43 = vmul.f32 %v1888_v42, %v1888_v42 }
 0xac5   : > { %v1890_v44 = vsel %vm834_vm1, %v1889_v43, 0.0 }
 0xac6   : > { %1891 = vadd.xlane.f32.xlu1 %v1890_v44 }
 0xb0a   : > { %v3761_v5 = vpop.f32.mrb[12].mxu1 }
 0xb0b   : > { %v2084_v7 = vadd.f32 %v3761_v5, %v3538_v4  ;;  %v2078_v9 = vpop.f32.mrb[13].mxu1 }
 0xb0c   : > { %v2079_v10 = vadd.f32 %v3538_v4, %v2078_v9 }
 0xb0e   : > { %v4453_v13 = vpack.i.bf16 %v2084_v7, %v2079_v10  ;;  %v3889_v14 = vpack.c.bf16 %v2084_v7, %v2079_v10 }
 0xb10   : > { %3983 = vrot.lane.b32.xlu0 %v4453_v13, %s4747_s9 }
 0xb53   : > { %v1892_v58 = vpop.xlane.xlu1 %1891 }
 0xb54   : > { %v1893_v59 = vmul.f32 0.03125, %v1892_v58 }
 0xb56   : > { %v1894_v60 = vadd.f32 1e-05, %v1893_v59 }
 0xb58   : > { %4028 = vrsqrt.f32 %v1894_v60 }
 0xb62   : > { %v4029_v61 = vpop.eup %4028 }
 0xb63   : > { %v1896_v63 = vmul.f32 %v4029_v61, %v1888_v42  ;;  %v2087_v42 = vld [vmem:[%s4693_s14] sm:$0xff] }
 0xb65   : > { %v1903_v1 = vmul.f32 %v3534_v62, %v1896_v63  ;;  %v2088_v62 = vld [vmem:[%s4693_s14 + $0x8] sm:$0xff] }
 0xb67   : > { %v4438_v2 = vadd.f32 %v3535_v0, %v1903_v1 }
 0xb69   : > { %3749 = vmatmul.mubr.msk.f32.vlgmr.msra.gmra.mrb[14].mxu0 %vm834_vm1, %v4438_v2 }
 0xb6a   : > { %3766 = vmatprep.mubr.msk.f32.mxu0 %vm4075_vm0, %v4076_v6  ;;  %3891 = vmatpush3.bf16.xpose.msk.msra.mxu0 %vm4449_vm3, %v3889_v14 }
 0xb6b   : > { %3900 = vmatprep.subr.bf16.mxu0 %v4074_v3 }
 0xb82   : > { %v3984_v35 = vpop.permute.xlu0 %3983 }
 0xb83   : > { %v3986_v37 = vunpack.i.h.bf16 %v3984_v35  ;;  %v3985_v38 = vunpack.i.l.bf16 %v3984_v35 }
 0xb85   : > { %v3897_v40 = vpack.c.bf16 %v3986_v37, %v3985_v38 }
 0xc3c   : > { %v1991_v16 = vpop.f32.mrb[14].mxu0 }
 0xc3d   : > { %v1992_v18 = vadd.f32 %v3536_v15, %v1991_v16  ;;  %v3750_v19 = vpop.f32.mrb[15].mxu0 }
 0xc3f   : > { %v2091_v20 = vmul.f32 0.35355338, %v1992_v18 }
 0xc41   : > { %2271 = vrot.lane.b32.xlu0 %v2091_v20, %s4747_s9  ;;  %3767 = vmatmul.mubr.msk.f32.vlgmr.msra.gmra.mrb[16].mxu0 %vm916_vm2, %v2091_v20 }
 0xc42   : > { %3787 = vmatprep.mubr.msk.f32.mxu0 %vm4075_vm0, %v4076_v6 }
 0xcb3   : > { %v2272_v41 = vpop.permute.xlu0 %2271 }
 0xd14   : > { %v2173_v22 = vpop.f32.mrb[16].mxu0 }
 0xd15   : > { %v2174_v23 = vadd.f32 %v4471_v21, %v2173_v22  ;;  %v3768_v24 = vpop.f32.mrb[17].mxu0 }
 0xd17   : > { %v2178_v25 = vsel %vm2177_vm4, %v2174_v23, -inf }
 0xd18   : > { %2179 = vmax.xlane.f32.xlu1 %v2178_v25 }
 0xda5   : > { %v2180_v17 = vpop.xlane.xlu1 %2179 }
 0xda6   : > { %v2181_v26 = vsub.f32 %v2174_v23, %v2180_v17 }
 0xda8   : > { %v2182_v27 = vmul.f32 1.442695, %v2181_v26 }
 0xdaa   : > { %4030 = vpow2.f32 %v2182_v27 }
 0xdb4   : > { %v4031_v11 = vpop.eup %4030 }
 0xdb5   : > { %v2184_v28 = vsel %vm2177_vm4, %v4031_v11, 0.0 }
 0xdb6   : > { %2185 = vadd.xlane.f32.xlu1 %v2184_v28 }
 0xdc7   : > { %3978 = vrot.lane.b32.xlu1 %v4453_v13, %s4749_s27  ;;  %s4756_s27 = smov 72  }
 0xe43   : > { %v2186_v29 = vpop.xlane.xlu1 %2185 }
 0xe44   : > { %4032 = vrcp.f32 %v2186_v29 }
 0xe47   : > { %v3979_v30 = vpop.permute.xlu1 %3978 }
 0xe48   : > { %v3981_v31 = vunpack.i.h.bf16 %v3979_v30  ;;  %v3980_v32 = vunpack.i.l.bf16 %v3979_v30 }
 0xe4a   : > { %v3893_v34 = vpack.c.bf16 %v3981_v31, %v3980_v32 }
 0xe4c   : > { %3895 = vmatpush3.bf16.msk.msra.mxu1 %vm4479_vm7, %v3893_v34 }
 0xe4d   : > { %3896 = vmatprep.subr.bf16.mxu1 %v4074_v3 }
 0xe4e   : > { %v4033_v36 = vpop.eup %4032 }
 0xe4f   : > { %v2189_v39 = vmul.f32 %v4033_v36, %v4031_v11 }
 0xe51   : > { %3330 = vst.msk [vmem:[%s4486_s29] sm:$0xff] %vm2177_vm4, %v2189_v39  ;;  %3774 = vmatmul.mubr.msk.f32.vlgmr.msra.gmra.mrb[14].mxu1 %vm2177_vm4, %v2189_v39 }
 0xe52   : > { %3780 = vmatprep.mubr.msk.f32.mxu1 %vm4075_vm0, %v4076_v6 }
 0xe55   : > { %3899 = vmatpush3.bf16.xpose.msk.msra.mxu1 %vm4449_vm3, %v3897_v40 }
 0xe56   : > { %3795 = vmatprep.subr.mxu1 %v4076_v6 }
 0xe5c   : > { %3781 = vmatmul.mubr.msk.f32.vlgmr.msra.gmra.mrb[16].mxu1 %vm916_vm2, %v2272_v41 }
 0xe5d   : > { %3797 = vmatprep.mubr.msk.f32.mxu1 %vm4075_vm0, %v4076_v6  ;;  %3796 = vmatpush3.msra.mxu1 %v2087_v42 }
 0xe5e   : > { %3908 = vmatprep.subr.bf16.mxu1 %v4074_v3 }
 0xf24   : > { %v2267_v43 = vpop.f32.mrb[14].mxu1 }
 0xf25   : > { %v3775_v44 = vpop.f32.mrb[15].mxu1  ;;  %3798 = vmatmul.mubr.msk.f32.vlgmr.msra.gmra.mrb[18].mxu1 %vm916_vm2, %v2267_v43 }
 0xf26   : > { %3811 = vmatprep.mubr.msk.f32.mxu1 %vm4075_vm0, %v4076_v6 }
 0xf2f   : > { %v2349_v45 = vpop.f32.mrb[16].mxu1 }
 0xf30   : > { %v2350_v8 = vadd.f32 %v4471_v21, %v2349_v45  ;;  %v3782_v46 = vpop.f32.mrb[17].mxu1 }
 0xf32   : > { %v2353_v47 = vsel %vm2177_vm4, %v2350_v8, -inf }
 0xf33   : > { %2354 = vmax.xlane.f32.xlu0 %v2353_v47 }
 0xf49   : > { %3988 = vrot.lane.b32.xlu0 %v4453_v13, %s4752_s6  ;;  %s3352_s6 = scalar_lea.vmem (%p4244_p4), %s4704_s25, %s3579_s2 }
 0xf4d   : > { %2591 = vrot.lane.b32.xlu0 %v2091_v20, %s4753_s3 }
 0xf51   : > { %3998 = vrot.lane.b32.xlu0 %v4453_v13, %s4754_s28 }
 0xf55   : > { %2839 = vrot.lane.b32.xlu0 %v2091_v20, %s4754_s28 }
 0xfc0   : > { %v2355_v48 = vpop.xlane.xlu0 %2354 }
 0xfc1   : > { %v2356_v49 = vsub.f32 %v2350_v8, %v2355_v48 }
 0xfc3   : > { %v2357_v50 = vmul.f32 1.442695, %v2356_v49 }
 0xfc4   : > { %v3989_v51 = vpop.permute.xlu0 %3988 }
 0xfc5   : > { %4034 = vpow2.f32 %v2357_v50  ;;  %v3991_v52 = vunpack.i.h.bf16 %v3989_v51  ;;  %v3990_v53 = vunpack.i.l.bf16 %v3989_v51 }
 0xfc7   : > { %v3901_v54 = vpack.c.bf16 %v3991_v52, %v3990_v53  ;;  %v2090_v53 = vld [vmem:[%s4693_s14 + $0x18] sm:$0xff] }
 0xfc8   : > { %v2592_v0 = vpop.permute.xlu0 %2591 }
 0xfc9   : > { %3903 = vmatpush3.bf16.msk.msra.mxu0 %vm4479_vm7, %v3901_v54 }
 0xfca   : > { %3790 = vmatprep.subr.mxu0 %v4076_v6 }
 0xfcc   : > { %v3999_v9 = vpop.permute.xlu0 %3998 }
 0xfcd   : > { %v4001_v14 = vunpack.i.h.bf16 %v3999_v9  ;;  %v4000_v15 = vunpack.i.l.bf16 %v3999_v9 }
 0xfcf   : > { %v4035_v55 = vpop.eup %4034  ;;  %v3913_v16 = vpack.c.bf16 %v4001_v14, %v4000_v15  ;;  %v3127_v14 = vld [vmem:[%s4697_s18 + $0x10] sm:$0xff]  ;;  %v3128_v15 = vld [vmem:[%s4697_s18 + $0x18] sm:$0xff] }
 0xfd0   : > { %v2359_v56 = vsel %vm2177_vm4, %v4035_v55, 0.0  ;;  %v2840_v18 = vpop.permute.xlu0 %2839 }
 0xfd1   : > { %2360 = vadd.xlane.f32.xlu1 %v2359_v56 }
 0xfe2   : > { %3993 = vrot.lane.b32.xlu1 %v4453_v13, %s4753_s3 }
 0xff8   : > { %v2587_v57 = vpop.f32.mrb[18].mxu1 }
 0xff9   : > { %v3799_v58 = vpop.f32.mrb[19].mxu1 }
0x105e   : > { %v2361_v59 = vpop.xlane.xlu1 %2360 }
0x105f   : > { %4036 = vrcp.f32 %v2361_v59 }
0x1062   : > { %v3994_v63 = vpop.permute.xlu1 %3993 }
0x1063   : > { %v3996_v1 = vunpack.i.h.bf16 %v3994_v63  ;;  %v3995_v4 = vunpack.i.l.bf16 %v3994_v63 }
0x1065   : > { %v3905_v5 = vpack.c.bf16 %v3996_v1, %v3995_v4 }
0x1069   : > { %v4037_v60 = vpop.eup %4036 }
0x106a   : > { %v2364_v61 = vmul.f32 %v4037_v60, %v4035_v55 }
0x106c   : > { %3575 = vst.msk [vmem:[%s4486_s29 + $0x8] sm:$0xff] %vm2177_vm4, %v2364_v61  ;;  %3788 = vmatmul.mubr.msk.f32.vlgmr.msra.gmra.mrb[18].mxu0 %vm2177_vm4, %v2364_v61  ;;  %v3566_v61 = vld [vmem:[%s4694_s15] ss:$0 sm:$0xff] }
0x106d   : > { %3791 = vmatpush3.msra.mxu0 %v2088_v62  ;;  %3792 = vmatprep.mubr.msk.f32.mxu0 %vm4075_vm0, %v4076_v6 }
0x106e   : > { %3904 = vmatprep.subr.bf16.mxu0 %v4074_v3 }
0x113f   : > { %v2441_v7 = vpop.f32.mrb[18].mxu0 }
0x1140   : > { %v3789_v10 = vpop.f32.mrb[19].mxu0  ;;  %3793 = vmatmul.mubr.msk.f32.vlgmr.msra.gmra.mrb[20].mxu0 %vm916_vm2, %v2441_v7 }
0x1141   : > { %3907 = vmatpush3.bf16.xpose.msk.msra.mxu0 %vm4449_vm3, %v3905_v5  ;;  %3804 = vmatprep.mubr.msk.f32.mxu0 %vm4075_vm0, %v4076_v6  ;;  %v3126_v10 = vld [vmem:[%s4697_s18 + $0x8] sm:$0xff] }
0x1142   : > { %3912 = vmatprep.subr.bf16.mxu0 %v4074_v3 }
0x1148   : > { %3805 = vmatmul.mubr.msk.f32.vlgmr.msra.gmra.mrb[22].mxu0 %vm916_vm2, %v2592_v0 }
0x1149   : > { %3915 = vmatpush3.bf16.xpose.msk.msra.mxu0 %vm4449_vm3, %v3913_v16  ;;  %3823 = vmatprep.mubr.msk.f32.mxu0 %vm4075_vm0, %v4076_v6  ;;  %v3924_v16 = vpack.c.bf16 %v3128_v15, %v3127_v14 }
0x114a   : > { %3920 = vmatprep.subr.bf16.mxu0 %v4074_v3 }
0x1150   : > { %3824 = vmatmul.mubr.msk.f32.vlgmr.msra.gmra.mrb[24].mxu0 %vm916_vm2, %v2840_v18  ;;  %v3210_v18 = vld [vmem:[%s4699_s20] sm:$0xff] }
0x1151   : > { %3846 = vmatprep.mubr.msk.f32.mxu0 %vm4075_vm0, %v4076_v6 }
0x1213   : > { %v2514_v19 = vpop.f32.mrb[20].mxu0 }
0x1214   : > { %v4544_v20 = vadd.f32 %v2587_v57, %v2514_v19  ;;  %v3794_v22 = vpop.f32.mrb[21].mxu0  ;;  %v3211_v19 = vld [vmem:[%s4699_s20 + $0x8] sm:$0xff] }
0x1215   : > { %v3927_v22 = vpack.c.bf16 %v3211_v19, %v3210_v18 }
0x121b   : > { %v2669_v23 = vpop.f32.mrb[22].mxu0 }
0x121c   : > { %v2670_v24 = vadd.f32 %v4471_v21, %v2669_v23  ;;  %v3806_v12 = vpop.f32.mrb[23].mxu0  ;;  %v3213_v23 = vld [vmem:[%s4699_s20 + $0x18] sm:$0xff] }
0x121d   : > { %v3214_v12 = vld [vmem:[%s4699_s20 + $0x20] sm:$0xff] }
0x121e   : > { %v2673_v25 = vsel %vm2177_vm4, %v2670_v24, -inf }
0x121f   : > { %2674 = vmax.xlane.f32.xlu1 %v2673_v25  ;;  %v3215_v25 = vld [vmem:[%s4699_s20 + $0x28] sm:$0xff] }
0x1223   : > { %v2917_v17 = vpop.f32.mrb[24].mxu0 }
0x1224   : > { %v2918_v26 = vadd.f32 %v4471_v21, %v2917_v17  ;;  %v3825_v27 = vpop.f32.mrb[25].mxu0  ;;  %v3933_v17 = vpack.c.bf16 %v3215_v25, %v3214_v12 }
0x1226   : > { %v2921_v11 = vsel %vm2177_vm4, %v2918_v26, -inf }
0x1227   : > { %2922 = vmax.xlane.f32.xlu1 %v2921_v11 }
0x12ac   : > { %v2675_v28 = vpop.xlane.xlu1 %2674 }
0x12ad   : > { %v2676_v29 = vsub.f32 %v2670_v24, %v2675_v28 }
0x12af   : > { %v2677_v30 = vmul.f32 1.442695, %v2676_v29  ;;  %v3567_v29 = vld [vmem:[%s4695_s16] ss:$0 sm:$0xff] }
0x12b1   : > { %4038 = vpow2.f32 %v2677_v30 }
0x12b4   : > { %v2923_v31 = vpop.xlane.xlu1 %2922 }
0x12b5   : > { %v2924_v32 = vsub.f32 %v2918_v26, %v2923_v31  ;;  %v3568_v31 = vld [vmem:[%s4696_s17] ss:$0 sm:$0xff] }
0x12b7   : > { %v2925_v34 = vmul.f32 1.442695, %v2924_v32 }
0x12b9   : > { %4040 = vpow2.f32 %v2925_v34 }
0x12bb   : > { %v4039_v35 = vpop.eup %4038 }
0x12bc   : > { %v2679_v36 = vsel %vm2177_vm4, %v4039_v35, 0.0 }
0x12bd   : > { %2680 = vadd.xlane.f32.xlu0 %v2679_v36 }
0x12c3   : > { %v4041_v37 = vpop.eup %4040 }
0x12c4   : > { %v2927_v38 = vsel %vm2177_vm4, %v4041_v37, 0.0 }
0x12c5   : > { %2928 = vadd.xlane.f32.xlu1 %v2927_v38 }
0x12d3   : > { %4003 = vrot.lane.b32.xlu0 %v4453_v13, %s4755_s1 }
0x12d6   : > { %4008 = vrot.lane.b32.xlu1 %v4453_v13, %s4756_s27  ;;  %v2089_v13 = vld [vmem:[%s4693_s14 + $0x10] sm:$0xff] }
0x134a   : > { %v2681_v21 = vpop.xlane.xlu0 %2680 }
0x134b   : > { %4042 = vrcp.f32 %v2681_v21 }
0x134e   : > { %v4004_v39 = vpop.permute.xlu0 %4003 }
0x134f   : > { %v4006_v40 = vunpack.i.h.bf16 %v4004_v39  ;;  %v4005_v41 = vunpack.i.l.bf16 %v4004_v39 }
0x1351   : > { %v3909_v42 = vpack.c.bf16 %v4006_v40, %v4005_v41  ;;  %v3571_v41 = vld [vmem:[%s4700_s21] ss:$0 sm:$0xff] }
0x1352   : > { %v2929_v43 = vpop.xlane.xlu1 %2928 }
0x1353   : > { %4044 = vrcp.f32 %v2929_v43  ;;  %3911 = vmatpush3.bf16.msk.msra.mxu1 %vm4479_vm7, %v3909_v42 }
0x1354   : > { %3814 = vmatprep.subr.mxu1 %v4076_v6 }
0x1355   : > { %v4043_v44 = vpop.eup %4042 }
0x1356   : > { %v2684_v45 = vmul.f32 %v4043_v44, %v4039_v35  ;;  %v4009_v47 = vpop.permute.xlu1 %4008  ;;  %v3217_v35 = vld [vmem:[%s4699_s20 + $0x38] sm:$0xff] }
0x1357   : > { %v4011_v48 = vunpack.i.h.bf16 %v4009_v47  ;;  %v4010_v49 = vunpack.i.l.bf16 %v4009_v47 }
0x1358   : > { %3576 = vst.msk [vmem:[%s4486_s29 + $0x10] sm:$0xff] %vm2177_vm4, %v2684_v45  ;;  %3812 = vmatmul.mubr.msk.f32.vlgmr.msra.gmra.mrb[20].mxu1 %vm2177_vm4, %v2684_v45 }
0x1359   : > { %3815 = vmatpush3.msra.mxu1 %v2089_v13  ;;  %3816 = vmatprep.mubr.msk.f32.mxu1 %vm4075_vm0, %v4076_v6  ;;  %v3917_v50 = vpack.c.bf16 %v4011_v48, %v4010_v49 }
0x135a   : > { %3916 = vmatprep.subr.bf16.mxu1 %v4074_v3 }
0x135d   : > { %v4045_v8 = vpop.eup %4044 }
0x135e   : > { %v2932_v46 = vmul.f32 %v4045_v8, %v4041_v37  ;;  %v3569_v37 = vld [vmem:[%s4698_s19] ss:$0 sm:$0xff] }
0x1360   : > { %3577 = vst.msk [vmem:[%s4486_s29 + $0x18] sm:$0xff] %vm2177_vm4, %v2932_v46 }
0x142b   : > { %v2761_v51 = vpop.f32.mrb[20].mxu1 }
0x142c   : > { %v3813_v52 = vpop.f32.mrb[21].mxu1  ;;  %3817 = vmatmul.mubr.msk.f32.vlgmr.msra.gmra.mrb[22].mxu1 %vm916_vm2, %v2761_v51 }
0x142d   : > { %3919 = vmatpush3.bf16.msk.msra.mxu1 %vm4479_vm7, %v3917_v50  ;;  %3830 = vmatprep.mubr.msk.f32.mxu1 %vm4075_vm0, %v4076_v6 }
0x142e   : > { %3833 = vmatprep.subr.mxu1 %v4076_v6 }
0x1430   : > { %3831 = vmatmul.mubr.msk.f32.vlgmr.msra.gmra.mrb[24].mxu1 %vm2177_vm4, %v2932_v46 }
0x1431   : > { %3835 = vmatprep.mubr.msk.f32.mxu1 %vm4075_vm0, %v4076_v6  ;;  %3834 = vmatpush3.msra.mxu1 %v2090_v53 }
0x1432   : > { %3926 = vmatprep.subr.bf16.mxu1 %v4074_v3 }
0x14ff   : > { %v2834_v54 = vpop.f32.mrb[22].mxu1 }
0x1500   : > { %v2838_v33 = vadd.f32 %v2834_v54, %v4544_v20  ;;  %v3818_v55 = vpop.f32.mrb[23].mxu1  ;;  %v3212_v20 = vld [vmem:[%s4699_s20 + $0x10] sm:$0xff]  ;;  %v3573_v54 = vld [vmem:[%s4701_s22] ss:$0 sm:$0xff] }
0x1501   : > { %v3930_v24 = vpack.c.bf16 %v3213_v23, %v3212_v20  ;;  %v3574_v55 = vld [vmem:[%s4702_s23] ss:$0 sm:$0xff] }
0x1503   : > { %v3009_v56 = vpop.f32.mrb[24].mxu1 }
0x1504   : > { %v3832_v57 = vpop.f32.mrb[25].mxu1  ;;  %3836 = vmatmul.mubr.msk.f32.vlgmr.msra.gmra.mrb[26].mxu1 %vm916_vm2, %v3009_v56 }
0x1505   : > { %3865 = vmatprep.mubr.msk.f32.mxu1 %vm4075_vm0, %v4076_v6  ;;  %v3125_v6 = vld [vmem:[%s4697_s18] sm:$0xff]  ;;  %3928 = vmatpush3.bf16.msra.mxu1 %v3927_v22 }
0x1506   : > { %3929 = vmatprep.subr.bf16.mxu1 %v4074_v3 }
0x1509   : > { %3931 = vmatpush3.bf16.msra.mxu1 %v3930_v24 }
0x150a   : > { %3932 = vmatprep.subr.bf16.mxu1 %v4074_v3 }
0x150d   : > { %3934 = vmatpush3.bf16.msra.mxu1 %v3933_v17 }
0x150e   : > { %3935 = vmatprep.subr.bf16.mxu1 %v4074_v3 }
0x15d7   : > { %v3082_v58 = vpop.f32.mrb[26].mxu1 }
0x15d8   : > { %v3086_v59 = vadd.f32 %v3082_v58, %v2838_v33  ;;  %v3837_v60 = vpop.f32.mrb[27].mxu1  ;;  %v3386_v58 = vld [vmem:[%s4486_s29] sm:$0xff] (%p4244_p4) }
0x15d9   : > { %v3390_v60 = vld [vmem:[%s4486_s29 + $0x10] sm:$0xff] (%p4244_p4)  ;;  %3387 = vst [vmem:[%s3352_s6] sm:$0xff] (%p4244_p4), %v3386_v58 }
0x15da   : > { %v3087_v62 = vadd.f32 %v3086_v59, %v4438_v2  ;;  %v3921_v2 = vpack.c.bf16 %v3126_v10, %v3125_v6  ;;  %v3388_v59 = vld [vmem:[%s4486_s29 + $0x8] sm:$0xff] (%p4244_p4)  ;;  %3391 = vst [vmem:[%s3352_s6 + $0x20] sm:$0xff] (%p4244_p4), %v3390_v60 }
0x15db   : > { %3389 = vst [vmem:[%s3352_s6 + $0x10] sm:$0xff] (%p4244_p4), %v3388_v59 }
0x15dc   : > { %v3095_v63 = vadd.f32 %v3566_v61, %v3087_v62  ;;  %3922 = vmatpush3.bf16.msra.mxu0 %v3921_v2  ;;  %v3392_v61 = vld [vmem:[%s4486_s29 + $0x18] sm:$0xff] (%p4244_p4) }
0x15dd   : > { %3923 = vmatprep.subr.bf16.mxu0 %v4074_v3  ;;  %v3216_v3 = vld [vmem:[%s4699_s20 + $0x30] sm:$0xff]  ;;  %3393 = vst [vmem:[%s3352_s6 + $0x30] sm:$0xff] (%p4244_p4), %v3392_v61 }
0x15de   : > { %v3098_v0 = vsel %vm834_vm1, %v3095_v63, 0.0  ;;  %v3936_v36 = vpack.c.bf16 %v3217_v35, %v3216_v3 }
0x15df   : > { %3099 = vadd.xlane.f32.xlu0 %v3098_v0 }
0x15e0   : > { %3925 = vmatpush3.bf16.msra.mxu0 %v3924_v16  ;;  %3937 = vmatpush3.bf16.msra.mxu1 %v3936_v36 }
0x166c   : > { %v3100_v1 = vpop.xlane.xlu0 %3099 }
0x166d   : > { %v3101_v4 = vmul.f32 0.03125, %v3100_v1 }
0x166f   : > { %v3102_v5 = vsub.f32 %v3095_v63, %v3101_v4 }
0x1671   : > { %v3103_v7 = vmul.f32 %v3102_v5, %v3102_v5 }
0x1673   : > { %v3104_v9 = vsel %vm834_vm1, %v3103_v7, 0.0 }
0x1674   : > { %3105 = vadd.xlane.f32.xlu1 %v3104_v9 }
0x1701   : > { %v3106_v26 = vpop.xlane.xlu1 %3105 }
0x1702   : > { %v3107_v27 = vmul.f32 0.03125, %v3106_v26 }
0x1704   : > { %v3108_v11 = vadd.f32 1e-05, %v3107_v27 }
0x1706   : > { %4046 = vrsqrt.f32 %v3108_v11 }
0x1710   : > { %v4047_v28 = vpop.eup %4046 }
0x1711   : > { %v3110_v30 = vmul.f32 %v4047_v28, %v3102_v5 }
0x1713   : > { %v3117_v32 = vmul.f32 %v3567_v29, %v3110_v30 }
0x1715   : > { %v3124_v34 = vadd.f32 %v3568_v31, %v3117_v32 }
0x1717   : > { %3847 = vmatmul.mubr.msk.f32.vlgmr.msra.gmra.mrb[26].mxu0 %vm834_vm1, %v3124_v34 }
0x17ea   : > { %v3205_v38 = vpop.f32.mrb[26].mxu0 }
0x17eb   : > { %v3206_v21 = vadd.f32 %v3569_v37, %v3205_v38  ;;  %v3848_v39 = vpop.f32.mrb[27].mxu0 }
0x17ed   : > { %v3209_v40 = vmax.f32 %v3206_v21, 0.0 }
0x17ef   : > { %3866 = vmatmul.mubr.msk.f32.vlgmr.msra.gmra.mrb[28].mxu1 %vm3225_vm8, %v3209_v40 }
0x18c2   : > { %v3295_v42 = vpop.f32.mrb[28].mxu1 }
0x18c3   : > { %v3296_v43 = vadd.f32 %v3571_v41, %v3295_v42  ;;  %v3867_v44 = vpop.f32.mrb[29].mxu1 }
0x18c5   : > { %v3299_v45 = vadd.f32 %v3296_v43, %v3124_v34 }
0x18c7   : > { %v3302_v13 = vsel %vm834_vm1, %v3299_v45, 0.0 }
0x18c8   : > { %3303 = vadd.xlane.f32.xlu0 %v3302_v13 }
0x1955   : > { %v3304_v8 = vpop.xlane.xlu0 %3303 }
0x1956   : > { %v3305_v46 = vmul.f32 0.03125, %v3304_v8 }
0x1958   : > { %v3306_v47 = vsub.f32 %v3299_v45, %v3305_v46 }
0x195a   : > { %v3307_v48 = vmul.f32 %v3306_v47, %v3306_v47 }
0x195c   : > { %v3308_v49 = vsel %vm834_vm1, %v3307_v48, 0.0 }
0x195d   : > { %3309 = vadd.xlane.f32.xlu0 %v3308_v49 }
0x19ea   : > { %v3310_v50 = vpop.xlane.xlu0 %3309 }
0x19eb   : > { %v3311_v51 = vmul.f32 0.03125, %v3310_v50 }
0x19ed   : > { %v3312_v52 = vadd.f32 1e-05, %v3311_v51 }
0x19ef   : > { %4048 = vrsqrt.f32 %v3312_v52 }
0x19f9   : > { %v4049_v53 = vpop.eup %4048 }
0x19fa   : > { %v3314_v33 = vmul.f32 %v4049_v53, %v3306_v47  ;;  %3350 = sbr.rel (!%p4244_p4) target bundleno = 6657 (0x1a01), region = 124 }
0x19fc   : > { %v3321_v56 = vmul.f32 %v3573_v54, %v3314_v33 }
0x19fe   : > { %v3328_v57 = vadd.f32 %v3574_v55, %v3321_v56 }
0x1a00   : > { %3329 = vst.msk [vmem:[%s817_s5] sm:$0xff] %vm834_vm1, %v3328_v57 }
0x1a01 PF: > { %s4757_s6 = sld [smem:[#allocation4_spill]]  ;;  %s4758_s29 = sld [smem:[#allocation3_spill]] }
0x1a02   : > { %s4759_s2 = sld [smem:[#allocation5_spill]] }
0x1a07   : > { %p33_p8 = scmp.ge.s32.totalorder %s4757_s6, 4  }
0x1a09   :  { %35 = sbr.rel (!%p33_p8) target bundleno = 13 (0xd), region = 208 }

</bundles_post_ra>
